<compile_context>
chip_gen: v7x
topology: tpu7x:2x2x1
jax: 0.10.0
libtpu: 0.0.40
codegen_flags: <defaults>
</compile_context>

<pallas_src>
import functools

import jax
import jax.numpy as jnp
from jax.experimental import pallas as pl
from jax.experimental.pallas import tpu as pltpu


def _grid_sample_kernel(x_ref, coord_ref, out_ref, *, C, D, H, W):
    """One (batch n, output-tile q) step of trilinear grid_sample.

    x_ref:     (1, C*D, H*W)  full input volume for batch n (resident, 1-buffered)
    coord_ref: (1, 3, TQ)     sample_grid + flow for this tile (rows = x, y, z)
    out_ref:   (1, C, TQ)     warped output tile (lane-dense)
    """
    tq = out_ref.shape[-1]
    g = coord_ref[0]                                     # (3, TQ), normalized [-1, 1]

    def corner_weights(row, size):
        gc = g[row:row + 1, :]                           # (1, TQ)
        # align_corners=True unnormalization, then border clamp.
        c = (gc + 1.0) * (0.5 * (size - 1))
        c = jnp.clip(c, 0.0, float(size - 1))
        i0 = c.astype(jnp.int32)                         # == floor(c), c >= 0
        f = c - i0.astype(jnp.float32)                   # fractional weight
        k = jax.lax.broadcasted_iota(jnp.int32, (size, tq), 0)
        # Two nonzeros per column: (i0 -> 1-f), (i0+1 -> f).  At the top edge
        # the out-of-range index i0+1 == size has weight f == 0 exactly.
        return (jnp.where(k == i0, 1.0 - f, 0.0)
                + jnp.where(k == i0 + 1, f, 0.0))        # (size, TQ), f32

    a_w = corner_weights(0, W)                           # grid[..., 0] -> W axis
    a_h = corner_weights(1, H)                           # grid[..., 1] -> H axis
    a_d = corner_weights(2, D)                           # grid[..., 2] -> D axis

    # Fold H into the MXU contraction: combined weight with 4 nonzeros/column.
    a_hw = (a_h[:, None, :] * a_w[None, :, :]).reshape(H * W, tq)   # (H*W, TQ)

    # bf16 MXU feeds, f32 accumulation.
    u = jnp.dot(x_ref[0].astype(jnp.bfloat16),
                a_hw.astype(jnp.bfloat16),
                preferred_element_type=jnp.float32)      # (C*D, TQ)
    u = u.reshape(C, D, tq)
    # Remaining D contraction: broadcast-multiply + sublane reduce on VPU/XLU.
    o = jnp.sum(u * a_d[None], axis=1)                   # (C, TQ)
    out_ref[0] = o.astype(out_ref.dtype)


def _vmem_budget_bytes():
    """Per-generation VMEM budget (v7x has only 64 MiB per TensorCore)."""
    kind = ""
    try:
        kind = jax.devices()[0].device_kind.lower()
    except Exception:
        pass
    if "v7" in kind:
        return 56 * 1024 * 1024
    return 100 * 1024 * 1024          # v5e / v6e: 128 MiB physical


def _estimate_vmem_bytes(C, D, H, W, tq):
    """Rough per-step VMEM footprint for the dense separable formulation."""
    f32, bf16 = 4, 2
    x_block = C * D * H * W * f32             # resident volume, single-buffered
    x_bf16 = C * D * H * W * bf16             # bf16 MXU-feed copy
    coords = 2 * 3 * tq * f32                 # double-buffered coordinate tile
    out = 2 * C * tq * f32                    # double-buffered output tile
    weights = (W + H + D) * tq * f32          # a_w, a_h, a_d
    a_hw = H * W * tq * (f32 + bf16)          # combined weight (f32 + bf16 copy)
    inter = C * D * tq * f32                  # matmul result / D-reduction temp
    return x_block + x_bf16 + coords + out + weights + a_hw + inter


def _pick_tq(Q, C, D, H, W, budget):
    """Largest lane-friendly output-tile size that divides Q and fits VMEM."""
    for cand in (2048, 1024, 512, 256, 128):
        if Q % cand == 0 and int(_estimate_vmem_bytes(C, D, H, W, cand) * 1.25) <= budget:
            return cand
    for cand in (128, 256, 512, 1024, 2048):
        if Q % cand == 0:
            return cand
    return Q


def spatial_transform_unit(x, flow, sample_grid, *, interpolator="bilinear", tq=None):
    """Pallas equivalent of SpatialTransform_unit.forward(x, flow, sample_grid).

    x:           (N, C, D, H, W) float32
    flow:        (N, Do, Ho, Wo, 3) float32, displacement in normalized coords
    sample_grid: (N, Do, Ho, Wo, 3) float32, normalized base grid in [-1, 1]
    returns:     (N, C, Do, Ho, Wo) float32
    """
    if interpolator != "bilinear":
        # TODO(synk): 'nearest' interpolation mode not implemented.
        raise NotImplementedError("only interpolator='bilinear' is supported")

    N, C, D, H, W = x.shape
    assert flow.shape == sample_grid.shape
    assert flow.shape[0] == N and flow.shape[-1] == 3
    Do, Ho, Wo = flow.shape[1:4]
    Q = Do * Ho * Wo

    budget = _vmem_budget_bytes()
    tq = _pick_tq(Q, C, D, H, W, budget) if tq is None else tq
    assert Q % tq == 0

    # Layout plumbing only:
    #  * sample_grid + flow computed once here (the add fuses into the HBM
    #    transpose), presented as a lane-dense (N, 3, Q) coordinate slab.
    #  * x presented as (N, C*D, H*W): free row-major reshape in HBM so the
    #    kernel's MXU operand needs no in-kernel relayout.
    coords = jnp.transpose((sample_grid + flow).reshape(N, Q, 3), (0, 2, 1))
    x_mat = x.reshape(N, C * D, H * W)

    kernel = functools.partial(_grid_sample_kernel, C=C, D=D, H=H, W=W)

    out = pl.pallas_call(
        kernel,
        out_shape=jax.ShapeDtypeStruct((N, C, Q), x.dtype),
        grid_spec=pltpu.PrefetchScalarGridSpec(
            num_scalar_prefetch=0,
            grid=(N, Q // tq),
            in_specs=[
                # Full per-batch volume, resident across all q tiles of n.
                # Single-buffered: its index_map is constant in q, so double
                # buffering would only double the VMEM footprint.
                pl.BlockSpec((1, C * D, H * W), lambda n, q: (n, 0, 0),
                             pipeline_mode=pl.Buffered(1)),
                pl.BlockSpec((1, 3, tq), lambda n, q: (n, 0, q)),
            ],
            out_specs=pl.BlockSpec((1, C, tq), lambda n, q: (n, 0, q)),
        ),
        compiler_params=pltpu.CompilerParams(
            dimension_semantics=("parallel", "parallel"),
            vmem_limit_bytes=budget,
        ),
    )(x_mat, coords)

    return out.reshape(N, C, Do, Ho, Wo)


def _grid_sample_ref(x, flow, sample_grid):
    """Pure-JAX reference (torch grid_sample semantics: border, align_corners)."""
    N, C, D, H, W = x.shape
    g = sample_grid + flow
    Do, Ho, Wo = g.shape[1:4]
    Qf = Do * Ho * Wo

    def unnorm(c, size):
        c = (c + 1.0) * (0.5 * (size - 1))
        return jnp.clip(c, 0.0, float(size - 1))

    ix = unnorm(g[..., 0], W)
    iy = unnorm(g[..., 1], H)
    iz = unnorm(g[..., 2], D)
    x0 = jnp.floor(ix); y0 = jnp.floor(iy); z0 = jnp.floor(iz)
    fx, fy, fz = ix - x0, iy - y0, iz - z0
    x0 = x0.astype(jnp.int32); y0 = y0.astype(jnp.int32); z0 = z0.astype(jnp.int32)
    x1 = jnp.minimum(x0 + 1, W - 1)
    y1 = jnp.minimum(y0 + 1, H - 1)
    z1 = jnp.minimum(z0 + 1, D - 1)

    xf = x.reshape(N, C, D * H * W)

    def take(zi, yi, xi):
        idx = ((zi * H + yi) * W + xi).reshape(N, 1, Qf)
        idx = jnp.broadcast_to(idx, (N, C, Qf))
        return jnp.take_along_axis(xf, idx, axis=2).reshape(N, C, Do, Ho, Wo)

    def wgt(wz, wy, wx):
        return (wz * wy * wx)[:, None]

    return (take(z0, y0, x0) * wgt(1 - fz, 1 - fy, 1 - fx)
            + take(z0, y0, x1) * wgt(1 - fz, 1 - fy, fx)
            + take(z0, y1, x0) * wgt(1 - fz, fy, 1 - fx)
            + take(z0, y1, x1) * wgt(1 - fz, fy, fx)
            + take(z1, y0, x0) * wgt(fz, 1 - fy, 1 - fx)
            + take(z1, y0, x1) * wgt(fz, 1 - fy, fx)
            + take(z1, y1, x0) * wgt(fz, fy, 1 - fx)
            + take(z1, y1, x1) * wgt(fz, fy, fx))


if __name__ == "__main__":
    key = jax.random.PRNGKey(0)
    k1, k2 = jax.random.split(key)

    N, C, D, H, W = 2, 2, 16, 16, 16
    x = jax.random.uniform(k1, (N, C, D, H, W), dtype=jnp.float32)

    # Normalized identity mesh grid (like generate_grid_unit) + small random flow.
    zs = jnp.linspace(-1.0, 1.0, D)
    ys = jnp.linspace(-1.0, 1.0, H)
    xs = jnp.linspace(-1.0, 1.0, W)
    gz, gy, gx = jnp.meshgrid(zs, ys, xs, indexing="ij")
    sample_grid = jnp.broadcast_to(
        jnp.stack([gx, gy, gz], axis=-1), (N, D, H, W, 3)
    ).astype(jnp.float32)
    flow = 0.2 * (jax.random.uniform(k2, (N, D, H, W, 3), dtype=jnp.float32) * 2.0 - 1.0)

    fwd = jax.jit(spatial_transform_unit)
    out = fwd(x, flow, sample_grid)
    jax.block_until_ready(out)

    # Smoke-check vs pure-JAX f32 reference (bf16 MXU feeds => ~1e-2 worst case).
    ref = _grid_sample_ref(x, flow, sample_grid)
    err = float(jnp.max(jnp.abs(out - ref)))
    if not err < 5e-2:
        raise RuntimeError(f"mismatch vs reference: max abs err = {err}")

    print("KERNEL_OK")
</pallas_src>

<mosaic_0001>
module attributes {stable_mosaic.version = 11 : i64} {
  func.func @_grid_sample_kernel(%arg0: i32, %arg1: i32, %arg2: memref<1x32x256xf32, #tpu.memory_space<vmem>>, %arg3: memref<1x3x2048xf32, #tpu.memory_space<vmem>>, %arg4: memref<1x2x2048xf32, #tpu.memory_space<vmem>>) attributes {dimension_semantics = [#tpu.dimension_semantics<parallel>, #tpu.dimension_semantics<parallel>], iteration_bounds = array<i64: 2, 2>, scalar_prefetch = 0 : i64, scratch_operands = 0 : i64, tpu.core_type = #tpu.core_type<tc>, window_params = [{pipeline_mode = #tpu.pipeline_mode<synchronous>, transform_indices = @transform_0, window_bounds = array<i64: 1, 32, 256>}, {transform_indices = @transform_1, window_bounds = array<i64: 1, 3, 2048>}, {transform_indices = @transform_2, window_bounds = array<i64: 1, 2, 2048>}]} {
    %c0 = arith.constant 0 : index
    %c0_0 = arith.constant 0 : index
    %c0_1 = arith.constant 0 : index
    %0 = vector.load %arg3[%c0, %c0_0, %c0_1] : memref<1x3x2048xf32, #tpu.memory_space<vmem>>, vector<1x3x2048xf32>
    %1 = vector.shape_cast %0 : vector<1x3x2048xf32> to vector<3x2048xf32>
    %2 = vector.extract_strided_slice %1 {offsets = [0, 0], sizes = [1, 2048], strides = [1, 1]} : vector<3x2048xf32> to vector<1x2048xf32>
    %cst = arith.constant 1.000000e+00 : f32
    %3 = vector.broadcast %cst : f32 to vector<1x2048xf32>
    %4 = arith.addf %2, %3 : vector<1x2048xf32>
    %cst_2 = arith.constant 7.500000e+00 : f32
    %5 = vector.broadcast %cst_2 : f32 to vector<1x2048xf32>
    %6 = arith.mulf %4, %5 : vector<1x2048xf32>
    %cst_3 = arith.constant 0.000000e+00 : f32
    %cst_4 = arith.constant 1.500000e+01 : f32
    %7 = vector.broadcast %cst_3 : f32 to vector<1x2048xf32>
    %8 = arith.maximumf %7, %6 : vector<1x2048xf32>
    %9 = vector.broadcast %cst_4 : f32 to vector<1x2048xf32>
    %10 = arith.minimumf %9, %8 : vector<1x2048xf32>
    %11 = arith.fptosi %10 : vector<1x2048xf32> to vector<1x2048xi32>
    %12 = arith.sitofp %11 : vector<1x2048xi32> to vector<1x2048xf32>
    %13 = arith.subf %10, %12 : vector<1x2048xf32>
    %14 = tpu.iota {dimensions = array<i32: 0>} : vector<16x2048xi32>
    %15 = vector.broadcast %11 : vector<1x2048xi32> to vector<16x2048xi32>
    %16 = arith.cmpi eq, %14, %15 : vector<16x2048xi32>
    %cst_5 = arith.constant 1.000000e+00 : f32
    %17 = vector.broadcast %cst_5 : f32 to vector<1x2048xf32>
    %18 = arith.subf %17, %13 : vector<1x2048xf32>
    %cst_6 = arith.constant 0.000000e+00 : f32
    %19 = vector.shape_cast %18 : vector<1x2048xf32> to vector<1x2048xf32>
    %20 = vector.broadcast %19 : vector<1x2048xf32> to vector<16x2048xf32>
    %21 = vector.broadcast %cst_6 : f32 to vector<16x2048xf32>
    %22 = arith.select %16, %20, %21 : vector<16x2048xi1>, vector<16x2048xf32>
    %c1_i32 = arith.constant 1 : i32
    %23 = vector.broadcast %c1_i32 : i32 to vector<1x2048xi32>
    %24 = arith.addi %11, %23 : vector<1x2048xi32>
    %25 = vector.broadcast %24 : vector<1x2048xi32> to vector<16x2048xi32>
    %26 = arith.cmpi eq, %14, %25 : vector<16x2048xi32>
    %cst_7 = arith.constant 0.000000e+00 : f32
    %27 = vector.shape_cast %13 : vector<1x2048xf32> to vector<1x2048xf32>
    %28 = vector.broadcast %27 : vector<1x2048xf32> to vector<16x2048xf32>
    %29 = vector.broadcast %cst_7 : f32 to vector<16x2048xf32>
    %30 = arith.select %26, %28, %29 : vector<16x2048xi1>, vector<16x2048xf32>
    %31 = arith.addf %22, %30 : vector<16x2048xf32>
    %32 = vector.extract_strided_slice %1 {offsets = [1, 0], sizes = [1, 2048], strides = [1, 1]} : vector<3x2048xf32> to vector<1x2048xf32>
    %cst_8 = arith.constant 1.000000e+00 : f32
    %33 = vector.broadcast %cst_8 : f32 to vector<1x2048xf32>
    %34 = arith.addf %32, %33 : vector<1x2048xf32>
    %cst_9 = arith.constant 7.500000e+00 : f32
    %35 = vector.broadcast %cst_9 : f32 to vector<1x2048xf32>
    %36 = arith.mulf %34, %35 : vector<1x2048xf32>
    %cst_10 = arith.constant 0.000000e+00 : f32
    %cst_11 = arith.constant 1.500000e+01 : f32
    %37 = vector.broadcast %cst_10 : f32 to vector<1x2048xf32>
    %38 = arith.maximumf %37, %36 : vector<1x2048xf32>
    %39 = vector.broadcast %cst_11 : f32 to vector<1x2048xf32>
    %40 = arith.minimumf %39, %38 : vector<1x2048xf32>
    %41 = arith.fptosi %40 : vector<1x2048xf32> to vector<1x2048xi32>
    %42 = arith.sitofp %41 : vector<1x2048xi32> to vector<1x2048xf32>
    %43 = arith.subf %40, %42 : vector<1x2048xf32>
    %44 = tpu.iota {dimensions = array<i32: 0>} : vector<16x2048xi32>
    %45 = vector.broadcast %41 : vector<1x2048xi32> to vector<16x2048xi32>
    %46 = arith.cmpi eq, %44, %45 : vector<16x2048xi32>
    %cst_12 = arith.constant 1.000000e+00 : f32
    %47 = vector.broadcast %cst_12 : f32 to vector<1x2048xf32>
    %48 = arith.subf %47, %43 : vector<1x2048xf32>
    %cst_13 = arith.constant 0.000000e+00 : f32
    %49 = vector.shape_cast %48 : vector<1x2048xf32> to vector<1x2048xf32>
    %50 = vector.broadcast %49 : vector<1x2048xf32> to vector<16x2048xf32>
    %51 = vector.broadcast %cst_13 : f32 to vector<16x2048xf32>
    %52 = arith.select %46, %50, %51 : vector<16x2048xi1>, vector<16x2048xf32>
    %c1_i32_14 = arith.constant 1 : i32
    %53 = vector.broadcast %c1_i32_14 : i32 to vector<1x2048xi32>
    %54 = arith.addi %41, %53 : vector<1x2048xi32>
    %55 = vector.broadcast %54 : vector<1x2048xi32> to vector<16x2048xi32>
    %56 = arith.cmpi eq, %44, %55 : vector<16x2048xi32>
    %cst_15 = arith.constant 0.000000e+00 : f32
    %57 = vector.shape_cast %43 : vector<1x2048xf32> to vector<1x2048xf32>
    %58 = vector.broadcast %57 : vector<1x2048xf32> to vector<16x2048xf32>
    %59 = vector.broadcast %cst_15 : f32 to vector<16x2048xf32>
    %60 = arith.select %56, %58, %59 : vector<16x2048xi1>, vector<16x2048xf32>
    %61 = arith.addf %52, %60 : vector<16x2048xf32>
    %62 = vector.extract_strided_slice %1 {offsets = [2, 0], sizes = [1, 2048], strides = [1, 1]} : vector<3x2048xf32> to vector<1x2048xf32>
    %cst_16 = arith.constant 1.000000e+00 : f32
    %63 = vector.broadcast %cst_16 : f32 to vector<1x2048xf32>
    %64 = arith.addf %62, %63 : vector<1x2048xf32>
    %cst_17 = arith.constant 7.500000e+00 : f32
    %65 = vector.broadcast %cst_17 : f32 to vector<1x2048xf32>
    %66 = arith.mulf %64, %65 : vector<1x2048xf32>
    %cst_18 = arith.constant 0.000000e+00 : f32
    %cst_19 = arith.constant 1.500000e+01 : f32
    %67 = vector.broadcast %cst_18 : f32 to vector<1x2048xf32>
    %68 = arith.maximumf %67, %66 : vector<1x2048xf32>
    %69 = vector.broadcast %cst_19 : f32 to vector<1x2048xf32>
    %70 = arith.minimumf %69, %68 : vector<1x2048xf32>
    %71 = arith.fptosi %70 : vector<1x2048xf32> to vector<1x2048xi32>
    %72 = arith.sitofp %71 : vector<1x2048xi32> to vector<1x2048xf32>
    %73 = arith.subf %70, %72 : vector<1x2048xf32>
    %74 = tpu.iota {dimensions = array<i32: 0>} : vector<16x2048xi32>
    %75 = vector.broadcast %71 : vector<1x2048xi32> to vector<16x2048xi32>
    %76 = arith.cmpi eq, %74, %75 : vector<16x2048xi32>
    %cst_20 = arith.constant 1.000000e+00 : f32
    %77 = vector.broadcast %cst_20 : f32 to vector<1x2048xf32>
    %78 = arith.subf %77, %73 : vector<1x2048xf32>
    %cst_21 = arith.constant 0.000000e+00 : f32
    %79 = vector.shape_cast %78 : vector<1x2048xf32> to vector<1x2048xf32>
    %80 = vector.broadcast %79 : vector<1x2048xf32> to vector<16x2048xf32>
    %81 = vector.broadcast %cst_21 : f32 to vector<16x2048xf32>
    %82 = arith.select %76, %80, %81 : vector<16x2048xi1>, vector<16x2048xf32>
    %c1_i32_22 = arith.constant 1 : i32
    %83 = vector.broadcast %c1_i32_22 : i32 to vector<1x2048xi32>
    %84 = arith.addi %71, %83 : vector<1x2048xi32>
    %85 = vector.broadcast %84 : vector<1x2048xi32> to vector<16x2048xi32>
    %86 = arith.cmpi eq, %74, %85 : vector<16x2048xi32>
    %cst_23 = arith.constant 0.000000e+00 : f32
    %87 = vector.shape_cast %73 : vector<1x2048xf32> to vector<1x2048xf32>
    %88 = vector.broadcast %87 : vector<1x2048xf32> to vector<16x2048xf32>
    %89 = vector.broadcast %cst_23 : f32 to vector<16x2048xf32>
    %90 = arith.select %86, %88, %89 : vector<16x2048xi1>, vector<16x2048xf32>
    %91 = arith.addf %82, %90 : vector<16x2048xf32>
    %92 = vector.shape_cast %61 : vector<16x2048xf32> to vector<16x1x2048xf32>
    %93 = vector.shape_cast %31 : vector<16x2048xf32> to vector<1x16x2048xf32>
    %94 = vector.broadcast %92 : vector<16x1x2048xf32> to vector<16x16x2048xf32>
    %95 = vector.broadcast %93 : vector<1x16x2048xf32> to vector<16x16x2048xf32>
    %96 = arith.mulf %94, %95 : vector<16x16x2048xf32>
    %97 = vector.shape_cast %96 : vector<16x16x2048xf32> to vector<256x2048xf32>
    %c0_24 = arith.constant 0 : index
    %c0_25 = arith.constant 0 : index
    %c0_26 = arith.constant 0 : index
    %98 = vector.load %arg2[%c0_24, %c0_25, %c0_26] : memref<1x32x256xf32, #tpu.memory_space<vmem>>, vector<1x32x256xf32>
    %99 = vector.shape_cast %98 : vector<1x32x256xf32> to vector<32x256xf32>
    %100 = arith.truncf %99 : vector<32x256xf32> to vector<32x256xbf16>
    %101 = arith.truncf %97 : vector<256x2048xf32> to vector<256x2048xbf16>
    %cst_27 = arith.constant dense<0.000000e+00> : vector<32x2048xf32>
    %102 = tpu.matmul %100, %101, %cst_27 {dimension_numbers = #tpu.dot_dimension_numbers<[1], [0], [0], [1], [0, 0, 1, 1], [], []>} : vector<32x256xbf16>, vector<256x2048xbf16>, vector<32x2048xf32> -> vector<32x2048xf32>
    %103 = vector.shape_cast %102 : vector<32x2048xf32> to vector<2x16x2048xf32>
    %104 = vector.shape_cast %91 : vector<16x2048xf32> to vector<1x16x2048xf32>
    %105 = vector.broadcast %104 : vector<1x16x2048xf32> to vector<2x16x2048xf32>
    %106 = arith.mulf %103, %105 : vector<2x16x2048xf32>
    %cst_28 = arith.constant dense<0.000000e+00> : vector<2x2048xf32>
    %107 = vector.multi_reduction <add>, %106, %cst_28 [1] : vector<2x16x2048xf32> to vector<2x2048xf32>
    %c0_29 = arith.constant 0 : index
    %c0_30 = arith.constant 0 : index
    %c0_31 = arith.constant 0 : index
    %108 = vector.load %arg4[%c0_29, %c0_30, %c0_31] : memref<1x2x2048xf32, #tpu.memory_space<vmem>>, vector<1x2x2048xf32>
    %109 = vector.shape_cast %108 : vector<1x2x2048xf32> to vector<2x2048xf32>
    %110 = vector.shape_cast %107 : vector<2x2048xf32> to vector<1x2x2048xf32>
    tpu.vector_store %arg4[%c0_29, %c0_30, %c0_31], %110 {strides = array<i32>} : memref<1x2x2048xf32, #tpu.memory_space<vmem>>, vector<1x2x2048xf32>,
    return
  }
  func.func @transform_0(%arg0: i32, %arg1: i32) -> (i32, i32, i32) {
    %c0_i32 = arith.constant 0 : i32
    %c0_i32_0 = arith.constant 0 : i32
    %c0_i32_1 = arith.constant 0 : i32
    return %arg0, %c0_i32, %c0_i32_0 : i32, i32, i32
  }
  func.func @transform_1(%arg0: i32, %arg1: i32) -> (i32, i32, i32) {
    %c0_i32 = arith.constant 0 : i32
    %c0_i32_0 = arith.constant 0 : i32
    return %arg0, %c0_i32, %arg1 : i32, i32, i32
  }
  func.func @transform_2(%arg0: i32, %arg1: i32) -> (i32, i32, i32) {
    %c0_i32 = arith.constant 0 : i32
    %c0_i32_0 = arith.constant 0 : i32
    return %arg0, %c0_i32, %arg1 : i32, i32, i32
  }
}

</mosaic_0001>

<bundles_post_ra>
// kernel: spatial_transform_unit.1
= control target key start
LH: loop header
LB: loop body
LE: loop exit
PB: predicated region body
PF: predicated region fallthrough
CT: control target
= control target key end

     0   :  { %s9894_s0 = inlined_call_operand.hbm [shape: f32[2,32,256], index: 0, kind: input, shape index: {}]   ;;  %s9895_s1 = inlined_call_operand.hbm [shape: f32[2,3,4096], index: 1, kind: input, shape index: {}]   ;;  %s9896_s2 = inlined_call_operand.hbm [shape: f32[2,2,4096], index: 2, kind: output, shape index: {}]  }
   0x1   :  { %10049 = sst [smem:[#allocation86_spill]] %s9894_s0 }
   0x2   :  { %7 = vsyncpa [#allocation3], 0 }
   0x3   :  { %8 = vsyncpa [#allocation6], 0 }
   0x4   :  { %10 = vsyncpa [#allocation6 + $0x1], 0 }
   0x5   :  { %11 = vsyncpa [#allocation4], 0 }
   0x6   :  { %13 = vsyncpa [#allocation4 + $0x1], 0  ;;  %s6449_s9 = smov 0   ;;  %s6451_s10 = smov 0  }
   0x7   :  { %s6453_s11 = smov 0   ;;  %s6455_s12 = smov 0  }
   0x8   :  { %s6457_s13 = smov 0   ;;  %s6459_s14 = smov 0  }
   0x9   :  { %s6461_s15 = smov 0   ;;  %s6463_s16 = smov 0  }
   0xa   :  { %s6465_s17 = smov 0   ;;  %s6467_s18 = smov 0  }
   0xb   :  { %s6469_s19 = smov 0  }
   0xc LB: > { %10050 = sst [smem:[#allocation11_spill]] %s6401_s13  ;;  %s6090_s20 = sadd.s32 4294967295, %s6425_s19   ;;  %s6425_s19 = sphi %s6469_s19, %s19_s19   ;;  %s6421_s18 = sphi %s6467_s18, %s10291_s18   ;;  %s6417_s17 = sphi %s6465_s17, %s10290_s17   ;;  %s6413_s16 = sphi %s6463_s16, %s10289_s16   ;;  %s6409_s15 = sphi %s6461_s15, %s10288_s15   ;;  %s6405_s14 = sphi %s6459_s14, %s10287_s14   ;;  %s6401_s13 = sphi %s6457_s13, %s10286_s13   ;;  %s6397_s12 = sphi %s6455_s12, %s10285_s12   ;;  %s6393_s11 = sphi %s6453_s11, %s10284_s11   ;;  %s6389_s10 = sphi %s6451_s10, %s10283_s10   ;;  %s6385_s9 = sphi %s6449_s9, %s10282_s9  }
   0xd   : > { %p51_p0 = scmp.ne.s32.totalorder %s6401_s13, %s6397_s12  ;;  %p6506_p1 = scmp.eq.s32.totalorder %s6090_s20, 0 }
   0xe   : > { %p6092_p2 = scmp.ge.s32.totalorder %s6425_s19, 1  ;;  %p118_p3 = scmp.lt.s32.totalorder %s6425_s19, 5 }
   0xf   : > { %s10051_s21 = scalar_select %p6506_p1, 1, 0 }
  0x10   : > { %s6109_s22 = sshll.u32 %s6413_s16, 10  ;;  %p6515_p4 = por %p6506_p1, %p51_p0 }
  0x11   : > { %s10053_s0 = sld [smem:[#allocation86_spill]]  ;;  %p6524_p5 = pnand %p6092_p2, %p118_p3 }
  0x12   : > { %s10052_s23 = scalar_select %p6515_p4, 1, 0 }
  0x13   : > { %s10054_s27 = scalar_select %p6524_p5, 1, 0 }
  0x14   : > { %s6427_s28 = smov [#allocation2]   ;;  %p6132_p6 = pneg %p6524_p5 }
  0x15   : > { %s133_s29 = sshll.u32 %s6427_s28, 4  ;;  %s6530_s29 = int_to_ptr.vmem [resolvable:$true] %s133_s29 }
  0x16   : > { %p6534_p7 = pnand %p6132_p6, %p6515_p4 }
  0x17   : > { %s6522_s26 = scalar_lea.hbm %s10053_s0, %s6109_s22  ;;  %s6244_s6 = scalar_lea.hbm %s10053_s0, 2048 }
  0x18   : > { %s6239_s3 = scalar_lea.hbm %s6522_s26, 1024  ;;  %p6241_p9 = pneg %p6534_p7 }
  0x19   : > { %p6240_p8 = scmp.ne.s32.totalorder %s6522_s26, %s6239_s3  ;;  %p6245_p12 = scmp.lt.u32.totalorder %s6522_s26, %s10053_s0 }
  0x1a   : > { %p6246_p13 = scmp.lt.u32.totalorder %s6244_s6, %s6239_s3  ;;  %p6248_p2 = scmp.lt.u32.totalorder %s6239_s3, %s6522_s26 }
  0x1b   : > { %p6242_p10 = pnand %p6241_p9, %p6240_p8 }
  0x1c   : > { %p6247_p0 = por %p6246_p13, %p6245_p12 }
  0x1d   : > { %p6243_p11 = pneg %p6242_p10 }
  0x1e   : > { %p6249_p3 = por %p6248_p2, %p6247_p0 }
  0x20   : > { %p6250_p6 = pnand %p6249_p3, %p6243_p11 }
  0x22   : > { %6253 = shalt.err (!%p6250_p6)
}
  0x23   : > { %s6254_s12 = scalar_lea.vmem %s6530_s29, 1024  ;;  %p6262_p5 = scmp.lt.s32.totalorder %s6530_s29, %s6530_s29 }
  0x24   : > { %p6255_p8 = scmp.ne.s32.totalorder %s6530_s29, %s6254_s12  ;;  %p6263_p1 = scmp.lt.s32.totalorder %s6254_s12, %s6254_s12 }
  0x26   : > { %p6257_p10 = pnand %p6255_p8, %p6241_p9  ;;  %p6264_p12 = por %p6263_p1, %p6262_p5 }
  0x28   : > { %p6258_p4 = pneg %p6257_p10 }
  0x2a   : > { %p6265_p13 = pnand %p6264_p12, %p6258_p4 }
  0x2c   : > { %6268 = shalt.err (!%p6265_p13)
}
  0x2d   : > { %s6428_s22 = smov 256   ;;  %s6429_s24 = smov 16  }
  0x2e   : > { %6135 = dma.hbm_to_vmem [thread:$0]  (!%p6534_p7), %s6522_s26, 1024, %s6530_s29, [#allocation3], %s6428_s22, %s6428_s22, %s6429_s24  }
  0x2f   : > { %s6091_s25 = sadd.s32 4294967294, %s6425_s19   ;;  %s28_s28 = sadd.s32 1, %s6417_s17 }
  0x30   : > { %p29_p1 = scmp.ge.s32.totalorder %s28_s28, 2  ;;  %s31_s3 = sadd.s32 1, %s6421_s18 }
  0x31   : > { %s38_s4 = sadd.s32 1, %s6405_s14  ;;  %s66_s5 = sadd.s32 1, %s6393_s11 }
  0x32   : > { %s10293_s28 = smov (%p29_p1, %s28_s28), 0  ;;  %s10295_s3 = smov (!%p29_p1, %s31_s3), %s6421_s18 }
  0x33   : > { %10056 = sst [smem:[#allocation12_spill]] %s10293_s28  ;;  %s62_s6 = ssub.s32 %s6417_s17, %s10293_s28 }
  0x34   : > { %p73_p4 = scmp.ne.s32.totalorder %s6393_s11, %s6389_s10  ;;  %p33_p5 = scmp.ge.s32.totalorder %s10295_s3, 2 }
  0x35   : > { %p74_p7 = scmp.eq.s32.totalorder %s6425_s19, 0  ;;  %p79_p9 = scmp.ne.s32.totalorder %s6389_s10, %s6385_s9 }
  0x36   : > { %p105_p11 = scmp.eq.s32.totalorder %s6090_s20, 3  ;;  %s10297_s3 = smov (%p33_p5, %s10295_s3), 0 }
  0x37   : > { %10057 = sst [smem:[#allocation13_spill]] %s10297_s3  ;;  %p6583_p0 = por %p74_p7, %p73_p4 }
  0x38   : > { %p10059_p2 = scmp.ne.s32.totalorder %s10051_s21, 0  ;;  %s35_s30 = ssub.s32 %s6421_s18, %s10297_s3 }
  0x39   : > { %p6598_p6 = por %p105_p11, %p73_p4  ;;  %p36_p8 = scmp.eq.s32.totalorder %s35_s30, 0 }
  0x3a   : > { %p6592_p3 = por %p79_p9, %p10059_p2  ;;  %s63_s20 = sor.u32 %s62_s6, %s35_s30 }
  0x3b   : > { %s10061_s7 = scalar_select %p6598_p6, 1, 0 }
  0x3c   : > { %p64_p10 = scmp.eq.s32.totalorder %s63_s20, 0  ;;  %p111_p12 = scmp.eq.s32.totalorder %s6091_s25, 3 }
  0x3d   : > { %s6603_s8 = scalar_select %p36_p8, %s6405_s14, %s38_s4  }
  0x3e   : > { %s6606_s12 = scalar_select %p64_p10, %s6393_s11, %s66_s5  }
  0x3f   : > { %p6611_p13 = por %p111_p12, %p79_p9  ;;  %p6144_p1 = scmp.lt.s32.totalorder %s6425_s19, 4 }
  0x40   : > { %s147_s22 = sand.u32 1, %s6393_s11   ;;  %s6097_s24 = sshll.u32 %s6417_s17, 4 }
  0x41   : > { %s10062_s21 = scalar_select %p6611_p13, 1, 0 }
  0x42   : > { %s6096_s0 = sshll.u32 %s147_s22, 6  ;;  %s6098_s3 = sshll.u32 %s6421_s18, 5 }
  0x43   : > { %s157_s28 = sadd.s32 %s6098_s3, %s6097_s24  ;;  %s151_s13 = scalar_lea.vmem [#allocation5], %s6096_s0 }
  0x44   : > { %s161_s6 = sshll.u32 %s151_s13, 4  ;;  %s6099_s30 = sshll.u32 %s157_s28, 6  ;;  %s6619_s6 = int_to_ptr.vmem [resolvable:$true] %s161_s6 }
  0x45   : > { %s6624_s5 = scalar_lea.hbm %s9895_s1, %s6099_s30  ;;  %p6628_p4 = pnand %p6144_p1, %p6583_p0 }
  0x46   : > { %s148_s0 = scalar_lea.sflag [#allocation6], %s147_s22  ;;  %s6269_s13 = scalar_lea.hbm %s6624_s5, 1024 }
  0x47   : > { %p6270_p5 = scmp.ne.s32.totalorder %s6624_s5, %s6269_s13  ;;  %p6271_p7 = pneg %p6628_p4 }
  0x48   : > { %s6274_s26 = scalar_lea.hbm %s9895_s1, 4096  ;;  %p6275_p0 = scmp.lt.u32.totalorder %s6624_s5, %s9895_s1 }
  0x49   : > { %p6272_p9 = pnand %p6271_p7, %p6270_p5  ;;  %p6276_p2 = scmp.lt.u32.totalorder %s6274_s26, %s6269_s13 }
  0x4a   : > { %p6278_p10 = scmp.lt.u32.totalorder %s6269_s13, %s6624_s5 }
  0x4b   : > { %p6273_p11 = pneg %p6272_p9  ;;  %p6277_p8 = por %p6276_p2, %p6275_p0 }
  0x4d   : > { %p6279_p12 = por %p6278_p10, %p6277_p8 }
  0x4f   : > { %p6280_p1 = pnand %p6279_p12, %p6273_p11 }
  0x51   : > { %6283 = shalt.err (!%p6280_p1)
}
  0x52   : > { %s6284_s22 = scalar_lea.vmem %s6619_s6, 1024  ;;  %s6430_s25 = smov [#allocation5]  }
  0x53   : > { %p6285_p5 = scmp.ne.s32.totalorder %s6619_s6, %s6284_s22  ;;  %s6289_s4 = sshll.u32 %s6430_s25, 4  ;;  %s6290_s4 = int_to_ptr.vmem [resolvable:$false] %s6289_s4 }
  0x54   : > { %s6291_s28 = scalar_lea.vmem %s6290_s4, 2048  ;;  %p6292_p6 = scmp.lt.s32.totalorder %s6619_s6, %s6290_s4 }
  0x55   : > { %p6287_p9 = pnand %p6285_p5, %p6271_p7  ;;  %p6293_p0 = scmp.lt.s32.totalorder %s6291_s28, %s6284_s22 }
  0x57   : > { %p6288_p13 = pneg %p6287_p9  ;;  %p6294_p2 = por %p6293_p0, %p6292_p6 }
  0x59   : > { %p6295_p8 = pnand %p6294_p2, %p6288_p13 }
  0x5b   : > { %6298 = shalt.err (!%p6295_p8)
}
  0x5c   : > { %6139 = dma.hbm_to_vmem [thread:$0]  (!%p6628_p4), %s6624_s5, 1024, %s6619_s6, %s148_s0  }
  0x5d   : > { %p10064_p11 = scmp.ne.s32.totalorder %s10054_s27, 0 }
  0x5f   : > { %170 = sbr.rel (%p10064_p11) target bundleno = 861 (0x35d), region = 28 }
  0x66   : > { %p10065_p7 = scmp.ne.s32.totalorder %s10052_s23, 0 }
  0x68   : > { %6372 = dma.done.wait (%p10065_p7), [#allocation3], 1024  }
  0x69   : > { %6374 = vsyncadd (%p10065_p7), [#allocation3], 4294966272  ;;  %s6664_s13 = sand.u32 1, %s6389_s10  }
  0x6a   : > { %s6101_s3 = sshll.u32 %s6664_s13, 6  ;;  %s177_s20 = scalar_lea.sflag [#allocation6], %s6664_s13 }
  0x6b   : > { %s6668_s26 = scalar_lea.vmem [#allocation5], %s6101_s3 }
  0x6c   : > { %6376 = dma.done.wait (%p6592_p3), %s177_s20, 1024  }
  0x6d   : > { %6378 = vsyncadd (%p6592_p3), %s177_s20, 4294966272  ;;  %v203_v0 = vld [vmem:[%s6668_s26] sm:$0x77]  ;;  %v204_v1 = vld [vmem:[%s6668_s26 + $0x8] sm:$0x77]  ;;  %v267_v11 = vlaneseq  ;;  %s6102_s23 = sshll.u32 %s6664_s13, 5 }
  0x6e   : > { %v205_v2 = vld [vmem:[%s6668_s26 + $0x10] sm:$0x77]  ;;  %v206_v3 = vld [vmem:[%s6668_s26 + $0x18] sm:$0x77]  ;;  %v211_v4 = vadd.f32 1.0, %v203_v0  ;;  %v212_v5 = vadd.f32 1.0, %v204_v1 }
  0x6f   : > { %v213_v6 = vadd.f32 1.0, %v205_v2  ;;  %v214_v7 = vadd.f32 1.0, %v206_v3  ;;  %v6678_v20 = vshrl.u32 %v267_v11, 7  ;;  %v6431_v22 = vmov 1966171168   ;;  %s9660_s27 = scalar_lea.vmem [#allocation7], %s6102_s23 }
  0x70   : > { %v219_v8 = vmul.f32 7.5, %v211_v4  ;;  %v220_v9 = vmul.f32 7.5, %v212_v5  ;;  %v2455_v23 = vunpack.c.l.s4 %v6431_v22  ;;  %s6104_s29 = sshll.u32 %s6409_s15, 4  ;;  %s6105_s6 = sshll.u32 %s6413_s16, 5 }
  0x71   : > { %v221_v10 = vmul.f32 7.5, %v213_v6  ;;  %v222_v12 = vmul.f32 7.5, %v214_v7  ;;  %10066 = vst [vmem:[#allocation14_spill] sm:$0xff] %v6678_v20  ;;  %v6681_v27 = vsub.s32 0, %v6678_v20  ;;  %v6684_v29 = vsub.s32 4, %v6678_v20  ;;  %s5985_s5 = sadd.s32 %s6105_s6, %s6104_s29  ;;  %s5989_s24 = sshll.u32 %s9660_s27, 4  ;;  %s9831_s24 = int_to_ptr.vmem [resolvable:$true] %s5989_s24 }
  0x72   : > { %v227_v13 = vmax.f32 %v219_v8, 0.0  ;;  %v228_v14 = vmax.f32 %v220_v9, 0.0  ;;  %v6695_v34 = vadd.s32 8, %v6678_v20  ;;  %v2456_v36 = vunpack.c.0.s8 %v2455_v23  ;;  %s6106_s0 = sshll.u32 %s5985_s5, 5  ;;  %s5973_s15 = scalar_lea.sflag [#allocation4], %s6664_s13 }
  0x73   : > { %v229_v15 = vmax.f32 %v221_v10, 0.0  ;;  %v230_v16 = vmax.f32 %v222_v12, 0.0  ;;  %10067 = vst [vmem:[#allocation15_spill] sm:$0xff] %v6681_v27  ;;  %10068 = vst [vmem:[#allocation16_spill] sm:$0xff] %v6684_v29  ;;  %v6706_v40 = vsub.s32 1, %v6678_v20  ;;  %v6749_v59 = vsub.s32 5, %v6678_v20  ;;  %s9829_s25 = scalar_lea.hbm %s9896_s2, %s6106_s0 }
  0x74   : > { %v235_v17 = vmin.f32 %v227_v13, 15.0  ;;  %v236_v18 = vmin.f32 %v228_v14, 15.0  ;;  %10073 = vst [vmem:[#allocation21_spill] sm:$0xff] %v6695_v34  ;;  %v6752_v60 = vsub.s32 %v2456_v36, %v6678_v20  ;;  %v6759_v63 = vsub.s32 3, %v6678_v20  ;;  %s6299_s16 = scalar_lea.vmem %s9831_s24, 512  ;;  %p10277_p6 = scmp.ne.s32.totalorder %s10061_s7, 0 }
  0x75   : > { %v237_v19 = vmin.f32 %v229_v15, 15.0  ;;  %v238_v21 = vmin.f32 %v230_v16, 15.0  ;;  %10076 = vst [vmem:[#allocation24_spill] sm:$0xff] %v6749_v59  ;;  %v6762_v0 = vsub.s32 2, %v6678_v20  ;;  %p6300_p3 = scmp.ne.s32.totalorder %s9831_s24, %s6299_s16  ;;  %s6433_s4 = smov [#allocation7]  }
  0x76   : > { %v6110_v24 = vtrunc.f32 %v235_v17  ;;  %v6112_v25 = vtrunc.f32 %v236_v18  ;;  %10077 = vst [vmem:[#allocation25_spill] sm:$0xff] %v6752_v60  ;;  %10080 = vst [vmem:[#allocation28_spill] sm:$0xff] %v6759_v63  ;;  %s6303_s28 = sshll.u32 %s6433_s4, 4  ;;  %s6304_s28 = int_to_ptr.vmem [resolvable:$false] %s6303_s28 }
  0x77   : > { %v6114_v26 = vtrunc.f32 %v237_v19  ;;  %v6116_v28 = vtrunc.f32 %v238_v21  ;;  %10081 = vst [vmem:[#allocation29_spill] sm:$0xff] %v6762_v0  ;;  %p6301_p13 = pnand %p6300_p3, %p10277_p6  ;;  %s6305_s3 = scalar_lea.vmem %s6304_s28, 1024 }
  0x78   : > { %v6686_v30 = vcvt.f32.s32 %v6110_v24  ;;  %v6688_v31 = vcvt.f32.s32 %v6112_v25  ;;  %p6306_p10 = scmp.lt.s32.totalorder %s9831_s24, %s6304_s28  ;;  %p6307_p12 = scmp.lt.s32.totalorder %s6305_s3, %s6299_s16 }
  0x79   : > { %v6690_v32 = vcvt.f32.s32 %v6114_v26  ;;  %v6692_v33 = vcvt.f32.s32 %v6116_v28  ;;  %p6302_p4 = pneg %p6301_p13 }
  0x7a   : > { %10069 = vst [vmem:[#allocation17_spill] sm:$0xff] %v6686_v30  ;;  %10070 = vst [vmem:[#allocation18_spill] sm:$0xff] %v6688_v31  ;;  %v273_v35 = vrot.slane %v6686_v30, %v6681_v27  ;;  %v277_v37 = vrot.slane %v6686_v30, %v6684_v29  ;;  %v281_v38 = vrot.slane %v6688_v31, %v6681_v27  ;;  %v251_v41 = vcvt.s32.f32 %v6686_v30  ;;  %p6308_p1 = por %p6307_p12, %p6306_p10 }
  0x7b   : > { %10071 = vst [vmem:[#allocation19_spill] sm:$0xff] %v6690_v32  ;;  %10072 = vst [vmem:[#allocation20_spill] sm:$0xff] %v6692_v33  ;;  %v285_v39 = vrot.slane %v6688_v31, %v6684_v29  ;;  %v252_v42 = vcvt.s32.f32 %v6688_v31  ;;  %v253_v43 = vcvt.s32.f32 %v6690_v32  ;;  %v289_v44 = vrot.slane %v6690_v32, %v6681_v27 }
  0x7c   : > { %v254_v45 = vcvt.s32.f32 %v6692_v33  ;;  %v293_v46 = vrot.slane %v6690_v32, %v6684_v29  ;;  %v297_v47 = vrot.slane %v6692_v33, %v6681_v27  ;;  %v301_v48 = vrot.slane %v6692_v33, %v6684_v29  ;;  %p6309_p5 = pnand %p6308_p1, %p6302_p4 }
  0x7d   : > { %v6721_v49 = vrot.slane %v273_v35, %v6681_v27  ;;  %v6724_v50 = vrot.slane %v277_v37, %v6681_v27  ;;  %v6727_v51 = vrot.slane %v281_v38, %v6681_v27  ;;  %v6730_v52 = vrot.slane %v285_v39, %v6681_v27 }
  0x7e   : > { %v6733_v53 = vrot.slane %v289_v44, %v6681_v27  ;;  %v6736_v54 = vrot.slane %v293_v46, %v6681_v27  ;;  %v6739_v55 = vrot.slane %v297_v47, %v6681_v27  ;;  %v6742_v56 = vrot.slane %v301_v48, %v6681_v27 }
  0x7f   : > { %v6744_v57 = vsub.f32 %v235_v17, %v251_v41  ;;  %v6746_v58 = vsub.f32 %v236_v18, %v252_v42  ;;  %v6754_v61 = vsub.f32 %v237_v19, %v253_v43  ;;  %v6756_v62 = vsub.f32 %v238_v21, %v254_v45 }
  0x80   : > { %vm398_vm0 = vcmp.eq.s32.totalorder %v6678_v20, %v6721_v49  ;;  %vm399_vm1 = vcmp.eq.s32.totalorder %v6678_v20, %v6724_v50  ;;  %vm400_vm2 = vcmp.eq.s32.totalorder %v6678_v20, %v6727_v51  ;;  %vm401_vm3 = vcmp.eq.s32.totalorder %v6678_v20, %v6730_v52 }
  0x81   : > { %10074 = vst [vmem:[#allocation22_spill] sm:$0xff] %v6744_v57  ;;  %10075 = vst [vmem:[#allocation23_spill] sm:$0xff] %v6746_v58  ;;  %vm402_vm4 = vcmp.eq.s32.totalorder %v6678_v20, %v6733_v53  ;;  %vm403_vm5 = vcmp.eq.s32.totalorder %v6678_v20, %v6736_v54  ;;  %vm404_vm6 = vcmp.eq.s32.totalorder %v6678_v20, %v6739_v55  ;;  %v6785_v1 = vsub.f32 1.0, %v6744_v57 }
  0x82   : > { %10078 = vst [vmem:[#allocation26_spill] sm:$0xff] %v6754_v61  ;;  %10079 = vst [vmem:[#allocation27_spill] sm:$0xff] %v6756_v62  ;;  %vm405_vm7 = vcmp.eq.s32.totalorder %v6678_v20, %v6742_v56  ;;  %vm414_vm8 = vcmp.eq.s32.totalorder %v6695_v34, %v6721_v49  ;;  %vm415_vm9 = vcmp.eq.s32.totalorder %v6695_v34, %v6724_v50  ;;  %v6788_v2 = vsub.f32 1.0, %v6746_v58 }
  0x83   : > { %10082 = vst [vmem:[#allocation30_spill] sm:$0xff] %v6785_v1  ;;  %vm416_vm10 = vcmp.eq.s32.totalorder %v6695_v34, %v6727_v51  ;;  %vm417_vm11 = vcmp.eq.s32.totalorder %v6695_v34, %v6730_v52  ;;  %v6795_v3 = vsub.f32 1.0, %v6754_v61  ;;  %v6798_v4 = vsub.f32 1.0, %v6756_v62 }
  0x84   : > { %10083 = vst [vmem:[#allocation31_spill] sm:$0xff] %v6788_v2  ;;  %v449_v5 = vrot.slane %v6785_v1, %v6681_v27  ;;  %v453_v6 = vrot.slane %v6785_v1, %v6684_v29  ;;  %v457_v7 = vrot.slane %v6788_v2, %v6681_v27  ;;  %v461_v8 = vrot.slane %v6788_v2, %v6684_v29 }
  0x85   : > { %10084 = vst [vmem:[#allocation32_spill] sm:$0xff] %v6795_v3  ;;  %10085 = vst [vmem:[#allocation33_spill] sm:$0xff] %v6798_v4  ;;  %vm418_vm12 = vcmp.eq.s32.totalorder %v6695_v34, %v6733_v53  ;;  %vm419_vm13 = vcmp.eq.s32.totalorder %v6695_v34, %v6736_v54  ;;  %vm420_vm14 = vcmp.eq.s32.totalorder %v6695_v34, %v6739_v55  ;;  %v6833_v22 = vadd.s32 1, %v6686_v30 }
  0x86   : > { %vm421_vm15 = vcmp.eq.s32.totalorder %v6695_v34, %v6742_v56  ;;  %v465_v9 = vrot.slane %v6795_v3, %v6681_v27  ;;  %v469_v10 = vrot.slane %v6795_v3, %v6684_v29  ;;  %v473_v11 = vrot.slane %v6798_v4, %v6681_v27 }
  0x87   : > { %v477_v12 = vrot.slane %v6798_v4, %v6684_v29  ;;  %v529_v13 = vrot.slane %v449_v5, %v6681_v27  ;;  %v533_v14 = vrot.slane %v453_v6, %v6681_v27  ;;  %v537_v15 = vrot.slane %v457_v7, %v6681_v27  ;;  %10086 = vst [vmem:[#allocation34_spill] sm:$0xff] %v6833_v22 }
  0x88   : > { %v541_v16 = vrot.slane %v461_v8, %v6681_v27  ;;  %v545_v17 = vrot.slane %v465_v9, %v6681_v27  ;;  %v549_v18 = vrot.slane %v469_v10, %v6681_v27  ;;  %v553_v19 = vrot.slane %v473_v11, %v6681_v27 }
  0x89   : > { %v557_v21 = vrot.slane %v477_v12, %v6681_v27  ;;  %v6836_v23 = vadd.s32 1, %v6688_v31  ;;  %v6839_v24 = vadd.s32 1, %v6690_v32  ;;  %v6842_v25 = vadd.s32 1, %v6692_v33 }
  0x8a   : > { %v6847_v26 = vsel %vm398_vm0, %v529_v13, 0.0  ;;  %v6852_v28 = vsel %vm399_vm1, %v533_v14, 0.0  ;;  %v6857_v35 = vsel %vm400_vm2, %v537_v15, 0.0  ;;  %v6862_v36 = vsel %vm401_vm3, %v541_v16, 0.0 }
  0x8b   : > { %10087 = vst [vmem:[#allocation35_spill] sm:$0xff] %v6836_v23  ;;  %10088 = vst [vmem:[#allocation36_spill] sm:$0xff] %v6839_v24  ;;  %v6867_v37 = vsel %vm402_vm4, %v545_v17, 0.0  ;;  %v6872_v38 = vsel %vm403_vm5, %v549_v18, 0.0  ;;  %v6877_v39 = vsel %vm404_vm6, %v553_v19, 0.0  ;;  %v6882_v41 = vsel %vm405_vm7, %v557_v21, 0.0 }
  0x8c   : > { %10089 = vst [vmem:[#allocation37_spill] sm:$0xff] %v6842_v25  ;;  %v6887_v42 = vsel %vm414_vm8, %v529_v13, 0.0  ;;  %v6892_v43 = vsel %vm415_vm9, %v533_v14, 0.0  ;;  %v6897_v44 = vsel %vm416_vm10, %v537_v15, 0.0  ;;  %v6902_v45 = vsel %vm417_vm11, %v541_v16, 0.0 }
  0x8d   : > { %v633_v46 = vrot.slane %v6833_v22, %v6681_v27  ;;  %v637_v47 = vrot.slane %v6833_v22, %v6684_v29  ;;  %v641_v48 = vrot.slane %v6836_v23, %v6681_v27  ;;  %v645_v49 = vrot.slane %v6836_v23, %v6684_v29 }
  0x8e   : > { %v649_v50 = vrot.slane %v6839_v24, %v6681_v27  ;;  %v653_v51 = vrot.slane %v6839_v24, %v6684_v29  ;;  %v657_v52 = vrot.slane %v6842_v25, %v6681_v27  ;;  %v661_v5 = vrot.slane %v6842_v25, %v6684_v29 }
  0x8f   : > { %v697_v6 = vrot.slane %v633_v46, %v6681_v27  ;;  %v701_v7 = vrot.slane %v637_v47, %v6681_v27  ;;  %v705_v8 = vrot.slane %v641_v48, %v6681_v27  ;;  %v709_v9 = vrot.slane %v645_v49, %v6681_v27 }
  0x90   : > { %v713_v10 = vrot.slane %v649_v50, %v6681_v27  ;;  %v717_v11 = vrot.slane %v653_v51, %v6681_v27  ;;  %v721_v12 = vrot.slane %v657_v52, %v6681_v27  ;;  %v725_v13 = vrot.slane %v661_v5, %v6681_v27 }
  0x91   : > { %v6931_v14 = vsel %vm418_vm12, %v545_v17, 0.0  ;;  %v6936_v15 = vsel %vm419_vm13, %v549_v18, 0.0  ;;  %v6941_v16 = vsel %vm420_vm14, %v553_v19, 0.0  ;;  %v6946_v46 = vsel %vm421_vm15, %v557_v21, 0.0 }
  0x92   : > { %10090 = vst [vmem:[#allocation38_spill] sm:$0xff] %v6936_v15  ;;  %10091 = vst [vmem:[#allocation39_spill] sm:$0xff] %v6941_v16  ;;  %vm758_vm0 = vcmp.eq.s32.totalorder %v6678_v20, %v697_v6  ;;  %vm759_vm1 = vcmp.eq.s32.totalorder %v6678_v20, %v701_v7  ;;  %vm760_vm2 = vcmp.eq.s32.totalorder %v6678_v20, %v705_v8 }
  0x93   : > { %10092 = vst [vmem:[#allocation40_spill] sm:$0xff] %v6946_v46  ;;  %vm761_vm3 = vcmp.eq.s32.totalorder %v6678_v20, %v709_v9  ;;  %vm762_vm4 = vcmp.eq.s32.totalorder %v6678_v20, %v713_v10  ;;  %vm763_vm5 = vcmp.eq.s32.totalorder %v6678_v20, %v717_v11  ;;  %vm764_vm6 = vcmp.eq.s32.totalorder %v6678_v20, %v721_v12 }
  0x94   : > { %vm765_vm7 = vcmp.eq.s32.totalorder %v6678_v20, %v725_v13  ;;  %vm774_vm8 = vcmp.eq.s32.totalorder %v6695_v34, %v697_v6  ;;  %vm775_vm9 = vcmp.eq.s32.totalorder %v6695_v34, %v701_v7  ;;  %vm776_vm10 = vcmp.eq.s32.totalorder %v6695_v34, %v705_v8 }
  0x95   : > { %vm777_vm11 = vcmp.eq.s32.totalorder %v6695_v34, %v709_v9  ;;  %v801_v53 = vrot.slane %v6744_v57, %v6681_v27  ;;  %v805_v54 = vrot.slane %v6744_v57, %v6684_v29  ;;  %v809_v55 = vrot.slane %v6746_v58, %v6681_v27 }
  0x96   : > { %v813_v56 = vrot.slane %v6746_v58, %v6684_v29  ;;  %v817_v17 = vrot.slane %v6754_v61, %v6681_v27  ;;  %v821_v18 = vrot.slane %v6754_v61, %v6684_v29  ;;  %v825_v19 = vrot.slane %v6756_v62, %v6681_v27 }
  0x97   : > { %v829_v21 = vrot.slane %v6756_v62, %v6684_v29  ;;  %v881_v47 = vrot.slane %v801_v53, %v6681_v27  ;;  %v885_v48 = vrot.slane %v805_v54, %v6681_v27  ;;  %v889_v49 = vrot.slane %v809_v55, %v6681_v27 }
  0x98   : > { %v893_v50 = vrot.slane %v813_v56, %v6681_v27  ;;  %v897_v51 = vrot.slane %v817_v17, %v6681_v27  ;;  %v901_v52 = vrot.slane %v821_v18, %v6681_v27  ;;  %v905_v5 = vrot.slane %v825_v19, %v6681_v27 }
  0x99   : > { %v909_v0 = vrot.slane %v829_v21, %v6681_v27  ;;  %vm778_vm12 = vcmp.eq.s32.totalorder %v6695_v34, %v713_v10  ;;  %vm779_vm13 = vcmp.eq.s32.totalorder %v6695_v34, %v717_v11  ;;  %vm780_vm14 = vcmp.eq.s32.totalorder %v6695_v34, %v721_v12 }
  0x9a   : > { %vm781_vm15 = vcmp.eq.s32.totalorder %v6695_v34, %v725_v13  ;;  %v942_v53 = vsel %vm758_vm0, %v881_v47, 0.0  ;;  %v943_v54 = vsel %vm759_vm1, %v885_v48, 0.0  ;;  %v944_v55 = vsel %vm760_vm2, %v889_v49, 0.0 }
  0x9b   : > { %v945_v56 = vsel %vm761_vm3, %v893_v50, 0.0  ;;  %v946_v17 = vsel %vm762_vm4, %v897_v51, 0.0  ;;  %v947_v18 = vsel %vm763_vm5, %v901_v52, 0.0  ;;  %v948_v19 = vsel %vm764_vm6, %v905_v5, 0.0 }
  0x9c   : > { %v949_v21 = vsel %vm765_vm7, %v909_v0, 0.0  ;;  %v958_v29 = vsel %vm774_vm8, %v881_v47, 0.0  ;;  %v959_v27 = vsel %vm775_vm9, %v885_v48, 0.0  ;;  %v960_v63 = vsel %vm776_vm10, %v889_v49, 0.0 }
  0x9d   : > { %v961_v46 = vsel %vm777_vm11, %v893_v50, 0.0  ;;  %v7014_v16 = vsel %vm778_vm12, %v897_v51, 0.0  ;;  %v7018_v15 = vsel %vm779_vm13, %v901_v52, 0.0  ;;  %v7022_v6 = vsel %vm780_vm14, %v905_v5, 0.0 }
  0x9e   : > { %v7026_v7 = vsel %vm781_vm15, %v909_v0, 0.0  ;;  %v7029_v8 = vadd.f32 %v942_v53, %v6847_v26  ;;  %v7032_v9 = vadd.f32 %v943_v54, %v6852_v28  ;;  %v7035_v10 = vadd.f32 %v944_v55, %v6857_v35 }
  0x9f   : > { %v7038_v11 = vadd.f32 %v945_v56, %v6862_v36  ;;  %v7041_v12 = vadd.f32 %v946_v17, %v6867_v37  ;;  %v7044_v47 = vadd.f32 %v947_v18, %v6872_v38  ;;  %v7047_v0 = vadd.f32 %v948_v19, %v6877_v39 }
  0xa0   : > { %v7050_v26 = vadd.f32 %v949_v21, %v6882_v41  ;;  %v7053_v28 = vadd.f32 %v958_v29, %v6887_v42  ;;  %v7056_v35 = vadd.f32 %v959_v27, %v6892_v43  ;;  %v7059_v36 = vadd.f32 %v960_v63, %v6897_v44 }
  0xa1   : > { %10093 = vst [vmem:[#allocation41_spill] sm:$0xff] %v7041_v12  ;;  %10094 = vst [vmem:[#allocation42_spill] sm:$0xff] %v7044_v47  ;;  %v7062_v37 = vadd.f32 %v961_v46, %v6902_v45  ;;  %v1009_v38 = vrot.slane %v6686_v30, %v6706_v40  ;;  %v1013_v39 = vrot.slane %v6686_v30, %v6749_v59 }
  0xa2   : > { %10095 = vst [vmem:[#allocation43_spill] sm:$0xff] %v7047_v0  ;;  %10096 = vst [vmem:[#allocation44_spill] sm:$0xff] %v7050_v26  ;;  %v1017_v41 = vrot.slane %v6688_v31, %v6706_v40  ;;  %v1021_v29 = vrot.slane %v6688_v31, %v6749_v59  ;;  %v1025_v27 = vrot.slane %v6690_v32, %v6706_v40 }
  0xa3   : > { %v1029_v63 = vrot.slane %v6690_v32, %v6749_v59  ;;  %v1033_v42 = vrot.slane %v6692_v33, %v6706_v40  ;;  %v1037_v43 = vrot.slane %v6692_v33, %v6749_v59  ;;  %v7081_v44 = vrot.slane %v1009_v38, %v6706_v40 }
  0xa4   : > { %v7084_v45 = vrot.slane %v1013_v39, %v6706_v40  ;;  %v7087_v13 = vrot.slane %v1017_v41, %v6706_v40  ;;  %v7090_v46 = vrot.slane %v1021_v29, %v6706_v40  ;;  %v7093_v48 = vrot.slane %v1025_v27, %v6706_v40 }
  0xa5   : > { %v7096_v49 = vrot.slane %v1029_v63, %v6706_v40  ;;  %v7099_v50 = vrot.slane %v1033_v42, %v6706_v40  ;;  %v7102_v51 = vrot.slane %v1037_v43, %v6706_v40  ;;  %vm1134_vm0 = vcmp.eq.s32.totalorder %v6678_v20, %v7081_v44 }
  0xa6   : > { %vm1135_vm1 = vcmp.eq.s32.totalorder %v6678_v20, %v7084_v45  ;;  %vm1136_vm2 = vcmp.eq.s32.totalorder %v6678_v20, %v7087_v13  ;;  %vm1137_vm3 = vcmp.eq.s32.totalorder %v6678_v20, %v7090_v46  ;;  %vm1138_vm4 = vcmp.eq.s32.totalorder %v6678_v20, %v7093_v48 }
  0xa7   : > { %10097 = vst [vmem:[#allocation45_spill] sm:$0xff] %v7102_v51  ;;  %vm1139_vm5 = vcmp.eq.s32.totalorder %v6678_v20, %v7096_v49  ;;  %vm1140_vm6 = vcmp.eq.s32.totalorder %v6678_v20, %v7099_v50  ;;  %vm1141_vm7 = vcmp.eq.s32.totalorder %v6678_v20, %v7102_v51  ;;  %v1169_v52 = vrot.slane %v6785_v1, %v6706_v40 }
  0xa8   : > { %v1173_v5 = vrot.slane %v6785_v1, %v6749_v59  ;;  %v1177_v53 = vrot.slane %v6788_v2, %v6706_v40  ;;  %v1181_v54 = vrot.slane %v6788_v2, %v6749_v59  ;;  %v1185_v55 = vrot.slane %v6795_v3, %v6706_v40 }
  0xa9   : > { %v1189_v56 = vrot.slane %v6795_v3, %v6749_v59  ;;  %v1193_v17 = vrot.slane %v6798_v4, %v6706_v40  ;;  %v1197_v18 = vrot.slane %v6798_v4, %v6749_v59  ;;  %v7137_v19 = vrot.slane %v1169_v52, %v6706_v40 }
  0xaa   : > { %v7140_v21 = vrot.slane %v1173_v5, %v6706_v40  ;;  %v7143_v38 = vrot.slane %v1177_v53, %v6706_v40  ;;  %v7146_v39 = vrot.slane %v1181_v54, %v6706_v40  ;;  %v7149_v41 = vrot.slane %v1185_v55, %v6706_v40 }
  0xab   : > { %v7152_v29 = vrot.slane %v1189_v56, %v6706_v40  ;;  %v7155_v27 = vrot.slane %v1193_v17, %v6706_v40  ;;  %v7158_v63 = vrot.slane %v1197_v18, %v6706_v40  ;;  %v1310_v42 = vsel %vm1134_vm0, %v7137_v19, 0.0 }
  0xac   : > { %v1311_v43 = vsel %vm1135_vm1, %v7140_v21, 0.0  ;;  %v1312_v52 = vsel %vm1136_vm2, %v7143_v38, 0.0  ;;  %v1313_v5 = vsel %vm1137_vm3, %v7146_v39, 0.0  ;;  %v1314_v53 = vsel %vm1138_vm4, %v7149_v41, 0.0 }
  0xad   : > { %10098 = vst [vmem:[#allocation46_spill] sm:$0xff] %v7152_v29  ;;  %10099 = vst [vmem:[#allocation47_spill] sm:$0xff] %v7155_v27  ;;  %v1315_v54 = vsel %vm1139_vm5, %v7152_v29, 0.0  ;;  %v1316_v55 = vsel %vm1140_vm6, %v7155_v27, 0.0  ;;  %v1317_v56 = vsel %vm1141_vm7, %v7158_v63, 0.0  ;;  %v1345_v17 = vrot.slane %v6833_v22, %v6706_v40 }
  0xae   : > { %10100 = vst [vmem:[#allocation48_spill] sm:$0xff] %v7158_v63  ;;  %v1349_v18 = vrot.slane %v6833_v22, %v6749_v59  ;;  %v1353_v4 = vrot.slane %v6836_v23, %v6706_v40  ;;  %v1357_v33 = vrot.slane %v6836_v23, %v6749_v59  ;;  %v1361_v3 = vrot.slane %v6839_v24, %v6706_v40 }
  0xaf   : > { %v1365_v32 = vrot.slane %v6839_v24, %v6749_v59  ;;  %v1369_v2 = vrot.slane %v6842_v25, %v6706_v40  ;;  %v1373_v31 = vrot.slane %v6842_v25, %v6749_v59  ;;  %v7209_v22 = vrot.slane %v1345_v17, %v6706_v40 }
  0xb0   : > { %v7212_v1 = vrot.slane %v1349_v18, %v6706_v40  ;;  %v7215_v23 = vrot.slane %v1353_v4, %v6706_v40  ;;  %v7218_v30 = vrot.slane %v1357_v33, %v6706_v40  ;;  %v7221_v24 = vrot.slane %v1361_v3, %v6706_v40 }
  0xb1   : > { %10101 = vst [vmem:[#allocation49_spill] sm:$0xff] %v7209_v22  ;;  %v7224_v0 = vrot.slane %v1365_v32, %v6706_v40  ;;  %v7227_v25 = vrot.slane %v1369_v2, %v6706_v40  ;;  %v7230_v17 = vrot.slane %v1373_v31, %v6706_v40  ;;  %vm1470_vm8 = vcmp.eq.s32.totalorder %v6678_v20, %v7209_v22 }
  0xb2   : > { %10102 = vst [vmem:[#allocation50_spill] sm:$0xff] %v7212_v1  ;;  %10103 = vst [vmem:[#allocation51_spill] sm:$0xff] %v7215_v23  ;;  %vm1471_vm9 = vcmp.eq.s32.totalorder %v6678_v20, %v7212_v1  ;;  %vm1472_vm10 = vcmp.eq.s32.totalorder %v6678_v20, %v7215_v23  ;;  %vm1473_vm11 = vcmp.eq.s32.totalorder %v6678_v20, %v7218_v30 }
  0xb3   : > { %10104 = vst [vmem:[#allocation52_spill] sm:$0xff] %v7218_v30  ;;  %10105 = vst [vmem:[#allocation53_spill] sm:$0xff] %v7221_v24  ;;  %vm1474_vm12 = vcmp.eq.s32.totalorder %v6678_v20, %v7221_v24  ;;  %vm1475_vm13 = vcmp.eq.s32.totalorder %v6678_v20, %v7224_v0  ;;  %vm1476_vm14 = vcmp.eq.s32.totalorder %v6678_v20, %v7227_v25 }
  0xb4   : > { %10106 = vst [vmem:[#allocation54_spill] sm:$0xff] %v7224_v0  ;;  %10107 = vst [vmem:[#allocation55_spill] sm:$0xff] %v7227_v25  ;;  %vm1477_vm15 = vcmp.eq.s32.totalorder %v6678_v20, %v7230_v17  ;;  %v1505_v31 = vrot.slane %v6744_v57, %v6706_v40  ;;  %v1509_v32 = vrot.slane %v6744_v57, %v6749_v59 }
  0xb5   : > { %v1513_v33 = vrot.slane %v6746_v58, %v6706_v40  ;;  %v1517_v2 = vrot.slane %v6746_v58, %v6749_v59  ;;  %v1521_v3 = vrot.slane %v6754_v61, %v6706_v40  ;;  %v1525_v4 = vrot.slane %v6754_v61, %v6749_v59 }
  0xb6   : > { %v1529_v18 = vrot.slane %v6756_v62, %v6706_v40  ;;  %v1533_v12 = vrot.slane %v6756_v62, %v6749_v59  ;;  %v7265_v57 = vrot.slane %v1505_v31, %v6706_v40  ;;  %v7268_v26 = vrot.slane %v1509_v32, %v6706_v40 }
  0xb7   : > { %v7271_v58 = vrot.slane %v1513_v33, %v6706_v40  ;;  %v7274_v47 = vrot.slane %v1517_v2, %v6706_v40  ;;  %v7277_v61 = vrot.slane %v1521_v3, %v6706_v40  ;;  %v7280_v63 = vrot.slane %v1525_v4, %v6706_v40 }
  0xb8   : > { %10108 = vst [vmem:[#allocation56_spill] sm:$0xff] %v7265_v57  ;;  %10109 = vst [vmem:[#allocation57_spill] sm:$0xff] %v7268_v26  ;;  %v7283_v62 = vrot.slane %v1529_v18, %v6706_v40  ;;  %v7286_v31 = vrot.slane %v1533_v12, %v6706_v40  ;;  %v1646_v32 = vsel %vm1470_vm8, %v7265_v57, 0.0  ;;  %v1647_v33 = vsel %vm1471_vm9, %v7268_v26, 0.0 }
  0xb9   : > { %10110 = vst [vmem:[#allocation58_spill] sm:$0xff] %v7271_v58  ;;  %10111 = vst [vmem:[#allocation59_spill] sm:$0xff] %v7274_v47  ;;  %v1648_v2 = vsel %vm1472_vm10, %v7271_v58, 0.0  ;;  %v1649_v12 = vsel %vm1473_vm11, %v7274_v47, 0.0  ;;  %v1650_v3 = vsel %vm1474_vm12, %v7277_v61, 0.0  ;;  %v1651_v4 = vsel %vm1475_vm13, %v7280_v63, 0.0 }
  0xba   : > { %10112 = vst [vmem:[#allocation60_spill] sm:$0xff] %v7277_v61  ;;  %10113 = vst [vmem:[#allocation61_spill] sm:$0xff] %v7280_v63  ;;  %v1652_v18 = vsel %vm1476_vm14, %v7283_v62, 0.0  ;;  %v1653_v59 = vsel %vm1477_vm15, %v7286_v31, 0.0  ;;  %v1678_v47 = vadd.f32 %v1646_v32, %v1310_v42  ;;  %v1679_v58 = vadd.f32 %v1647_v33, %v1311_v43  ;;  %v10118_v32 = vld [vmem:[#allocation40_spill] sm:$0xff] }
  0xbb   : > { %10114 = vst [vmem:[#allocation62_spill] sm:$0xff] %v7283_v62  ;;  %10115 = vst [vmem:[#allocation63_spill] sm:$0xff] %v7286_v31  ;;  %v1680_v26 = vadd.f32 %v1648_v2, %v1312_v52  ;;  %v1681_v57 = vadd.f32 %v1649_v12, %v1313_v5  ;;  %v1682_v61 = vadd.f32 %v1650_v3, %v1314_v53 }
  0xbc   : > { %v1683_v24 = vadd.f32 %v1651_v4, %v1315_v54  ;;  %v1684_v30 = vadd.f32 %v1652_v18, %v1316_v55  ;;  %v1685_v23 = vadd.f32 %v1653_v59, %v1317_v56  ;;  %v2446_v0 = vcombine.low %v1678_v47, %v1679_v58  ;;  %v10116_v54 = vld [vmem:[#allocation38_spill] sm:$0xff]  ;;  %v10117_v56 = vld [vmem:[#allocation39_spill] sm:$0xff]  ;;  %v10119_v18 = vld [vmem:[#allocation28_spill] sm:$0xff] }
  0xbd   : > { %v2448_v63 = vcombine.low %v1680_v26, %v1681_v57  ;;  %v2447_v1 = vcombine.high %v1678_v47, %v1679_v58  ;;  %v2449_v22 = vcombine.high %v1680_v26, %v1681_v57  ;;  %v7338_v53 = vadd.f32 %v7014_v16, %v6931_v14 }
  0xbe   : > { %v2450_v27 = vcombine.low %v1682_v61, %v1683_v24  ;;  %v2452_v25 = vcombine.low %v1684_v30, %v1685_v23  ;;  %v2451_v62 = vcombine.high %v1682_v61, %v1683_v24  ;;  %v2453_v29 = vcombine.high %v1684_v30, %v1685_v23 }
  0xbf   : > { %v2460_v51 = vrot.slane %v2446_v0, %v6752_v60  ;;  %v2474_v31 = vrot.slane %v2448_v63, %v6752_v60  ;;  %v2467_v42 = vrot.slane %v2447_v1, %v6752_v60  ;;  %v2481_v43 = vrot.slane %v2449_v22, %v6752_v60 }
  0xc0   : > { %v2488_v52 = vrot.slane %v2450_v27, %v6752_v60  ;;  %v2502_v59 = vrot.slane %v2452_v25, %v6752_v60  ;;  %v2495_v5 = vrot.slane %v2451_v62, %v6752_v60  ;;  %v2509_v57 = vrot.slane %v2453_v29, %v6752_v60 }
  0xc1   : > { %v2510_v58 = vcombine.low %v2460_v51, %v2474_v31  ;;  %v2511_v47 = vcombine.high %v2460_v51, %v2474_v31  ;;  %v2512_v61 = vcombine.low %v2467_v42, %v2481_v43  ;;  %v2513_v30 = vcombine.high %v2467_v42, %v2481_v43  ;;  %v10120_v43 = vld [vmem:[#allocation15_spill] sm:$0xff] }
  0xc2   : > { %v2514_v23 = vcombine.low %v2488_v52, %v2502_v59  ;;  %v2515_v24 = vcombine.high %v2488_v52, %v2502_v59  ;;  %v2516_v0 = vcombine.low %v2495_v5, %v2509_v57  ;;  %v2517_v26 = vcombine.high %v2495_v5, %v2509_v57  ;;  %v10121_v59 = vld [vmem:[#allocation29_spill] sm:$0xff] }
  0xc3   : > { %v2524_v1 = vrot.slane %v2510_v58, %v6752_v60  ;;  %v2538_v22 = vrot.slane %v2511_v47, %v6752_v60  ;;  %v2531_v27 = vrot.slane %v2512_v61, %v6752_v60  ;;  %v2545_v25 = vrot.slane %v2513_v30, %v6752_v60 }
  0xc4   : > { %v2552_v62 = vrot.slane %v2514_v23, %v6752_v60  ;;  %v2566_v29 = vrot.slane %v2515_v24, %v6752_v60  ;;  %v2559_v51 = vrot.slane %v2516_v0, %v6752_v60  ;;  %v2573_v63 = vrot.slane %v2517_v26, %v6752_v60 }
  0xc5   : > { %v7342_v55 = vadd.f32 %v7018_v15, %v10116_v54  ;;  %v7346_v31 = vadd.f32 %v7022_v6, %v10117_v56  ;;  %v7350_v33 = vadd.f32 %v7026_v7, %v10118_v32  ;;  %vm1150_vm0 = vcmp.eq.s32.totalorder %v6695_v34, %v7081_v44 }
  0xc6   : > { %v7352_v2 = vcombine.low %v2524_v1, %v2552_v62  ;;  %v7354_v12 = vcombine.low %v2538_v22, %v2566_v29  ;;  %v7356_v3 = vcombine.high %v2524_v1, %v2552_v62  ;;  %v7358_v14 = vcombine.high %v2538_v22, %v2566_v29 }
  0xc7   : > { %v7360_v16 = vcombine.low %v2531_v27, %v2559_v51  ;;  %v7362_v15 = vcombine.low %v2545_v25, %v2573_v63  ;;  %v7364_v4 = vcombine.high %v2531_v27, %v2559_v51  ;;  %v7366_v6 = vcombine.high %v2545_v25, %v2573_v63 }
  0xc8   : > { %v2997_v7 = vrot.slane %v7352_v2, %v6706_v40  ;;  %v3005_v42 = vrot.slane %v7352_v2, %v10119_v18  ;;  %v2993_v52 = vrot.slane %v7352_v2, %v10120_v43  ;;  %v3001_v5 = vrot.slane %v7352_v2, %v10121_v59 }
  0xc9   : > { %v3061_v57 = vrot.slane %v7354_v12, %v6706_v40  ;;  %v3069_v58 = vrot.slane %v7354_v12, %v10119_v18  ;;  %v3057_v47 = vrot.slane %v7354_v12, %v10120_v43  ;;  %v3065_v61 = vrot.slane %v7354_v12, %v10121_v59 }
  0xca   : > { %v4271_v30 = vmul.f32 %v2997_v7, %v7032_v9  ;;  %v4287_v23 = vmul.f32 %v2997_v7, %v7056_v35  ;;  %v4273_v24 = vmul.f32 %v3005_v42, %v7038_v11  ;;  %v4289_v0 = vmul.f32 %v3005_v42, %v7062_v37 }
  0xcb   : > { %v4270_v26 = vmul.f32 %v2993_v52, %v7029_v8  ;;  %v4286_v1 = vmul.f32 %v2993_v52, %v7053_v28  ;;  %v4272_v22 = vmul.f32 %v3001_v5, %v7035_v10  ;;  %v4288_v27 = vmul.f32 %v3001_v5, %v7059_v36 }
  0xcc   : > { %vm1151_vm1 = vcmp.eq.s32.totalorder %v6695_v34, %v7084_v45  ;;  %v4795_v25 = vpack.c.bf16 %v4287_v23, %v4271_v30  ;;  %v4797_v62 = vpack.c.bf16 %v4289_v0, %v4273_v24  ;;  %v4303_v29 = vmul.f32 %v3061_v57, %v7032_v9 }
  0xcd   : > { %v4319_v51 = vmul.f32 %v3061_v57, %v7056_v35  ;;  %v4794_v63 = vpack.c.bf16 %v4286_v1, %v4270_v26  ;;  %v4796_v54 = vpack.c.bf16 %v4288_v27, %v4272_v22  ;;  %v4305_v56 = vmul.f32 %v3069_v58, %v7038_v11 }
  0xce   : > { %v4321_v32 = vmul.f32 %v3069_v58, %v7062_v37  ;;  %5050 = vmatprep.subr.bf16.mxu0 %v4795_v25  ;;  %5103 = vmatprep.subr.bf16.mxu1 %v4797_v62  ;;  %v4302_v42 = vmul.f32 %v3057_v47, %v7029_v8  ;;  %v4318_v52 = vmul.f32 %v3057_v47, %v7053_v28 }
  0xcf   : > { %v4811_v7 = vpack.c.bf16 %v4319_v51, %v4303_v29  ;;  %vm1152_vm2 = vcmp.eq.s32.totalorder %v6695_v34, %v7087_v13  ;;  %5051 = vmatpush1.bf16.msra.mxu0 %v4794_v63  ;;  %5104 = vmatpush1.bf16.msra.mxu1 %v4796_v54  ;;  %v4304_v57 = vmul.f32 %v3065_v61, %v7035_v10  ;;  %v7431_v54 = vsel %vm1150_vm0, %v7137_v19, 0.0 }
  0xd0   : > { %v4813_v5 = vpack.c.bf16 %v4321_v32, %v4305_v56  ;;  %v4320_v30 = vmul.f32 %v3065_v61, %v7059_v36  ;;  %v4810_v23 = vpack.c.bf16 %v4318_v52, %v4302_v42  ;;  %v3125_v58 = vrot.slane %v7356_v3, %v6706_v40 }
  0xd1   : > { %5052 = vmatprep.subr.bf16.mxu0 %v4811_v7  ;;  %v3133_v24 = vrot.slane %v7356_v3, %v10119_v18  ;;  %v3121_v47 = vrot.slane %v7356_v3, %v10120_v43  ;;  %v3129_v26 = vrot.slane %v7356_v3, %v10121_v59  ;;  %v3189_v1 = vrot.slane %v7358_v14, %v6706_v40 }
  0xd2   : > { %5105 = vmatprep.subr.bf16.mxu1 %v4813_v5  ;;  %v4812_v0 = vpack.c.bf16 %v4320_v30, %v4304_v57  ;;  %v3197_v61 = vrot.slane %v7358_v14, %v10119_v18  ;;  %vm1153_vm3 = vcmp.eq.s32.totalorder %v6695_v34, %v7090_v46  ;;  %v4335_v22 = vmul.f32 %v3125_v58, %v7032_v9 }
  0xd3   : > { %v4351_v27 = vmul.f32 %v3125_v58, %v7056_v35  ;;  %v4337_v25 = vmul.f32 %v3133_v24, %v7038_v11  ;;  %v4353_v62 = vmul.f32 %v3133_v24, %v7062_v37  ;;  %5053 = vmatpush1.bf16.msra.mxu0 %v4810_v23  ;;  %v4334_v29 = vmul.f32 %v3121_v47, %v7029_v8 }
  0xd4   : > { %5106 = vmatpush1.bf16.msra.mxu1 %v4812_v0  ;;  %v4350_v51 = vmul.f32 %v3121_v47, %v7053_v28  ;;  %v4336_v63 = vmul.f32 %v3129_v26, %v7035_v10  ;;  %v4352_v7 = vmul.f32 %v3129_v26, %v7059_v36  ;;  %v4367_v42 = vmul.f32 %v3189_v1, %v7032_v9 }
  0xd5   : > { %v4827_v56 = vpack.c.bf16 %v4351_v27, %v4335_v22  ;;  %v4829_v32 = vpack.c.bf16 %v4353_v62, %v4337_v25  ;;  %v4383_v5 = vmul.f32 %v3189_v1, %v7056_v35  ;;  %v4369_v57 = vmul.f32 %v3197_v61, %v7038_v11 }
  0xd6   : > { %v4826_v52 = vpack.c.bf16 %v4350_v51, %v4334_v29  ;;  %v4385_v30 = vmul.f32 %v3197_v61, %v7062_v37  ;;  %v4828_v23 = vpack.c.bf16 %v4352_v7, %v4336_v63  ;;  %v3185_v44 = vrot.slane %v7358_v14, %v10120_v43 }
  0xd7   : > { %5054 = vmatprep.subr.bf16.mxu0 %v4827_v56  ;;  %5107 = vmatprep.subr.bf16.mxu1 %v4829_v32  ;;  %v3193_v19 = vrot.slane %v7358_v14, %v10121_v59  ;;  %v7446_v58 = vsel %vm1151_vm1, %v7140_v21, 0.0  ;;  %v4843_v24 = vpack.c.bf16 %v4383_v5, %v4367_v42  ;;  %v3253_v0 = vrot.slane %v7360_v16, %v6706_v40 }
  0xd8   : > { %5055 = vmatpush1.bf16.msra.mxu0 %v4826_v52  ;;  %v4845_v47 = vpack.c.bf16 %v4385_v30, %v4369_v57  ;;  %v3261_v26 = vrot.slane %v7360_v16, %v10119_v18  ;;  %5108 = vmatpush1.bf16.msra.mxu1 %v4828_v23  ;;  %v4366_v1 = vmul.f32 %v3185_v44, %v7029_v8  ;;  %v7463_v62 = vsel %vm1152_vm2, %v7143_v38, 0.0 }
  0xd9   : > { %v4382_v61 = vmul.f32 %v3185_v44, %v7053_v28  ;;  %v4368_v22 = vmul.f32 %v3193_v19, %v7035_v10  ;;  %v4384_v45 = vmul.f32 %v3193_v19, %v7059_v36  ;;  %5056 = vmatprep.subr.bf16.mxu0 %v4843_v24  ;;  %v4399_v21 = vmul.f32 %v3253_v0, %v7032_v9 }
  0xda   : > { %5109 = vmatprep.subr.bf16.mxu1 %v4845_v47  ;;  %v4415_v27 = vmul.f32 %v3253_v0, %v7056_v35  ;;  %v4401_v25 = vmul.f32 %v3261_v26, %v7038_v11  ;;  %v4417_v63 = vmul.f32 %v3261_v26, %v7062_v37  ;;  %v3249_v56 = vrot.slane %v7360_v16, %v10120_v43 }
  0xdb   : > { %v4842_v29 = vpack.c.bf16 %v4382_v61, %v4366_v1  ;;  %v4844_v51 = vpack.c.bf16 %v4384_v45, %v4368_v22  ;;  %v3257_v7 = vrot.slane %v7360_v16, %v10121_v59  ;;  %v3317_v42 = vrot.slane %v7362_v15, %v6706_v40 }
  0xdc   : > { %v4859_v32 = vpack.c.bf16 %v4415_v27, %v4399_v21  ;;  %v3325_v52 = vrot.slane %v7362_v15, %v10119_v18  ;;  %v4861_v13 = vpack.c.bf16 %v4417_v63, %v4401_v25  ;;  %v4398_v38 = vmul.f32 %v3249_v56, %v7029_v8 }
  0xdd   : > { %5057 = vmatpush1.bf16.msra.mxu0 %v4842_v29  ;;  %5110 = vmatpush1.bf16.msra.mxu1 %v4844_v51  ;;  %v4414_v5 = vmul.f32 %v3249_v56, %v7053_v28  ;;  %v7480_v57 = vsel %vm1153_vm3, %v7146_v39, 0.0  ;;  %v4400_v30 = vmul.f32 %v3257_v7, %v7035_v10  ;;  %v4416_v23 = vmul.f32 %v3257_v7, %v7059_v36 }
  0xde   : > { %5058 = vmatprep.subr.bf16.mxu0 %v4859_v32  ;;  %v4431_v44 = vmul.f32 %v3317_v42, %v7032_v9  ;;  %v4447_v19 = vmul.f32 %v3317_v42, %v7056_v35  ;;  %5111 = vmatprep.subr.bf16.mxu1 %v4861_v13  ;;  %v4433_v47 = vmul.f32 %v3325_v52, %v7038_v11  ;;  %v7502_v63 = vsub.s32 7, %v6678_v20 }
  0xdf   : > { %v4858_v24 = vpack.c.bf16 %v4414_v5, %v4398_v38  ;;  %v4449_v0 = vmul.f32 %v3325_v52, %v7062_v37  ;;  %v3313_v46 = vrot.slane %v7362_v15, %v10120_v43  ;;  %v4860_v39 = vpack.c.bf16 %v4416_v23, %v4400_v30 }
  0xe0   : > { %v4875_v26 = vpack.c.bf16 %v4447_v19, %v4431_v44  ;;  %v3321_v1 = vrot.slane %v7362_v15, %v10121_v59  ;;  %v3381_v61 = vrot.slane %v7364_v4, %v6706_v40  ;;  %v3389_v27 = vrot.slane %v7364_v4, %v10119_v18  ;;  %10122 = vst [vmem:[#allocation38_spill] sm:$0xff] %v7502_v63 }
  0xe1   : > { %5059 = vmatpush1.bf16.msra.mxu0 %v4858_v24  ;;  %v4877_v22 = vpack.c.bf16 %v4449_v0, %v4433_v47  ;;  %v4430_v45 = vmul.f32 %v3313_v46, %v7029_v8  ;;  %v4446_v21 = vmul.f32 %v3313_v46, %v7053_v28  ;;  %5112 = vmatpush1.bf16.msra.mxu1 %v4860_v39 }
  0xe2   : > { %5060 = vmatprep.subr.bf16.mxu0 %v4875_v26  ;;  %v4432_v25 = vmul.f32 %v3321_v1, %v7035_v10  ;;  %v4448_v29 = vmul.f32 %v3321_v1, %v7059_v36  ;;  %v4463_v51 = vmul.f32 %v3381_v61, %v7032_v9  ;;  %v4479_v32 = vmul.f32 %v3381_v61, %v7056_v35 }
  0xe3   : > { %5113 = vmatprep.subr.bf16.mxu1 %v4877_v22  ;;  %v4874_v56 = vpack.c.bf16 %v4446_v21, %v4430_v45  ;;  %v4465_v7 = vmul.f32 %v3389_v27, %v7038_v11  ;;  %v4481_v42 = vmul.f32 %v3389_v27, %v7062_v37  ;;  %v3377_v13 = vrot.slane %v7364_v4, %v10120_v43 }
  0xe4   : > { %v4876_v52 = vpack.c.bf16 %v4448_v29, %v4432_v25  ;;  %v3385_v38 = vrot.slane %v7364_v4, %v10121_v59  ;;  %v3445_v5 = vrot.slane %v7366_v6, %v6706_v40  ;;  %v4891_v30 = vpack.c.bf16 %v4479_v32, %v4463_v51 }
  0xe5   : > { %5061 = vmatpush1.bf16.msra.mxu0 %v4874_v56  ;;  %v4893_v23 = vpack.c.bf16 %v4481_v42, %v4465_v7  ;;  %v3453_v44 = vrot.slane %v7366_v6, %v10119_v18  ;;  %v3441_v19 = vrot.slane %v7366_v6, %v10120_v43  ;;  %v4462_v24 = vmul.f32 %v3377_v13, %v7029_v8 }
  0xe6   : > { %5114 = vmatpush1.bf16.msra.mxu1 %v4876_v52  ;;  %v4478_v47 = vmul.f32 %v3377_v13, %v7053_v28  ;;  %v4464_v0 = vmul.f32 %v3385_v38, %v7035_v10  ;;  %v4480_v46 = vmul.f32 %v3385_v38, %v7059_v36  ;;  %5062 = vmatprep.subr.bf16.mxu0 %v4891_v30  ;;  %v7525_v61 = vsub.s32 6, %v6678_v20  ;;  %v10124_v13 = vld [vmem:[#allocation45_spill] sm:$0xff] }
  0xe7   : > { %5115 = vmatprep.subr.bf16.mxu1 %v4893_v23  ;;  %v4495_v39 = vmul.f32 %v3445_v5, %v7032_v9  ;;  %v4511_v26 = vmul.f32 %v3445_v5, %v7056_v35  ;;  %v4497_v1 = vmul.f32 %v3453_v44, %v7038_v11  ;;  %v4513_v21 = vmul.f32 %v3453_v44, %v7062_v37  ;;  %v10126_v5 = vld [vmem:[#allocation47_spill] sm:$0xff]  ;;  %v10128_v44 = vld [vmem:[#allocation49_spill] sm:$0xff] }
  0xe8   : > { %10123 = vst [vmem:[#allocation39_spill] sm:$0xff] %v7525_v61  ;;  %v4890_v22 = vpack.c.bf16 %v4478_v47, %v4462_v24  ;;  %v4892_v45 = vpack.c.bf16 %v4480_v46, %v4464_v0  ;;  %v4494_v27 = vmul.f32 %v3441_v19, %v7029_v8  ;;  %v4510_v29 = vmul.f32 %v3441_v19, %v7053_v28  ;;  %v10130_v19 = vld [vmem:[#allocation51_spill] sm:$0xff]  ;;  %v10131_v24 = vld [vmem:[#allocation52_spill] sm:$0xff]  ;;  %v10132_v47 = vld [vmem:[#allocation53_spill] sm:$0xff] }
  0xe9   : > { %v4907_v25 = vpack.c.bf16 %v4511_v26, %v4495_v39  ;;  %v3449_v51 = vrot.slane %v7366_v6, %v10121_v59  ;;  %vm1154_vm4 = vcmp.eq.s32.totalorder %v6695_v34, %v7093_v48  ;;  %v4909_v56 = vpack.c.bf16 %v4513_v21, %v4497_v1  ;;  %v10125_v48 = vld [vmem:[#allocation46_spill] sm:$0xff]  ;;  %v10134_v46 = vld [vmem:[#allocation55_spill] sm:$0xff]  ;;  %v10135_v39 = vld [vmem:[#allocation56_spill] sm:$0xff] }
  0xea   : > { %5063 = vmatpush1.bf16.msra.mxu0 %v4890_v22  ;;  %5116 = vmatpush1.bf16.msra.mxu1 %v4892_v45  ;;  %vm1155_vm5 = vcmp.eq.s32.totalorder %v6695_v34, %v7096_v49  ;;  %vm1156_vm6 = vcmp.eq.s32.totalorder %v6695_v34, %v7099_v50  ;;  %v1330_v32 = vsel %vm1154_vm4, %v7149_v41, 0.0  ;;  %v4906_v7 = vpack.c.bf16 %v4510_v29, %v4494_v27  ;;  %v10127_v49 = vld [vmem:[#allocation48_spill] sm:$0xff]  ;;  %v10129_v41 = vld [vmem:[#allocation50_spill] sm:$0xff]  ;;  %v10136_v1 = vld [vmem:[#allocation57_spill] sm:$0xff] }
  0xeb   : > { %5064 = vmatprep.subr.bf16.mxu0 %v4907_v25  ;;  %v4496_v42 = vmul.f32 %v3449_v51, %v7035_v10  ;;  %v4512_v52 = vmul.f32 %v3449_v51, %v7059_v36  ;;  %vm1157_vm7 = vcmp.eq.s32.totalorder %v6695_v34, %v10124_v13  ;;  %5117 = vmatprep.subr.bf16.mxu1 %v4909_v56  ;;  %v1331_v38 = vsel %vm1155_vm5, %v10125_v48, 0.0  ;;  %v10133_v0 = vld [vmem:[#allocation54_spill] sm:$0xff]  ;;  %v10138_v27 = vld [vmem:[#allocation59_spill] sm:$0xff]  ;;  %v10139_v29 = vld [vmem:[#allocation60_spill] sm:$0xff] }
  0xec   : > { %v1332_v30 = vsel %vm1156_vm6, %v10126_v5, 0.0  ;;  %v1333_v23 = vsel %vm1157_vm7, %v10127_v49, 0.0  ;;  %vm1486_vm8 = vcmp.eq.s32.totalorder %v6695_v34, %v10128_v44  ;;  %vm1487_vm9 = vcmp.eq.s32.totalorder %v6695_v34, %v10129_v41  ;;  %v10137_v45 = vld [vmem:[#allocation58_spill] sm:$0xff]  ;;  %v10140_v56 = vld [vmem:[#allocation61_spill] sm:$0xff]  ;;  %v10142_v13 = vld [vmem:[#allocation63_spill] sm:$0xff] }
  0xed   : > { %v4908_v50 = vpack.c.bf16 %v4512_v52, %v4496_v42  ;;  %vm1488_vm10 = vcmp.eq.s32.totalorder %v6695_v34, %v10130_v19  ;;  %vm1489_vm11 = vcmp.eq.s32.totalorder %v6695_v34, %v10131_v24  ;;  %vm1490_vm12 = vcmp.eq.s32.totalorder %v6695_v34, %v10132_v47  ;;  %v10141_v42 = vld [vmem:[#allocation62_spill] sm:$0xff] }
  0xee   : > { %5065 = vmatpush1.bf16.msra.mxu0 %v4906_v7  ;;  %vm1491_vm13 = vcmp.eq.s32.totalorder %v6695_v34, %v10133_v0  ;;  %vm1492_vm14 = vcmp.eq.s32.totalorder %v6695_v34, %v10134_v46  ;;  %vm1493_vm15 = vcmp.eq.s32.totalorder %v6695_v34, %v7230_v17  ;;  %v1662_v26 = vsel %vm1486_vm8, %v10135_v39, 0.0 }
  0xef   : > { %5118 = vmatpush1.bf16.msra.mxu1 %v4908_v50  ;;  %v1663_v22 = vsel %vm1487_vm9, %v10136_v1, 0.0  ;;  %v1664_v21 = vsel %vm1488_vm10, %v10137_v45, 0.0  ;;  %v1665_v25 = vsel %vm1489_vm11, %v10138_v27, 0.0  ;;  %v1666_v51 = vsel %vm1490_vm12, %v10139_v29, 0.0 }
  0xf0   : > { %v1667_v7 = vsel %vm1491_vm13, %v10140_v56, 0.0  ;;  %v1668_v52 = vsel %vm1492_vm14, %v10141_v42, 0.0  ;;  %v1669_v48 = vsel %vm1493_vm15, %v10142_v13, 0.0  ;;  %v1694_v5 = vadd.f32 %v1662_v26, %v7431_v54  ;;  %v4785_v13 = vld [vmem:[#allocation2 + $0x18] sm:$0xff] }
  0xf1   : > { %v1695_v17 = vadd.f32 %v1663_v22, %v7446_v58  ;;  %v1696_v49 = vadd.f32 %v1664_v21, %v7463_v62  ;;  %v1697_v44 = vadd.f32 %v1665_v25, %v7480_v57  ;;  %v1698_v50 = vadd.f32 %v1666_v51, %v1330_v32  ;;  %v4783_v51 = vld [vmem:[#allocation2 + $0x8] sm:$0xff] }
  0xf2   : > { %v1699_v41 = vadd.f32 %v1667_v7, %v1331_v38  ;;  %v1700_v19 = vadd.f32 %v1668_v52, %v1332_v30  ;;  %v1701_v24 = vadd.f32 %v1669_v48, %v1333_v23  ;;  %v4782_v48 = vld [vmem:[#allocation2] sm:$0xff] }
  0xf3   : > { %v2718_v47 = vcombine.low %v1694_v5, %v1695_v17  ;;  %v2720_v0 = vcombine.low %v1696_v49, %v1697_v44  ;;  %v2719_v46 = vcombine.high %v1694_v5, %v1695_v17  ;;  %v2721_v39 = vcombine.high %v1696_v49, %v1697_v44  ;;  %v4784_v5 = vld [vmem:[#allocation2 + $0x10] sm:$0xff] }
  0xf4   : > { %v2722_v1 = vcombine.low %v1698_v50, %v1699_v41  ;;  %v2724_v45 = vcombine.low %v1700_v19, %v1701_v24  ;;  %v2723_v27 = vcombine.high %v1698_v50, %v1699_v41  ;;  %v2725_v29 = vcombine.high %v1700_v19, %v1701_v24 }
  0xf5   : > { %v2732_v54 = vrot.slane %v2718_v47, %v6752_v60  ;;  %v2746_v58 = vrot.slane %v2720_v0, %v6752_v60  ;;  %v2739_v62 = vrot.slane %v2719_v46, %v6752_v60  ;;  %v2753_v57 = vrot.slane %v2721_v39, %v6752_v60  ;;  %v10145_v39 = vld [vmem:[#allocation24_spill] sm:$0xff] }
  0xf6   : > { %v2760_v32 = vrot.slane %v2722_v1, %v6752_v60  ;;  %v2774_v38 = vrot.slane %v2724_v45, %v6752_v60  ;;  %v2767_v30 = vrot.slane %v2723_v27, %v6752_v60  ;;  %v2781_v23 = vrot.slane %v2725_v29, %v6752_v60 }
  0xf7   : > { %v2782_v26 = vcombine.low %v2732_v54, %v2746_v58  ;;  %v2783_v22 = vcombine.high %v2732_v54, %v2746_v58  ;;  %v2784_v21 = vcombine.low %v2739_v62, %v2753_v57  ;;  %v2785_v25 = vcombine.high %v2739_v62, %v2753_v57 }
  0xf8   : > { %v2786_v56 = vcombine.low %v2760_v32, %v2774_v38  ;;  %v2787_v7 = vcombine.high %v2760_v32, %v2774_v38  ;;  %v2788_v42 = vcombine.low %v2767_v30, %v2781_v23  ;;  %v2789_v52 = vcombine.high %v2767_v30, %v2781_v23 }
  0xf9   : > { %v2796_v17 = vrot.slane %v2782_v26, %v6752_v60  ;;  %v2810_v49 = vrot.slane %v2783_v22, %v6752_v60  ;;  %v2803_v44 = vrot.slane %v2784_v21, %v6752_v60  ;;  %v2817_v50 = vrot.slane %v2785_v25, %v6752_v60 }
  0xfa   : > { %v2824_v41 = vrot.slane %v2786_v56, %v6752_v60  ;;  %v2838_v19 = vrot.slane %v2787_v7, %v6752_v60  ;;  %v2831_v24 = vrot.slane %v2788_v42, %v6752_v60  ;;  %v2845_v47 = vrot.slane %v2789_v52, %v6752_v60 }
  0xfb   : > { %v7590_v0 = vpack.c.bf16 %v4785_v13, %v4783_v51  ;;  %v7592_v46 = vpack.c.bf16 %v4784_v5, %v4782_v48  ;;  %v7596_v1 = vrot.slane %v7352_v2, %v10145_v39  ;;  %v7600_v45 = vrot.slane %v7352_v2, %v7502_v63 }
  0xfc   : > { %v7602_v27 = vcombine.low %v2796_v17, %v2824_v41  ;;  %v7604_v29 = vcombine.low %v2810_v49, %v2838_v19  ;;  %v7606_v54 = vcombine.high %v2796_v17, %v2824_v41  ;;  %v7608_v58 = vcombine.high %v2810_v49, %v2838_v19 }
  0xfd   : > { %10143 = vst [vmem:[#allocation40_spill] sm:$0xff] %v7590_v0  ;;  %10144 = vst [vmem:[#allocation45_spill] sm:$0xff] %v7592_v46  ;;  %v7610_v62 = vcombine.low %v2803_v44, %v2831_v24  ;;  %v7612_v57 = vcombine.low %v2817_v50, %v2845_v47  ;;  %v7614_v32 = vcombine.high %v2803_v44, %v2831_v24  ;;  %5082 = vmatprep.mubr.bf16.mxu0 %v7590_v0  ;;  %v207_v44 = vld [vmem:[%s6668_s26 + $0x20] sm:$0x77] }
  0xfe   : > { %v7616_v38 = vcombine.high %v2817_v50, %v2845_v47  ;;  %v3509_v30 = vrot.slane %v7602_v27, %v6706_v40  ;;  %v3517_v23 = vrot.slane %v7602_v27, %v10119_v18  ;;  %v3505_v26 = vrot.slane %v7602_v27, %v10120_v43  ;;  %5135 = vmatprep.mubr.bf16.mxu1 %v7590_v0  ;;  %v208_v47 = vld [vmem:[%s6668_s26 + $0x28] sm:$0x77] }
  0xff   : > { %v3513_v22 = vrot.slane %v7602_v27, %v10121_v59  ;;  %v3573_v21 = vrot.slane %v7604_v29, %v6706_v40  ;;  %v3581_v25 = vrot.slane %v7604_v29, %v10119_v18  ;;  %v3569_v51 = vrot.slane %v7604_v29, %v10120_v43 }
 0x100   : > { %v3577_v56 = vrot.slane %v7604_v29, %v10121_v59  ;;  %v4527_v7 = vmul.f32 %v3509_v30, %v7032_v9  ;;  %v4543_v42 = vmul.f32 %v3509_v30, %v7056_v35  ;;  %v4529_v52 = vmul.f32 %v3517_v23, %v7038_v11 }
 0x101   : > { %v4545_v13 = vmul.f32 %v3517_v23, %v7062_v37  ;;  %v4526_v48 = vmul.f32 %v3505_v26, %v7029_v8  ;;  %v4542_v5 = vmul.f32 %v3505_v26, %v7053_v28  ;;  %v4528_v17 = vmul.f32 %v3513_v22, %v7035_v10 }
 0x102   : > { %v4544_v49 = vmul.f32 %v3513_v22, %v7059_v36  ;;  %v4923_v50 = vpack.c.bf16 %v4543_v42, %v4527_v7  ;;  %v4559_v19 = vmul.f32 %v3573_v21, %v7032_v9  ;;  %v4575_v24 = vmul.f32 %v3573_v21, %v7056_v35 }
 0x103   : > { %v4925_v41 = vpack.c.bf16 %v4545_v13, %v4529_v52  ;;  %v4922_v30 = vpack.c.bf16 %v4542_v5, %v4526_v48  ;;  %v4561_v23 = vmul.f32 %v3581_v25, %v7038_v11  ;;  %v4577_v34 = vmul.f32 %v3581_v25, %v7062_v37 }
 0x104   : > { %v4924_v60 = vpack.c.bf16 %v4544_v49, %v4528_v17  ;;  %5066 = vmatprep.subr.bf16.mxu0 %v4923_v50  ;;  %v4939_v26 = vpack.c.bf16 %v4575_v24, %v4559_v19  ;;  %v4558_v22 = vmul.f32 %v3569_v51, %v7029_v8  ;;  %v4574_v7 = vmul.f32 %v3569_v51, %v7053_v28 }
 0x105   : > { %5119 = vmatprep.subr.bf16.mxu1 %v4925_v41  ;;  %v215_v42 = vadd.f32 1.0, %v207_v44  ;;  %5067 = vmatpush1.bf16.msra.mxu0 %v4922_v30  ;;  %v4941_v52 = vpack.c.bf16 %v4577_v34, %v4561_v23  ;;  %v4560_v21 = vmul.f32 %v3577_v56, %v7035_v10  ;;  %v4576_v13 = vmul.f32 %v3577_v56, %v7059_v36 }
 0x106   : > { %5120 = vmatpush1.bf16.msra.mxu1 %v4924_v60  ;;  %v7654_v48 = vadd.f32 1.0, %v208_v47  ;;  %5068 = vmatprep.subr.bf16.mxu0 %v4939_v26  ;;  %v4938_v25 = vpack.c.bf16 %v4574_v7, %v4558_v22  ;;  %v3637_v5 = vrot.slane %v7606_v54, %v6706_v40  ;;  %v3645_v17 = vrot.slane %v7606_v54, %v10119_v18  ;;  %v209_v60 = vld [vmem:[%s6668_s26 + $0x30] sm:$0x77]  ;;  %v210_v26 = vld [vmem:[%s6668_s26 + $0x38] sm:$0x77] }
 0x107   : > { %v3633_v51 = vrot.slane %v7606_v54, %v10120_v43  ;;  %5121 = vmatprep.subr.bf16.mxu1 %v4941_v52  ;;  %v4940_v34 = vpack.c.bf16 %v4576_v13, %v4560_v21  ;;  %v3641_v56 = vrot.slane %v7606_v54, %v10121_v59  ;;  %v3701_v49 = vrot.slane %v7608_v58, %v6706_v40 }
 0x108   : > { %v3709_v44 = vrot.slane %v7608_v58, %v10119_v18  ;;  %v4591_v50 = vmul.f32 %v3637_v5, %v7032_v9  ;;  %v4607_v41 = vmul.f32 %v3637_v5, %v7056_v35  ;;  %v4593_v19 = vmul.f32 %v3645_v17, %v7038_v11 }
 0x109   : > { %v4609_v24 = vmul.f32 %v3645_v17, %v7062_v37  ;;  %5069 = vmatpush1.bf16.msra.mxu0 %v4938_v25  ;;  %v4590_v47 = vmul.f32 %v3633_v51, %v7029_v8  ;;  %v4606_v30 = vmul.f32 %v3633_v51, %v7053_v28  ;;  %v4592_v23 = vmul.f32 %v3641_v56, %v7035_v10 }
 0x10a   : > { %5122 = vmatpush1.bf16.msra.mxu1 %v4940_v34  ;;  %v7677_v22 = vadd.f32 1.0, %v209_v60  ;;  %v4955_v7 = vpack.c.bf16 %v4607_v41, %v4591_v50  ;;  %v4608_v21 = vmul.f32 %v3641_v56, %v7059_v36  ;;  %v4623_v13 = vmul.f32 %v3701_v49, %v7032_v9 }
 0x10b   : > { %v4957_v52 = vpack.c.bf16 %v4609_v24, %v4593_v19  ;;  %v4954_v5 = vpack.c.bf16 %v4606_v30, %v4590_v47  ;;  %v4639_v17 = vmul.f32 %v3701_v49, %v7056_v35  ;;  %v4625_v25 = vmul.f32 %v3709_v44, %v7038_v11 }
 0x10c   : > { %v4641_v34 = vmul.f32 %v3709_v44, %v7062_v37  ;;  %5070 = vmatprep.subr.bf16.mxu0 %v4955_v7  ;;  %v4956_v51 = vpack.c.bf16 %v4608_v21, %v4592_v23  ;;  %v3697_v60 = vrot.slane %v7608_v58, %v10120_v43  ;;  %v3705_v50 = vrot.slane %v7608_v58, %v10121_v59 }
 0x10d   : > { %5123 = vmatprep.subr.bf16.mxu1 %v4957_v52  ;;  %v7688_v41 = vadd.f32 1.0, %v210_v26  ;;  %5071 = vmatpush1.bf16.msra.mxu0 %v4954_v5  ;;  %v4971_v56 = vpack.c.bf16 %v4639_v17, %v4623_v13  ;;  %v3765_v49 = vrot.slane %v7610_v62, %v6706_v40  ;;  %v3773_v44 = vrot.slane %v7610_v62, %v10119_v18 }
 0x10e   : > { %v4973_v19 = vpack.c.bf16 %v4641_v34, %v4625_v25  ;;  %5124 = vmatpush1.bf16.msra.mxu1 %v4956_v51  ;;  %v4622_v24 = vmul.f32 %v3697_v60, %v7029_v8  ;;  %v4638_v47 = vmul.f32 %v3697_v60, %v7053_v28  ;;  %v4624_v30 = vmul.f32 %v3705_v50, %v7035_v10 }
 0x10f   : > { %v4640_v23 = vmul.f32 %v3705_v50, %v7059_v36  ;;  %5072 = vmatprep.subr.bf16.mxu0 %v4971_v56  ;;  %v4655_v26 = vmul.f32 %v3765_v49, %v7032_v9  ;;  %v4671_v7 = vmul.f32 %v3765_v49, %v7056_v35  ;;  %v4657_v52 = vmul.f32 %v3773_v44, %v7038_v11 }
 0x110   : > { %5125 = vmatprep.subr.bf16.mxu1 %v4973_v19  ;;  %v7701_v21 = vmul.f32 7.5, %v215_v42  ;;  %v4970_v13 = vpack.c.bf16 %v4638_v47, %v4622_v24  ;;  %v4673_v17 = vmul.f32 %v3773_v44, %v7062_v37  ;;  %v3761_v25 = vrot.slane %v7610_v62, %v10120_v43 }
 0x111   : > { %v4972_v5 = vpack.c.bf16 %v4640_v23, %v4624_v30  ;;  %v4987_v34 = vpack.c.bf16 %v4671_v7, %v4655_v26  ;;  %v3769_v51 = vrot.slane %v7610_v62, %v10121_v59  ;;  %v3829_v60 = vrot.slane %v7612_v57, %v6706_v40 }
 0x112   : > { %v3837_v50 = vrot.slane %v7612_v57, %v10119_v18  ;;  %5073 = vmatpush1.bf16.msra.mxu0 %v4970_v13  ;;  %v4989_v42 = vpack.c.bf16 %v4673_v17, %v4657_v52  ;;  %v4654_v56 = vmul.f32 %v3761_v25, %v7029_v8  ;;  %v4670_v19 = vmul.f32 %v3761_v25, %v7053_v28 }
 0x113   : > { %5126 = vmatpush1.bf16.msra.mxu1 %v4972_v5  ;;  %v7715_v49 = vmul.f32 7.5, %v7654_v48  ;;  %5074 = vmatprep.subr.bf16.mxu0 %v4987_v34  ;;  %v4656_v44 = vmul.f32 %v3769_v51, %v7035_v10  ;;  %v4672_v24 = vmul.f32 %v3769_v51, %v7059_v36  ;;  %v4687_v47 = vmul.f32 %v3829_v60, %v7032_v9 }
 0x114   : > { %v4703_v30 = vmul.f32 %v3829_v60, %v7056_v35  ;;  %5127 = vmatprep.subr.bf16.mxu1 %v4989_v42  ;;  %v4986_v23 = vpack.c.bf16 %v4670_v19, %v4654_v56  ;;  %v4689_v26 = vmul.f32 %v3837_v50, %v7038_v11  ;;  %v4705_v7 = vmul.f32 %v3837_v50, %v7062_v37 }
 0x115   : > { %v3825_v52 = vrot.slane %v7612_v57, %v10120_v43  ;;  %v4988_v48 = vpack.c.bf16 %v4672_v24, %v4656_v44  ;;  %v3833_v5 = vrot.slane %v7612_v57, %v10121_v59  ;;  %v3893_v17 = vrot.slane %v7614_v32, %v6706_v40 }
 0x116   : > { %v5003_v13 = vpack.c.bf16 %v4703_v30, %v4687_v47  ;;  %5075 = vmatpush1.bf16.msra.mxu0 %v4986_v23  ;;  %v5005_v25 = vpack.c.bf16 %v4705_v7, %v4689_v26  ;;  %v3901_v60 = vrot.slane %v7614_v32, %v10119_v18  ;;  %v7737_v19 = vmul.f32 7.5, %v7677_v22 }
 0x117   : > { %v4686_v34 = vmul.f32 %v3825_v52, %v7029_v8  ;;  %v4702_v51 = vmul.f32 %v3825_v52, %v7053_v28  ;;  %5128 = vmatpush1.bf16.msra.mxu1 %v4988_v48  ;;  %v4688_v50 = vmul.f32 %v3833_v5, %v7035_v10  ;;  %v4704_v42 = vmul.f32 %v3833_v5, %v7059_v36 }
 0x118   : > { %5076 = vmatprep.subr.bf16.mxu0 %v5003_v13  ;;  %v4719_v56 = vmul.f32 %v3893_v17, %v7032_v9  ;;  %5129 = vmatprep.subr.bf16.mxu1 %v5005_v25  ;;  %v4735_v24 = vmul.f32 %v3893_v17, %v7056_v35  ;;  %v4721_v47 = vmul.f32 %v3901_v60, %v7038_v11 }
 0x119   : > { %v5002_v44 = vpack.c.bf16 %v4702_v51, %v4686_v34  ;;  %v4737_v30 = vmul.f32 %v3901_v60, %v7062_v37  ;;  %v5004_v23 = vpack.c.bf16 %v4704_v42, %v4688_v50  ;;  %v3889_v26 = vrot.slane %v7614_v32, %v10120_v43 }
 0x11a   : > { %v3897_v7 = vrot.slane %v7614_v32, %v10121_v59  ;;  %v3957_v52 = vrot.slane %v7616_v38, %v6706_v40  ;;  %v5019_v22 = vpack.c.bf16 %v4735_v24, %v4719_v56  ;;  %v3965_v13 = vrot.slane %v7616_v38, %v10119_v18 }
 0x11b   : > { %5077 = vmatpush1.bf16.msra.mxu0 %v5002_v44  ;;  %v5021_v48 = vpack.c.bf16 %v4737_v30, %v4721_v47  ;;  %v3953_v5 = vrot.slane %v7616_v38, %v10120_v43  ;;  %5130 = vmatpush1.bf16.msra.mxu1 %v5004_v23  ;;  %v4718_v17 = vmul.f32 %v3889_v26, %v7029_v8  ;;  %v7760_v56 = vmul.f32 7.5, %v7688_v41 }
 0x11c   : > { %v4734_v25 = vmul.f32 %v3889_v26, %v7053_v28  ;;  %v4720_v34 = vmul.f32 %v3897_v7, %v7035_v10  ;;  %v4736_v51 = vmul.f32 %v3897_v7, %v7059_v36  ;;  %5078 = vmatprep.subr.bf16.mxu0 %v5019_v22  ;;  %v4751_v60 = vmul.f32 %v3957_v52, %v7032_v9  ;;  %v10146_v9 = vld [vmem:[#allocation42_spill] sm:$0xff] }
 0x11d   : > { %5131 = vmatprep.subr.bf16.mxu1 %v5021_v48  ;;  %v4767_v50 = vmul.f32 %v3957_v52, %v7056_v35  ;;  %v4753_v42 = vmul.f32 %v3965_v13, %v7038_v11  ;;  %v4769_v47 = vmul.f32 %v3965_v13, %v7062_v37  ;;  %v4750_v30 = vmul.f32 %v3953_v5, %v7029_v8  ;;  %v10147_v52 = vld [vmem:[#allocation44_spill] sm:$0xff] }
 0x11e   : > { %v5018_v44 = vpack.c.bf16 %v4734_v25, %v4718_v17  ;;  %v5020_v24 = vpack.c.bf16 %v4736_v51, %v4720_v34  ;;  %v4766_v26 = vmul.f32 %v3953_v5, %v7053_v28  ;;  %v3961_v7 = vrot.slane %v7616_v38, %v10121_v59  ;;  %v10148_v17 = vld [vmem:[#allocation16_spill] sm:$0xff] }
 0x11f   : > { %v5035_v23 = vpack.c.bf16 %v4767_v50, %v4751_v60  ;;  %v4275_v35 = vmul.f32 %v7596_v1, %v10146_v9  ;;  %v5037_v11 = vpack.c.bf16 %v4769_v47, %v4753_v42  ;;  %v4291_v41 = vmul.f32 %v7596_v1, %v7342_v55  ;;  %v10150_v42 = vld [vmem:[#allocation43_spill] sm:$0xff]  ;;  %v4789_v47 = vld [vmem:[#allocation2 + $0x38] sm:$0xff] }
 0x120   : > { %5079 = vmatpush1.bf16.msra.mxu0 %v5018_v44  ;;  %5132 = vmatpush1.bf16.msra.mxu1 %v5020_v24  ;;  %v4277_v37 = vmul.f32 %v7600_v45, %v10147_v52  ;;  %v231_v8 = vmax.f32 %v7701_v21, 0.0  ;;  %v5034_v22 = vpack.c.bf16 %v4766_v26, %v4750_v30  ;;  %v4752_v28 = vmul.f32 %v3961_v7, %v7035_v10  ;;  %v4787_v24 = vld [vmem:[#allocation2 + $0x28] sm:$0xff] }
 0x121   : > { %5080 = vmatprep.subr.bf16.mxu0 %v5035_v23  ;;  %v4768_v48 = vmul.f32 %v3961_v7, %v7059_v36  ;;  %v4293_v13 = vmul.f32 %v7600_v45, %v7350_v33  ;;  %5133 = vmatprep.subr.bf16.mxu1 %v5037_v11  ;;  %v4799_v5 = vpack.c.bf16 %v4291_v41, %v4275_v35  ;;  %v10149_v45 = vld [vmem:[#allocation41_spill] sm:$0xff]  ;;  %v4786_v7 = vld [vmem:[#allocation2 + $0x20] sm:$0xff]  ;;  %v4788_v35 = vld [vmem:[#allocation2 + $0x30] sm:$0xff]  ;;  %v232_v11 = vmax.f32 %v7715_v49, 0.0 }
 0x122   : > { %v3009_v25 = vrot.slane %v7352_v2, %v10148_v17  ;;  %v3017_v1 = vrot.slane %v7352_v2, %v7525_v61  ;;  %v3077_v21 = vrot.slane %v7354_v12, %v10145_v39  ;;  %v3085_v10 = vrot.slane %v7354_v12, %v7502_v63 }
 0x123   : > { %v5036_v34 = vpack.c.bf16 %v4768_v48, %v4752_v28  ;;  %v4801_v51 = vpack.c.bf16 %v4293_v13, %v4277_v37  ;;  %v3073_v36 = vrot.slane %v7354_v12, %v10148_v17 }
 0x124   : > { %5081 = vmatpush1.bf16.msra.mxu0 %v5034_v22  ;;  %v4274_v60 = vmul.f32 %v3009_v25, %v10149_v45  ;;  %v4290_v50 = vmul.f32 %v3009_v25, %v7338_v53  ;;  %v4276_v44 = vmul.f32 %v3017_v1, %v10150_v42  ;;  %v4292_v2 = vmul.f32 %v3017_v1, %v7346_v31 }
 0x125   : > { %5134 = vmatpush1.bf16.msra.mxu1 %v5036_v34  ;;  %5156 = vmatprep.subr.bf16.mxu0 %v4799_v5  ;;  %v4307_v30 = vmul.f32 %v3077_v21, %v10146_v9  ;;  %v4323_v23 = vmul.f32 %v3077_v21, %v7342_v55  ;;  %v4309_v26 = vmul.f32 %v3085_v10, %v10147_v52  ;;  %v233_v34 = vmax.f32 %v7737_v19, 0.0 }
 0x126   : > { %5209 = vmatprep.subr.bf16.mxu1 %v4801_v51  ;;  %v4798_v41 = vpack.c.bf16 %v4290_v50, %v4274_v60  ;;  %v4800_v37 = vpack.c.bf16 %v4292_v2, %v4276_v44  ;;  %v4325_v22 = vmul.f32 %v3085_v10, %v7350_v33  ;;  %v4306_v28 = vmul.f32 %v3073_v36, %v10149_v45 }
 0x127   : > { %5083 = vmatmul.mubr.bf16.vlgmr.msra.gmra.mrb[0].mxu0 %v7592_v46  ;;  %v4815_v48 = vpack.c.bf16 %v4323_v23, %v4307_v30  ;;  %v4322_v13 = vmul.f32 %v3073_v36, %v7338_v53  ;;  %v3081_v5 = vrot.slane %v7354_v12, %v7525_v61  ;;  %v7802_v25 = vpack.c.bf16 %v4789_v47, %v4787_v24 }
 0x128   : > { %5136 = vmatmul.mubr.bf16.vlgmr.msra.gmra.mrb[0].mxu1 %v7592_v46  ;;  %5157 = vmatpush1.bf16.msra.mxu0 %v4798_v41  ;;  %v4817_v49 = vpack.c.bf16 %v4325_v22, %v4309_v26  ;;  %v7805_v1 = vpack.c.bf16 %v4788_v35, %v4786_v7  ;;  %v3141_v21 = vrot.slane %v7356_v3, %v10145_v39  ;;  %v234_v36 = vmax.f32 %v7760_v56, 0.0 }
 0x129   : > { %10151 = vst [vmem:[#allocation46_spill] sm:$0xff] %v7802_v25  ;;  %5210 = vmatpush1.bf16.msra.mxu1 %v4800_v37  ;;  %5158 = vmatprep.subr.bf16.mxu0 %v4815_v48  ;;  %v4814_v51 = vpack.c.bf16 %v4322_v13, %v4306_v28  ;;  %v4308_v10 = vmul.f32 %v3081_v5, %v10150_v42  ;;  %v7818_v19 = vmin.f32 %v231_v8, 15.0 }
 0x12a   : > { %10152 = vst [vmem:[#allocation47_spill] sm:$0xff] %v7805_v1  ;;  %v4324_v12 = vmul.f32 %v3081_v5, %v7346_v31  ;;  %5211 = vmatprep.subr.bf16.mxu1 %v4817_v49  ;;  %5092 = vmatprep.mubr.bf16.mxu0 %v7802_v25  ;;  %v4339_v60 = vmul.f32 %v3141_v21, %v10146_v9 }
 0x12b   : > { %v4355_v50 = vmul.f32 %v3141_v21, %v7342_v55  ;;  %v3149_v44 = vrot.slane %v7356_v3, %v7502_v63  ;;  %5145 = vmatprep.mubr.bf16.mxu1 %v7802_v25  ;;  %v3137_v24 = vrot.slane %v7356_v3, %v10148_v17  ;;  %v3145_v47 = vrot.slane %v7356_v3, %v7525_v61 }
 0x12c   : > { %v4816_v2 = vpack.c.bf16 %v4324_v12, %v4308_v10  ;;  %v3205_v30 = vrot.slane %v7358_v14, %v10145_v39  ;;  %5159 = vmatpush1.bf16.msra.mxu0 %v4814_v51  ;;  %v3213_v8 = vrot.slane %v7358_v14, %v7502_v63  ;;  %v3201_v51 = vrot.slane %v7358_v14, %v10148_v17 }
 0x12d   : > { %v4831_v23 = vpack.c.bf16 %v4355_v50, %v4339_v60  ;;  %v4341_v26 = vmul.f32 %v3149_v44, %v10147_v52  ;;  %v4357_v7 = vmul.f32 %v3149_v44, %v7350_v33  ;;  %v4338_v35 = vmul.f32 %v3137_v24, %v10149_v45 }
 0x12e   : > { %5212 = vmatpush1.bf16.msra.mxu1 %v4816_v2  ;;  %v4354_v41 = vmul.f32 %v3137_v24, %v7338_v53  ;;  %v4340_v37 = vmul.f32 %v3145_v47, %v10150_v42  ;;  %v4356_v3 = vmul.f32 %v3145_v47, %v7346_v31  ;;  %v4371_v28 = vmul.f32 %v3205_v30, %v10146_v9 }
 0x12f   : > { %5160 = vmatprep.subr.bf16.mxu0 %v4831_v23  ;;  %v4833_v22 = vpack.c.bf16 %v4357_v7, %v4341_v26  ;;  %v4387_v48 = vmul.f32 %v3205_v30, %v7342_v55  ;;  %v4373_v13 = vmul.f32 %v3213_v8, %v10147_v52  ;;  %5093 = vmatmul.mubr.bf16.gmra.mrb[4].mxu0 %v7805_v1  ;;  %v7847_v50 = vmin.f32 %v232_v11, 15.0 }
 0x130   : > { %v4830_v5 = vpack.c.bf16 %v4354_v41, %v4338_v35  ;;  %v4832_v49 = vpack.c.bf16 %v4356_v3, %v4340_v37  ;;  %v4389_v21 = vmul.f32 %v3213_v8, %v7350_v33  ;;  %5146 = vmatmul.mubr.bf16.gmra.mrb[4].mxu1 %v7805_v1  ;;  %v3209_v12 = vrot.slane %v7358_v14, %v7525_v61 }
 0x131   : > { %5213 = vmatprep.subr.bf16.mxu1 %v4833_v22  ;;  %v4847_v10 = vpack.c.bf16 %v4387_v48, %v4371_v28  ;;  %v3269_v60 = vrot.slane %v7360_v16, %v10145_v39  ;;  %v4370_v2 = vmul.f32 %v3201_v51, %v10149_v45  ;;  %v4386_v24 = vmul.f32 %v3201_v51, %v7338_v53 }
 0x132   : > { %5161 = vmatpush1.bf16.msra.mxu0 %v4830_v5  ;;  %5214 = vmatpush1.bf16.msra.mxu1 %v4832_v49  ;;  %v4849_v44 = vpack.c.bf16 %v4389_v21, %v4373_v13  ;;  %v7851_v47 = vmin.f32 %v233_v34, 15.0  ;;  %v4372_v30 = vmul.f32 %v3209_v12, %v10150_v42  ;;  %v4388_v23 = vmul.f32 %v3209_v12, %v7346_v31 }
 0x133   : > { %5162 = vmatprep.subr.bf16.mxu0 %v4847_v10  ;;  %v4403_v14 = vmul.f32 %v3269_v60, %v10146_v9  ;;  %v4419_v26 = vmul.f32 %v3269_v60, %v7342_v55  ;;  %v4846_v11 = vpack.c.bf16 %v4386_v24, %v4370_v2  ;;  %v3277_v7 = vrot.slane %v7360_v16, %v7502_v63 }
 0x134   : > { %5215 = vmatprep.subr.bf16.mxu1 %v4849_v44  ;;  %v3265_v8 = vrot.slane %v7360_v16, %v10148_v17  ;;  %v3273_v34 = vrot.slane %v7360_v16, %v7525_v61  ;;  %v4848_v35 = vpack.c.bf16 %v4388_v23, %v4372_v30  ;;  %v3333_v37 = vrot.slane %v7362_v15, %v10145_v39 }
 0x135   : > { %v4863_v41 = vpack.c.bf16 %v4419_v26, %v4403_v14  ;;  %v3341_v3 = vrot.slane %v7362_v15, %v7502_v63  ;;  %5188 = vmatprep.mubr.bf16.mxu0 %v7590_v0  ;;  %v4405_v22 = vmul.f32 %v3277_v7, %v10147_v52  ;;  %v4421_v28 = vmul.f32 %v3277_v7, %v7350_v33 }
 0x136   : > { %5163 = vmatpush1.bf16.msra.mxu0 %v4846_v11  ;;  %v4402_v48 = vmul.f32 %v3265_v8, %v10149_v45  ;;  %v4418_v13 = vmul.f32 %v3265_v8, %v7338_v53  ;;  %5216 = vmatpush1.bf16.msra.mxu1 %v4848_v35  ;;  %v4404_v16 = vmul.f32 %v3273_v34, %v10150_v42  ;;  %v7877_v21 = vmin.f32 %v234_v36, 15.0 }
 0x137   : > { %5164 = vmatprep.subr.bf16.mxu0 %v4863_v41  ;;  %v4420_v5 = vmul.f32 %v3273_v34, %v7346_v31  ;;  %v4435_v49 = vmul.f32 %v3333_v37, %v10146_v9  ;;  %v4865_v51 = vpack.c.bf16 %v4421_v28, %v4405_v22  ;;  %v4451_v12 = vmul.f32 %v3333_v37, %v7342_v55 }
 0x138   : > { %v4862_v10 = vpack.c.bf16 %v4418_v13, %v4402_v48  ;;  %v4437_v60 = vmul.f32 %v3341_v3, %v10147_v52  ;;  %5241 = vmatprep.mubr.bf16.mxu1 %v7590_v0  ;;  %v4453_v2 = vmul.f32 %v3341_v3, %v7350_v33  ;;  %v3329_v24 = vrot.slane %v7362_v15, %v10148_v17 }
 0x139   : > { %v4864_v44 = vpack.c.bf16 %v4420_v5, %v4404_v16  ;;  %v3337_v30 = vrot.slane %v7362_v15, %v7525_v61  ;;  %5217 = vmatprep.subr.bf16.mxu1 %v4865_v51  ;;  %v4879_v56 = vpack.c.bf16 %v4451_v12, %v4435_v49  ;;  %v3397_v36 = vrot.slane %v7364_v4, %v10145_v39 }
 0x13a   : > { %5165 = vmatpush1.bf16.msra.mxu0 %v4862_v10  ;;  %v3405_v23 = vrot.slane %v7364_v4, %v7502_v63  ;;  %v6118_v14 = vtrunc.f32 %v7818_v19  ;;  %v4881_v26 = vpack.c.bf16 %v4453_v2, %v4437_v60  ;;  %v4434_v11 = vmul.f32 %v3329_v24, %v10149_v45 }
 0x13b   : > { %5218 = vmatpush1.bf16.msra.mxu1 %v4864_v44  ;;  %v4450_v7 = vmul.f32 %v3329_v24, %v7338_v53  ;;  %v4436_v8 = vmul.f32 %v3337_v30, %v10150_v42  ;;  %5166 = vmatprep.subr.bf16.mxu0 %v4879_v56  ;;  %v4452_v15 = vmul.f32 %v3337_v30, %v7346_v31 }
 0x13c   : > { %v4467_v34 = vmul.f32 %v3397_v36, %v10146_v9  ;;  %v4483_v35 = vmul.f32 %v3397_v36, %v7342_v55  ;;  %v4469_v41 = vmul.f32 %v3405_v23, %v10147_v52  ;;  %5219 = vmatprep.subr.bf16.mxu1 %v4881_v26  ;;  %v4485_v3 = vmul.f32 %v3405_v23, %v7350_v33 }
 0x13d   : > { %v4878_v37 = vpack.c.bf16 %v4450_v7, %v4434_v11  ;;  %v3393_v22 = vrot.slane %v7364_v4, %v10148_v17  ;;  %v3401_v28 = vrot.slane %v7364_v4, %v7525_v61  ;;  %v4880_v48 = vpack.c.bf16 %v4452_v15, %v4436_v8 }
 0x13e   : > { %v4895_v13 = vpack.c.bf16 %v4483_v35, %v4467_v34  ;;  %v3461_v16 = vrot.slane %v7366_v6, %v10145_v39  ;;  %v3469_v5 = vrot.slane %v7366_v6, %v7502_v63  ;;  %v4897_v49 = vpack.c.bf16 %v4485_v3, %v4469_v41 }
 0x13f   : > { %5167 = vmatpush1.bf16.msra.mxu0 %v4878_v37  ;;  %v4466_v51 = vmul.f32 %v3393_v22, %v10149_v45  ;;  %v4482_v10 = vmul.f32 %v3393_v22, %v7338_v53  ;;  %v4468_v12 = vmul.f32 %v3401_v28, %v10150_v42  ;;  %5220 = vmatpush1.bf16.msra.mxu1 %v4880_v48  ;;  %v7914_v2 = vcvt.f32.s32 %v6118_v14 }
 0x140   : > { %5168 = vmatprep.subr.bf16.mxu0 %v4895_v13  ;;  %v4484_v4 = vmul.f32 %v3401_v28, %v7346_v31  ;;  %v4499_v60 = vmul.f32 %v3461_v16, %v10146_v9  ;;  %v4515_v44 = vmul.f32 %v3461_v16, %v7342_v55  ;;  %5221 = vmatprep.subr.bf16.mxu1 %v4897_v49  ;;  %v6120_v37 = vtrunc.f32 %v7847_v50 }
 0x141   : > { %10153 = vst [vmem:[#allocation48_spill] sm:$0xff] %v7914_v2  ;;  %v4894_v24 = vpack.c.bf16 %v4482_v10, %v4466_v51  ;;  %v4501_v30 = vmul.f32 %v3469_v5, %v10147_v52  ;;  %v4517_v56 = vmul.f32 %v3469_v5, %v7350_v33  ;;  %v3457_v36 = vrot.slane %v7366_v6, %v10148_v17 }
 0x142   : > { %v4896_v23 = vpack.c.bf16 %v4484_v4, %v4468_v12  ;;  %v4911_v26 = vpack.c.bf16 %v4515_v44, %v4499_v60  ;;  %v3465_v11 = vrot.slane %v7366_v6, %v7525_v61  ;;  %v3525_v7 = vrot.slane %v7602_v27, %v10145_v39 }
 0x143   : > { %5169 = vmatpush1.bf16.msra.mxu0 %v4894_v24  ;;  %v4913_v14 = vpack.c.bf16 %v4517_v56, %v4501_v30  ;;  %v4498_v8 = vmul.f32 %v3457_v36, %v10149_v45  ;;  %v4514_v15 = vmul.f32 %v3457_v36, %v7338_v53  ;;  %v3533_v34 = vrot.slane %v7602_v27, %v7502_v63 }
 0x144   : > { %5222 = vmatpush1.bf16.msra.mxu1 %v4896_v23  ;;  %5170 = vmatprep.subr.bf16.mxu0 %v4911_v26  ;;  %v4500_v35 = vmul.f32 %v3465_v11, %v10150_v42  ;;  %v4516_v41 = vmul.f32 %v3465_v11, %v7346_v31  ;;  %v4531_v6 = vmul.f32 %v3525_v7, %v10146_v9  ;;  %v7952_v23 = vcvt.f32.s32 %v6120_v37 }
 0x145   : > { %5223 = vmatprep.subr.bf16.mxu1 %v4913_v14  ;;  %v4910_v3 = vpack.c.bf16 %v4514_v15, %v4498_v8  ;;  %v4547_v22 = vmul.f32 %v3525_v7, %v7342_v55  ;;  %v4533_v28 = vmul.f32 %v3533_v34, %v10147_v52  ;;  %v4549_v48 = vmul.f32 %v3533_v34, %v7350_v33 }
 0x146   : > { %v4912_v13 = vpack.c.bf16 %v4516_v41, %v4500_v35  ;;  %v3521_v16 = vrot.slane %v7602_v27, %v10148_v17  ;;  %v3529_v5 = vrot.slane %v7602_v27, %v7525_v61  ;;  %v3589_v49 = vrot.slane %v7604_v29, %v10145_v39  ;;  %10154 = vst [vmem:[#allocation49_spill] sm:$0xff] %v7952_v23 }
 0x147   : > { %5171 = vmatpush1.bf16.msra.mxu0 %v4910_v3  ;;  %v4927_v51 = vpack.c.bf16 %v4547_v22, %v4531_v6  ;;  %v4929_v10 = vpack.c.bf16 %v4549_v48, %v4533_v28  ;;  %v3597_v12 = vrot.slane %v7604_v29, %v7502_v63  ;;  %v3585_v4 = vrot.slane %v7604_v29, %v10148_v17 }
 0x148   : > { %5224 = vmatpush1.bf16.msra.mxu1 %v4912_v13  ;;  %v4530_v60 = vmul.f32 %v3521_v16, %v10149_v45  ;;  %v4546_v44 = vmul.f32 %v3521_v16, %v7338_v53  ;;  %v4532_v24 = vmul.f32 %v3529_v5, %v10150_v42  ;;  %v4548_v27 = vmul.f32 %v3529_v5, %v7346_v31 }
 0x149   : > { %5172 = vmatprep.subr.bf16.mxu0 %v4927_v51  ;;  %5225 = vmatprep.subr.bf16.mxu1 %v4929_v10  ;;  %v4563_v30 = vmul.f32 %v3589_v49, %v10146_v9  ;;  %v4579_v56 = vmul.f32 %v3589_v49, %v7342_v55  ;;  %v4565_v36 = vmul.f32 %v3597_v12, %v10147_v52  ;;  %v6122_v3 = vtrunc.f32 %v7851_v47 }
 0x14a   : > { %v4926_v26 = vpack.c.bf16 %v4546_v44, %v4530_v60  ;;  %v4928_v11 = vpack.c.bf16 %v4548_v27, %v4532_v24  ;;  %v4581_v7 = vmul.f32 %v3597_v12, %v7350_v33  ;;  %v4562_v14 = vmul.f32 %v3585_v4, %v10149_v45 }
 0x14b   : > { %v4943_v8 = vpack.c.bf16 %v4579_v56, %v4563_v30  ;;  %v4578_v15 = vmul.f32 %v3585_v4, %v7338_v53  ;;  %v3593_v34 = vrot.slane %v7604_v29, %v7525_v61  ;;  %v3653_v35 = vrot.slane %v7606_v54, %v10145_v39 }
 0x14c   : > { %5173 = vmatpush1.bf16.msra.mxu0 %v4926_v26  ;;  %5226 = vmatpush1.bf16.msra.mxu1 %v4928_v11  ;;  %v4945_v41 = vpack.c.bf16 %v4581_v7, %v4565_v36  ;;  %v3661_v6 = vrot.slane %v7606_v54, %v7502_v63  ;;  %v3649_v37 = vrot.slane %v7606_v54, %v10148_v17 }
 0x14d   : > { %5174 = vmatprep.subr.bf16.mxu0 %v4943_v8  ;;  %v4942_v22 = vpack.c.bf16 %v4578_v15, %v4562_v14  ;;  %v4564_v28 = vmul.f32 %v3593_v34, %v10150_v42  ;;  %v4580_v29 = vmul.f32 %v3593_v34, %v7346_v31  ;;  %v4595_v48 = vmul.f32 %v3653_v35, %v10146_v9 }
 0x14e   : > { %5227 = vmatprep.subr.bf16.mxu1 %v4945_v41  ;;  %v4611_v13 = vmul.f32 %v3653_v35, %v7342_v55  ;;  %v4597_v16 = vmul.f32 %v3661_v6, %v10147_v52  ;;  %v4613_v5 = vmul.f32 %v3661_v6, %v7350_v33  ;;  %v4594_v49 = vmul.f32 %v3649_v37, %v10149_v45 }
 0x14f   : > { %v4944_v51 = vpack.c.bf16 %v4580_v29, %v4564_v28  ;;  %v4610_v10 = vmul.f32 %v3649_v37, %v7338_v53  ;;  %v3657_v12 = vrot.slane %v7606_v54, %v7525_v61  ;;  %v3717_v4 = vrot.slane %v7608_v58, %v10145_v39 }
 0x150   : > { %5175 = vmatpush1.bf16.msra.mxu0 %v4942_v22  ;;  %v4959_v60 = vpack.c.bf16 %v4611_v13, %v4595_v48  ;;  %v4961_v44 = vpack.c.bf16 %v4613_v5, %v4597_v16  ;;  %v3725_v24 = vrot.slane %v7608_v58, %v7502_v63  ;;  %v3713_v27 = vrot.slane %v7608_v58, %v10148_v17 }
 0x151   : > { %5228 = vmatpush1.bf16.msra.mxu1 %v4944_v51  ;;  %v4958_v30 = vpack.c.bf16 %v4610_v10, %v4594_v49  ;;  %v4596_v56 = vmul.f32 %v3657_v12, %v10150_v42  ;;  %v4612_v36 = vmul.f32 %v3657_v12, %v7346_v31  ;;  %v4627_v54 = vmul.f32 %v3717_v4, %v10146_v9 }
 0x152   : > { %5176 = vmatprep.subr.bf16.mxu0 %v4959_v60  ;;  %5229 = vmatprep.subr.bf16.mxu1 %v4961_v44  ;;  %v4643_v26 = vmul.f32 %v3717_v4, %v7342_v55  ;;  %v4629_v11 = vmul.f32 %v3725_v24, %v10147_v52  ;;  %v4645_v7 = vmul.f32 %v3725_v24, %v7350_v33  ;;  %v7988_v14 = vcvt.f32.s32 %v6122_v3 }
 0x153   : > { %v4960_v8 = vpack.c.bf16 %v4612_v36, %v4596_v56  ;;  %v4626_v15 = vmul.f32 %v3713_v27, %v10149_v45  ;;  %v4642_v34 = vmul.f32 %v3713_v27, %v7338_v53  ;;  %v3721_v35 = vrot.slane %v7608_v58, %v7525_v61 }
 0x154   : > { %10155 = vst [vmem:[#allocation50_spill] sm:$0xff] %v7988_v14  ;;  %5177 = vmatpush1.bf16.msra.mxu0 %v4958_v30  ;;  %v4975_v41 = vpack.c.bf16 %v4643_v26, %v4627_v54  ;;  %v4977_v6 = vpack.c.bf16 %v4645_v7, %v4629_v11  ;;  %v3781_v37 = vrot.slane %v7610_v62, %v10145_v39  ;;  %v6124_v5 = vtrunc.f32 %v7877_v21 }
 0x155   : > { %v3789_v22 = vrot.slane %v7610_v62, %v7502_v63  ;;  %5230 = vmatpush1.bf16.msra.mxu1 %v4960_v8  ;;  %v4974_v3 = vpack.c.bf16 %v4642_v34, %v4626_v15  ;;  %v4628_v28 = vmul.f32 %v3721_v35, %v10150_v42  ;;  %v4644_v29 = vmul.f32 %v3721_v35, %v7346_v31 }
 0x156   : > { %v3777_v48 = vrot.slane %v7610_v62, %v10148_v17  ;;  %5178 = vmatprep.subr.bf16.mxu0 %v4975_v41  ;;  %5231 = vmatprep.subr.bf16.mxu1 %v4977_v6  ;;  %v4659_v58 = vmul.f32 %v3781_v37, %v10146_v9  ;;  %v4675_v13 = vmul.f32 %v3781_v37, %v7342_v55 }
 0x157   : > { %v4661_v16 = vmul.f32 %v3789_v22, %v10147_v52  ;;  %v4976_v49 = vpack.c.bf16 %v4644_v29, %v4628_v28  ;;  %v4677_v51 = vmul.f32 %v3789_v22, %v7350_v33  ;;  %v3785_v60 = vrot.slane %v7610_v62, %v7525_v61 }
 0x158   : > { %v4658_v10 = vmul.f32 %v3777_v48, %v10149_v45  ;;  %v4674_v12 = vmul.f32 %v3777_v48, %v7338_v53  ;;  %5179 = vmatpush1.bf16.msra.mxu0 %v4974_v3  ;;  %v4991_v4 = vpack.c.bf16 %v4675_v13, %v4659_v58  ;;  %v3845_v44 = vrot.slane %v7612_v57, %v10145_v39 }
 0x159   : > { %v3853_v24 = vrot.slane %v7612_v57, %v7502_v63  ;;  %5232 = vmatpush1.bf16.msra.mxu1 %v4976_v49  ;;  %v4993_v27 = vpack.c.bf16 %v4677_v51, %v4661_v16  ;;  %v3841_v56 = vrot.slane %v7612_v57, %v10148_v17  ;;  %v3849_v36 = vrot.slane %v7612_v57, %v7525_v61 }
 0x15a   : > { %v4990_v30 = vpack.c.bf16 %v4674_v12, %v4658_v10  ;;  %5180 = vmatprep.subr.bf16.mxu0 %v4991_v4  ;;  %v4660_v54 = vmul.f32 %v3785_v60, %v10150_v42  ;;  %v4676_v62 = vmul.f32 %v3785_v60, %v7346_v31  ;;  %v4691_v26 = vmul.f32 %v3845_v44, %v10146_v9 }
 0x15b   : > { %v4707_v11 = vmul.f32 %v3845_v44, %v7342_v55  ;;  %5233 = vmatprep.subr.bf16.mxu1 %v4993_v27  ;;  %v4693_v7 = vmul.f32 %v3853_v24, %v10147_v52  ;;  %v4709_v8 = vmul.f32 %v3853_v24, %v7350_v33  ;;  %v4690_v15 = vmul.f32 %v3841_v56, %v10149_v45 }
 0x15c   : > { %v4706_v34 = vmul.f32 %v3841_v56, %v7338_v53  ;;  %5181 = vmatpush1.bf16.msra.mxu0 %v4990_v30  ;;  %v4992_v57 = vpack.c.bf16 %v4676_v62, %v4660_v54  ;;  %v4692_v41 = vmul.f32 %v3849_v36, %v10150_v42  ;;  %v4708_v6 = vmul.f32 %v3849_v36, %v7346_v31 }
 0x15d   : > { %v5007_v35 = vpack.c.bf16 %v4707_v11, %v4691_v26  ;;  %v5009_v37 = vpack.c.bf16 %v4709_v8, %v4693_v7  ;;  %v3909_v3 = vrot.slane %v7614_v32, %v10145_v39  ;;  %v3917_v28 = vrot.slane %v7614_v32, %v7502_v63 }
 0x15e   : > { %v5006_v22 = vpack.c.bf16 %v4706_v34, %v4690_v15  ;;  %5234 = vmatpush1.bf16.msra.mxu1 %v4992_v57  ;;  %v5008_v29 = vpack.c.bf16 %v4708_v6, %v4692_v41  ;;  %v3905_v48 = vrot.slane %v7614_v32, %v10148_v17  ;;  %v3913_v58 = vrot.slane %v7614_v32, %v7525_v61 }
 0x15f   : > { %5182 = vmatprep.subr.bf16.mxu0 %v5007_v35  ;;  %v8037_v13 = vcvt.f32.s32 %v6124_v5  ;;  %5235 = vmatprep.subr.bf16.mxu1 %v5009_v37  ;;  %v4723_v16 = vmul.f32 %v3909_v3, %v10146_v9  ;;  %v4739_v49 = vmul.f32 %v3909_v3, %v7342_v55  ;;  %v4725_v51 = vmul.f32 %v3917_v28, %v10147_v52 }
 0x160   : > { %v4741_v10 = vmul.f32 %v3917_v28, %v7350_v33  ;;  %5183 = vmatpush1.bf16.msra.mxu0 %v5006_v22  ;;  %v4722_v12 = vmul.f32 %v3905_v48, %v10149_v45  ;;  %v4738_v4 = vmul.f32 %v3905_v48, %v7338_v53  ;;  %v4724_v60 = vmul.f32 %v3913_v58, %v10150_v42 }
 0x161   : > { %10156 = vst [vmem:[#allocation51_spill] sm:$0xff] %v8037_v13  ;;  %v4740_v32 = vmul.f32 %v3913_v58, %v7346_v31  ;;  %v5023_v5 = vpack.c.bf16 %v4739_v49, %v4723_v16  ;;  %v3973_v24 = vrot.slane %v7616_v38, %v10145_v39  ;;  %v3981_v27 = vrot.slane %v7616_v38, %v7502_v63 }
 0x162   : > { %v5025_v44 = vpack.c.bf16 %v4741_v10, %v4725_v51  ;;  %5236 = vmatpush1.bf16.msra.mxu1 %v5008_v29  ;;  %v5022_v30 = vpack.c.bf16 %v4738_v4, %v4722_v12  ;;  %v3969_v36 = vrot.slane %v7616_v38, %v10148_v17  ;;  %v3977_v54 = vrot.slane %v7616_v38, %v7525_v61 }
 0x163   : > { %v5024_v56 = vpack.c.bf16 %v4740_v32, %v4724_v60  ;;  %5184 = vmatprep.subr.bf16.mxu0 %v5023_v5  ;;  %v4755_v62 = vmul.f32 %v3973_v24, %v10146_v9  ;;  %v4771_v26 = vmul.f32 %v3973_v24, %v7342_v55  ;;  %v4757_v11 = vmul.f32 %v3981_v27, %v10147_v52 }
 0x164   : > { %5237 = vmatprep.subr.bf16.mxu1 %v5025_v44  ;;  %v255_v7 = vcvt.s32.f32 %v7914_v2  ;;  %5185 = vmatpush1.bf16.msra.mxu0 %v5022_v30  ;;  %v4773_v8 = vmul.f32 %v3981_v27, %v7350_v33  ;;  %v4754_v15 = vmul.f32 %v3969_v36, %v10149_v45  ;;  %v4770_v34 = vmul.f32 %v3969_v36, %v7338_v53 }
 0x165   : > { %v4756_v57 = vmul.f32 %v3977_v54, %v10150_v42  ;;  %v5039_v38 = vpack.c.bf16 %v4771_v26, %v4755_v62  ;;  %v4772_v35 = vmul.f32 %v3977_v54, %v7346_v31  ;;  %v256_v55 = vcvt.s32.f32 %v7952_v23 }
 0x166   : > { %5238 = vmatpush1.bf16.msra.mxu1 %v5024_v56  ;;  %v5041_v9 = vpack.c.bf16 %v4773_v8, %v4757_v11  ;;  %v5038_v41 = vpack.c.bf16 %v4770_v34, %v4754_v15  ;;  %v257_v52 = vcvt.s32.f32 %v7988_v14  ;;  %v8067_v33 = vsub.f32 %v7818_v19, %v255_v7 }
 0x167   : > { %5186 = vmatprep.subr.bf16.mxu0 %v5039_v38  ;;  %v5040_v6 = vpack.c.bf16 %v4772_v35, %v4756_v57  ;;  %v305_v53 = vrot.slane %v7914_v2, %v10120_v43  ;;  %v309_v45 = vrot.slane %v7914_v2, %v10148_v17  ;;  %v258_v31 = vcvt.s32.f32 %v8037_v13 }
 0x168   : > { %10157 = vst [vmem:[#allocation52_spill] sm:$0xff] %v8067_v33  ;;  %5239 = vmatprep.subr.bf16.mxu1 %v5041_v9  ;;  %5187 = vmatpush1.bf16.msra.mxu0 %v5038_v41  ;;  %v313_v42 = vrot.slane %v7952_v23, %v10120_v43  ;;  %v317_v37 = vrot.slane %v7952_v23, %v10148_v17 }
 0x169   : > { %v321_v19 = vrot.slane %v7988_v14, %v10120_v43  ;;  %v325_v22 = vrot.slane %v7988_v14, %v10148_v17  ;;  %v329_v3 = vrot.slane %v8037_v13, %v10120_v43  ;;  %v333_v28 = vrot.slane %v8037_v13, %v10148_v17 }
 0x16a   : > { %v8087_v29 = vrot.slane %v305_v53, %v10120_v43  ;;  %5240 = vmatpush1.bf16.msra.mxu1 %v5040_v6  ;;  %v8090_v48 = vrot.slane %v309_v45, %v10120_v43  ;;  %v8093_v58 = vrot.slane %v313_v42, %v10120_v43  ;;  %v8096_v16 = vrot.slane %v317_v37, %v10120_v43 }
 0x16b   : > { %v8099_v49 = vrot.slane %v321_v19, %v10120_v43  ;;  %5189 = vmatmul.mubr.bf16.vlgmr.msra.gmra.mrb[8].mxu0 %v7592_v46  ;;  %v8103_v51 = vsub.f32 %v7847_v50, %v256_v55  ;;  %v8106_v10 = vrot.slane %v325_v22, %v10120_v43  ;;  %v8109_v12 = vrot.slane %v329_v3, %v10120_v43 }
 0x16c   : > { %v8112_v4 = vrot.slane %v333_v28, %v10120_v43  ;;  %v8115_v60 = vsub.f32 %v7851_v47, %v257_v52  ;;  %v8118_v32 = vsub.f32 %v7877_v21, %v258_v31  ;;  %5198 = vmatprep.mubr.bf16.mxu0 %v7802_v25  ;;  %vm406_vm0 = vcmp.eq.s32.totalorder %v6678_v20, %v8087_v29  ;;  %v10162_v47 = vld [vmem:[#allocation21_spill] sm:$0xff] }
 0x16d   : > { %10158 = vst [vmem:[#allocation53_spill] sm:$0xff] %v8103_v51  ;;  %5242 = vmatmul.mubr.bf16.vlgmr.msra.gmra.mrb[8].mxu1 %v7592_v46  ;;  %vm407_vm1 = vcmp.eq.s32.totalorder %v6678_v20, %v8090_v48  ;;  %vm408_vm2 = vcmp.eq.s32.totalorder %v6678_v20, %v8093_v58  ;;  %v8129_v50 = vsub.f32 1.0, %v8067_v33  ;;  %vm409_vm3 = vcmp.eq.s32.totalorder %v6678_v20, %v8096_v16 }
 0x16e   : > { %10159 = vst [vmem:[#allocation54_spill] sm:$0xff] %v8115_v60  ;;  %10160 = vst [vmem:[#allocation55_spill] sm:$0xff] %v8118_v32  ;;  %vm410_vm4 = vcmp.eq.s32.totalorder %v6678_v20, %v8099_v49  ;;  %vm411_vm5 = vcmp.eq.s32.totalorder %v6678_v20, %v8106_v10  ;;  %vm412_vm6 = vcmp.eq.s32.totalorder %v6678_v20, %v8109_v12  ;;  %5251 = vmatprep.mubr.bf16.mxu1 %v7802_v25 }
 0x16f   : > { %10161 = vst [vmem:[#allocation56_spill] sm:$0xff] %v8129_v50  ;;  %vm413_vm7 = vcmp.eq.s32.totalorder %v6678_v20, %v8112_v4  ;;  %vm422_vm8 = vcmp.eq.s32.totalorder %v10162_v47, %v8087_v29  ;;  %vm423_vm9 = vcmp.eq.s32.totalorder %v10162_v47, %v8090_v48  ;;  %v8147_v21 = vsub.f32 1.0, %v8103_v51 }
 0x170   : > { %v8150_v5 = vsub.f32 1.0, %v8115_v60  ;;  %v8153_v44 = vsub.f32 1.0, %v8118_v32  ;;  %v481_v24 = vrot.slane %v8129_v50, %v10120_v43  ;;  %v485_v27 = vrot.slane %v8129_v50, %v10148_v17 }
 0x171   : > { %10163 = vst [vmem:[#allocation57_spill] sm:$0xff] %v8147_v21  ;;  %vm424_vm10 = vcmp.eq.s32.totalorder %v10162_v47, %v8093_v58  ;;  %vm425_vm11 = vcmp.eq.s32.totalorder %v10162_v47, %v8096_v16  ;;  %v489_v30 = vrot.slane %v8147_v21, %v10120_v43  ;;  %v493_v56 = vrot.slane %v8147_v21, %v10148_v17 }
 0x172   : > { %10164 = vst [vmem:[#allocation58_spill] sm:$0xff] %v8150_v5  ;;  %10165 = vst [vmem:[#allocation59_spill] sm:$0xff] %v8153_v44  ;;  %v497_v36 = vrot.slane %v8150_v5, %v10120_v43  ;;  %v501_v54 = vrot.slane %v8150_v5, %v10148_v17  ;;  %v505_v62 = vrot.slane %v8153_v44, %v10120_v43  ;;  %v8205_v55 = vadd.s32 1, %v7914_v2 }
 0x173   : > { %v509_v26 = vrot.slane %v8153_v44, %v10148_v17  ;;  %v561_v11 = vrot.slane %v481_v24, %v10120_v43  ;;  %v565_v7 = vrot.slane %v485_v27, %v10120_v43  ;;  %v569_v8 = vrot.slane %v489_v30, %v10120_v43  ;;  %5199 = vmatmul.mubr.bf16.gmra.mrb[12].mxu0 %v7805_v1 }
 0x174   : > { %v573_v15 = vrot.slane %v493_v56, %v10120_v43  ;;  %v577_v34 = vrot.slane %v497_v36, %v10120_v43  ;;  %v581_v57 = vrot.slane %v501_v54, %v10120_v43  ;;  %v585_v38 = vrot.slane %v505_v62, %v10120_v43  ;;  %5294 = vmatprep.mubr.bf16.mxu0 %v7590_v0 }
 0x175   : > { %v589_v35 = vrot.slane %v509_v26, %v10120_v43  ;;  %vm426_vm12 = vcmp.eq.s32.totalorder %v10162_v47, %v8099_v49  ;;  %vm427_vm13 = vcmp.eq.s32.totalorder %v10162_v47, %v8106_v10  ;;  %vm428_vm14 = vcmp.eq.s32.totalorder %v10162_v47, %v8109_v12  ;;  %5252 = vmatmul.mubr.bf16.gmra.mrb[12].mxu1 %v7805_v1 }
 0x176   : > { %vm429_vm15 = vcmp.eq.s32.totalorder %v10162_v47, %v8112_v4  ;;  %v8197_v9 = vsel %vm406_vm0, %v561_v11, 0.0  ;;  %v8202_v41 = vsel %vm407_vm1, %v565_v7, 0.0  ;;  %10166 = vst [vmem:[#allocation60_spill] sm:$0xff] %v8205_v55  ;;  %v8208_v52 = vadd.s32 1, %v7952_v23  ;;  %5347 = vmatprep.mubr.bf16.mxu1 %v7590_v0 }
 0x177   : > { %v8214_v6 = vsel %vm408_vm2, %v569_v8, 0.0  ;;  %v8219_v53 = vsel %vm409_vm3, %v573_v15, 0.0  ;;  %v8224_v45 = vsel %vm410_vm4, %v577_v34, 0.0  ;;  %v8229_v31 = vsel %vm411_vm5, %v581_v57, 0.0 }
 0x178   : > { %10167 = vst [vmem:[#allocation61_spill] sm:$0xff] %v8208_v52  ;;  %v8234_v42 = vsel %vm412_vm6, %v585_v38, 0.0  ;;  %v8239_v37 = vsel %vm413_vm7, %v589_v35, 0.0  ;;  %v8244_v19 = vsel %vm422_vm8, %v561_v11, 0.0  ;;  %v8249_v22 = vsel %vm423_vm9, %v565_v7, 0.0 }
 0x179   : > { %v8252_v3 = vadd.s32 1, %v7988_v14  ;;  %v8255_v28 = vadd.s32 1, %v8037_v13  ;;  %v665_v24 = vrot.slane %v8205_v55, %v10120_v43  ;;  %v669_v27 = vrot.slane %v8205_v55, %v10148_v17 }
 0x17a   : > { %v8264_v29 = vsel %vm424_vm10, %v569_v8, 0.0  ;;  %v8269_v48 = vsel %vm425_vm11, %v573_v15, 0.0  ;;  %v673_v30 = vrot.slane %v8208_v52, %v10120_v43  ;;  %v677_v56 = vrot.slane %v8208_v52, %v10148_v17 }
 0x17b   : > { %10168 = vst [vmem:[#allocation62_spill] sm:$0xff] %v8252_v3  ;;  %10169 = vst [vmem:[#allocation63_spill] sm:$0xff] %v8255_v28  ;;  %v681_v36 = vrot.slane %v8252_v3, %v10120_v43  ;;  %v685_v54 = vrot.slane %v8252_v3, %v10148_v17  ;;  %v689_v58 = vrot.slane %v8255_v28, %v10120_v43  ;;  %v8294_v25 = vsel %vm426_vm12, %v577_v34, 0.0 }
 0x17c   : > { %v693_v16 = vrot.slane %v8255_v28, %v10148_v17  ;;  %v729_v62 = vrot.slane %v665_v24, %v10120_v43  ;;  %v733_v26 = vrot.slane %v669_v27, %v10120_v43  ;;  %v737_v11 = vrot.slane %v673_v30, %v10120_v43 }
 0x17d   : > { %v741_v7 = vrot.slane %v677_v56, %v10120_v43  ;;  %v745_v8 = vrot.slane %v681_v36, %v10120_v43  ;;  %v749_v15 = vrot.slane %v685_v54, %v10120_v43  ;;  %v753_v0 = vrot.slane %v689_v58, %v10120_v43 }
 0x17e   : > { %v757_v1 = vrot.slane %v693_v16, %v10120_v43  ;;  %v8299_v24 = vsel %vm427_vm13, %v581_v57, 0.0  ;;  %v8304_v27 = vsel %vm428_vm14, %v585_v38, 0.0  ;;  %v8309_v30 = vsel %vm429_vm15, %v589_v35, 0.0 }
 0x17f   : > { %10170 = vst [vmem:[#allocation42_spill] sm:$0xff] %v8304_v27  ;;  %10171 = vst [vmem:[#allocation44_spill] sm:$0xff] %v8309_v30  ;;  %vm766_vm0 = vcmp.eq.s32.totalorder %v6678_v20, %v729_v62  ;;  %vm767_vm1 = vcmp.eq.s32.totalorder %v6678_v20, %v733_v26  ;;  %v833_v49 = vrot.slane %v8067_v33, %v10120_v43 }
 0x180   : > { %v837_v10 = vrot.slane %v8067_v33, %v10148_v17  ;;  %vm768_vm2 = vcmp.eq.s32.totalorder %v6678_v20, %v737_v11  ;;  %vm769_vm3 = vcmp.eq.s32.totalorder %v6678_v20, %v741_v7  ;;  %vm770_vm4 = vcmp.eq.s32.totalorder %v6678_v20, %v745_v8 }
 0x181   : > { %vm771_vm5 = vcmp.eq.s32.totalorder %v6678_v20, %v749_v15  ;;  %vm772_vm6 = vcmp.eq.s32.totalorder %v6678_v20, %v753_v0  ;;  %vm773_vm7 = vcmp.eq.s32.totalorder %v6678_v20, %v757_v1  ;;  %vm782_vm8 = vcmp.eq.s32.totalorder %v10162_v47, %v729_v62 }
 0x182   : > { %vm783_vm9 = vcmp.eq.s32.totalorder %v10162_v47, %v733_v26  ;;  %v841_v12 = vrot.slane %v8103_v51, %v10120_v43  ;;  %v845_v4 = vrot.slane %v8103_v51, %v10148_v17  ;;  %v849_v34 = vrot.slane %v8115_v60, %v10120_v43 }
 0x183   : > { %v853_v57 = vrot.slane %v8115_v60, %v10148_v17  ;;  %v857_v38 = vrot.slane %v8118_v32, %v10120_v43  ;;  %v861_v35 = vrot.slane %v8118_v32, %v10148_v17  ;;  %v913_v56 = vrot.slane %v833_v49, %v10120_v43 }
 0x184   : > { %v917_v36 = vrot.slane %v837_v10, %v10120_v43  ;;  %v921_v54 = vrot.slane %v841_v12, %v10120_v43  ;;  %v925_v58 = vrot.slane %v845_v4, %v10120_v43  ;;  %v929_v16 = vrot.slane %v849_v34, %v10120_v43 }
 0x185   : > { %v933_v46 = vrot.slane %v853_v57, %v10120_v43  ;;  %vm784_vm10 = vcmp.eq.s32.totalorder %v10162_v47, %v737_v11  ;;  %vm785_vm11 = vcmp.eq.s32.totalorder %v10162_v47, %v741_v7  ;;  %v937_v61 = vrot.slane %v857_v38, %v10120_v43 }
 0x186   : > { %v941_v17 = vrot.slane %v861_v35, %v10120_v43  ;;  %vm786_vm12 = vcmp.eq.s32.totalorder %v10162_v47, %v745_v8  ;;  %vm787_vm13 = vcmp.eq.s32.totalorder %v10162_v47, %v749_v15  ;;  %vm788_vm14 = vcmp.eq.s32.totalorder %v10162_v47, %v753_v0 }
 0x187   : > { %vm789_vm15 = vcmp.eq.s32.totalorder %v10162_v47, %v757_v1  ;;  %v950_v49 = vsel %vm766_vm0, %v913_v56, 0.0  ;;  %v951_v10 = vsel %vm767_vm1, %v917_v36, 0.0  ;;  %v952_v12 = vsel %vm768_vm2, %v921_v54, 0.0 }
 0x188   : > { %v953_v4 = vsel %vm769_vm3, %v925_v58, 0.0  ;;  %v954_v34 = vsel %vm770_vm4, %v929_v16, 0.0  ;;  %v955_v57 = vsel %vm771_vm5, %v933_v46, 0.0  ;;  %v956_v38 = vsel %vm772_vm6, %v937_v61, 0.0 }
 0x189   : > { %v957_v35 = vsel %vm773_vm7, %v941_v17, 0.0  ;;  %v966_v63 = vsel %vm782_vm8, %v913_v56, 0.0  ;;  %v967_v59 = vsel %vm783_vm9, %v917_v36, 0.0  ;;  %v8373_v43 = vsel %vm784_vm10, %v921_v54, 0.0 }
 0x18a   : > { %v8377_v18 = vsel %vm785_vm11, %v925_v58, 0.0  ;;  %v8381_v30 = vsel %vm786_vm12, %v929_v16, 0.0  ;;  %v8385_v27 = vsel %vm787_vm13, %v933_v46, 0.0  ;;  %v8389_v62 = vsel %vm788_vm14, %v937_v61, 0.0 }
 0x18b   : > { %v8393_v26 = vsel %vm789_vm15, %v941_v17, 0.0  ;;  %v8396_v11 = vadd.f32 %v950_v49, %v8197_v9  ;;  %v8399_v7 = vadd.f32 %v951_v10, %v8202_v41  ;;  %v8402_v8 = vadd.f32 %v952_v12, %v8214_v6 }
 0x18c   : > { %v8405_v46 = vadd.f32 %v953_v4, %v8219_v53  ;;  %v8408_v0 = vadd.f32 %v954_v34, %v8224_v45  ;;  %v8411_v61 = vadd.f32 %v955_v57, %v8229_v31  ;;  %v8414_v17 = vadd.f32 %v956_v38, %v8234_v42 }
 0x18d   : > { %v8417_v1 = vadd.f32 %v957_v35, %v8239_v37  ;;  %v8420_v9 = vadd.f32 %v966_v63, %v8244_v19  ;;  %v8423_v41 = vadd.f32 %v967_v59, %v8249_v22  ;;  %v1041_v6 = vrot.slane %v7914_v2, %v6706_v40 }
 0x18e   : > { %10172 = vst [vmem:[#allocation41_spill] sm:$0xff] %v8408_v0  ;;  %10173 = vst [vmem:[#allocation43_spill] sm:$0xff] %v8411_v61  ;;  %v1045_v53 = vrot.slane %v7914_v2, %v10145_v39  ;;  %v1049_v45 = vrot.slane %v7952_v23, %v6706_v40  ;;  %v1053_v31 = vrot.slane %v7952_v23, %v10145_v39 }
 0x18f   : > { %10174 = vst [vmem:[#allocation21_spill] sm:$0xff] %v8414_v17  ;;  %10175 = vst [vmem:[#allocation64_spill] sm:$0xff] %v8417_v1  ;;  %v1057_v42 = vrot.slane %v7988_v14, %v6706_v40  ;;  %v1061_v63 = vrot.slane %v7988_v14, %v10145_v39  ;;  %v1065_v59 = vrot.slane %v8037_v13, %v6706_v40 }
 0x190   : > { %v1069_v37 = vrot.slane %v8037_v13, %v10145_v39  ;;  %v8442_v19 = vrot.slane %v1041_v6, %v6706_v40  ;;  %v8445_v22 = vrot.slane %v1045_v53, %v6706_v40  ;;  %v8448_v15 = vrot.slane %v1049_v45, %v6706_v40 }
 0x191   : > { %v8451_v56 = vrot.slane %v1053_v31, %v6706_v40  ;;  %v8454_v36 = vrot.slane %v1057_v42, %v6706_v40  ;;  %v8457_v54 = vrot.slane %v1061_v63, %v6706_v40  ;;  %v8460_v58 = vrot.slane %v1065_v59, %v6706_v40 }
 0x192   : > { %v8463_v16 = vrot.slane %v1069_v37, %v6706_v40  ;;  %vm1142_vm0 = vcmp.eq.s32.totalorder %v6678_v20, %v8442_v19  ;;  %vm1143_vm1 = vcmp.eq.s32.totalorder %v6678_v20, %v8445_v22  ;;  %vm1144_vm2 = vcmp.eq.s32.totalorder %v6678_v20, %v8448_v15 }
 0x193   : > { %10176 = vst [vmem:[#allocation65_spill] sm:$0xff] %v8460_v58  ;;  %vm1145_vm3 = vcmp.eq.s32.totalorder %v6678_v20, %v8451_v56  ;;  %vm1146_vm4 = vcmp.eq.s32.totalorder %v6678_v20, %v8454_v36  ;;  %vm1147_vm5 = vcmp.eq.s32.totalorder %v6678_v20, %v8457_v54  ;;  %vm1148_vm6 = vcmp.eq.s32.totalorder %v6678_v20, %v8460_v58 }
 0x194   : > { %10177 = vst [vmem:[#allocation66_spill] sm:$0xff] %v8463_v16  ;;  %vm1149_vm7 = vcmp.eq.s32.totalorder %v6678_v20, %v8463_v16  ;;  %v1201_v49 = vrot.slane %v8129_v50, %v6706_v40  ;;  %v1205_v10 = vrot.slane %v8129_v50, %v10145_v39  ;;  %v1209_v12 = vrot.slane %v8147_v21, %v6706_v40 }
 0x195   : > { %v1213_v4 = vrot.slane %v8147_v21, %v10145_v39  ;;  %v1217_v34 = vrot.slane %v8150_v5, %v6706_v40  ;;  %v1221_v57 = vrot.slane %v8150_v5, %v10145_v39  ;;  %v1225_v38 = vrot.slane %v8153_v44, %v6706_v40 }
 0x196   : > { %v1229_v35 = vrot.slane %v8153_v44, %v10145_v39  ;;  %v8498_v6 = vrot.slane %v1201_v49, %v6706_v40  ;;  %v8501_v53 = vrot.slane %v1205_v10, %v6706_v40  ;;  %v8504_v45 = vrot.slane %v1209_v12, %v6706_v40 }
 0x197   : > { %v8507_v31 = vrot.slane %v1213_v4, %v6706_v40  ;;  %v8510_v42 = vrot.slane %v1217_v34, %v6706_v40  ;;  %v8513_v63 = vrot.slane %v1221_v57, %v6706_v40  ;;  %v8516_v59 = vrot.slane %v1225_v38, %v6706_v40 }
 0x198   : > { %v8519_v37 = vrot.slane %v1229_v35, %v6706_v40  ;;  %v1318_v49 = vsel %vm1142_vm0, %v8498_v6, 0.0  ;;  %v1319_v10 = vsel %vm1143_vm1, %v8501_v53, 0.0  ;;  %v1320_v12 = vsel %vm1144_vm2, %v8504_v45, 0.0 }
 0x199   : > { %10178 = vst [vmem:[#allocation67_spill] sm:$0xff] %v8507_v31  ;;  %10179 = vst [vmem:[#allocation68_spill] sm:$0xff] %v8510_v42  ;;  %v1321_v4 = vsel %vm1145_vm3, %v8507_v31, 0.0  ;;  %v1322_v34 = vsel %vm1146_vm4, %v8510_v42, 0.0  ;;  %v1323_v57 = vsel %vm1147_vm5, %v8513_v63, 0.0  ;;  %v1324_v38 = vsel %vm1148_vm6, %v8516_v59, 0.0 }
 0x19a   : > { %10180 = vst [vmem:[#allocation69_spill] sm:$0xff] %v8513_v63  ;;  %10181 = vst [vmem:[#allocation70_spill] sm:$0xff] %v8516_v59  ;;  %v1325_v35 = vsel %vm1149_vm7, %v8519_v37, 0.0  ;;  %v1377_v44 = vrot.slane %v8205_v55, %v6706_v40  ;;  %v1381_v5 = vrot.slane %v8205_v55, %v10145_v39  ;;  %v1385_v13 = vrot.slane %v8208_v52, %v6706_v40  ;;  %v10197_v63 = vld [vmem:[#allocation25_spill] sm:$0xff] }
 0x19b   : > { %10182 = vst [vmem:[#allocation71_spill] sm:$0xff] %v8519_v37  ;;  %v1389_v14 = vrot.slane %v8208_v52, %v10145_v39  ;;  %v1393_v21 = vrot.slane %v8252_v3, %v6706_v40  ;;  %v1397_v50 = vrot.slane %v8252_v3, %v10145_v39  ;;  %v1401_v23 = vrot.slane %v8255_v28, %v6706_v40 }
 0x19c   : > { %v1405_v2 = vrot.slane %v8255_v28, %v10145_v39  ;;  %v8570_v55 = vrot.slane %v1377_v44, %v6706_v40  ;;  %v8573_v17 = vrot.slane %v1381_v5, %v6706_v40  ;;  %v8576_v52 = vrot.slane %v1385_v13, %v6706_v40 }
 0x19d   : > { %v8579_v0 = vrot.slane %v1389_v14, %v6706_v40  ;;  %v8582_v3 = vrot.slane %v1393_v21, %v6706_v40  ;;  %v8585_v1 = vrot.slane %v1397_v50, %v6706_v40  ;;  %v8588_v28 = vrot.slane %v1401_v23, %v6706_v40 }
 0x19e   : > { %10183 = vst [vmem:[#allocation72_spill] sm:$0xff] %v8570_v55  ;;  %10184 = vst [vmem:[#allocation73_spill] sm:$0xff] %v8573_v17  ;;  %v8591_v44 = vrot.slane %v1405_v2, %v6706_v40  ;;  %vm1478_vm8 = vcmp.eq.s32.totalorder %v6678_v20, %v8570_v55  ;;  %vm1479_vm9 = vcmp.eq.s32.totalorder %v6678_v20, %v8573_v17 }
 0x19f   : > { %10185 = vst [vmem:[#allocation74_spill] sm:$0xff] %v8576_v52  ;;  %10186 = vst [vmem:[#allocation75_spill] sm:$0xff] %v8579_v0  ;;  %vm1480_vm10 = vcmp.eq.s32.totalorder %v6678_v20, %v8576_v52  ;;  %vm1481_vm11 = vcmp.eq.s32.totalorder %v6678_v20, %v8579_v0  ;;  %vm1482_vm12 = vcmp.eq.s32.totalorder %v6678_v20, %v8582_v3 }
 0x1a0   : > { %10187 = vst [vmem:[#allocation76_spill] sm:$0xff] %v8582_v3  ;;  %10188 = vst [vmem:[#allocation77_spill] sm:$0xff] %v8585_v1  ;;  %vm1483_vm13 = vcmp.eq.s32.totalorder %v6678_v20, %v8585_v1  ;;  %vm1484_vm14 = vcmp.eq.s32.totalorder %v6678_v20, %v8588_v28  ;;  %vm1485_vm15 = vcmp.eq.s32.totalorder %v6678_v20, %v8591_v44 }
 0x1a1   : > { %10189 = vst [vmem:[#allocation78_spill] sm:$0xff] %v8588_v28  ;;  %v1537_v2 = vrot.slane %v8067_v33, %v6706_v40  ;;  %v1541_v23 = vrot.slane %v8067_v33, %v10145_v39  ;;  %v1545_v14 = vrot.slane %v8103_v51, %v6706_v40  ;;  %v1549_v13 = vrot.slane %v8103_v51, %v10145_v39 }
 0x1a2   : > { %v1553_v50 = vrot.slane %v8115_v60, %v6706_v40  ;;  %v1557_v21 = vrot.slane %v8115_v60, %v10145_v39  ;;  %v1561_v5 = vrot.slane %v8118_v32, %v6706_v40  ;;  %v1565_v61 = vrot.slane %v8118_v32, %v10145_v39 }
 0x1a3   : > { %v8626_v33 = vrot.slane %v1537_v2, %v6706_v40  ;;  %v8629_v37 = vrot.slane %v1541_v23, %v6706_v40  ;;  %v8632_v51 = vrot.slane %v1545_v14, %v6706_v40  ;;  %v8635_v59 = vrot.slane %v1549_v13, %v6706_v40 }
 0x1a4   : > { %v8638_v60 = vrot.slane %v1553_v50, %v6706_v40  ;;  %v8641_v16 = vrot.slane %v1557_v21, %v6706_v40  ;;  %v8644_v32 = vrot.slane %v1561_v5, %v6706_v40  ;;  %v8647_v2 = vrot.slane %v1565_v61, %v6706_v40 }
 0x1a5   : > { %10190 = vst [vmem:[#allocation79_spill] sm:$0xff] %v8626_v33  ;;  %10191 = vst [vmem:[#allocation80_spill] sm:$0xff] %v8629_v37  ;;  %v1654_v23 = vsel %vm1478_vm8, %v8626_v33, 0.0  ;;  %v1655_v14 = vsel %vm1479_vm9, %v8629_v37, 0.0  ;;  %v1656_v13 = vsel %vm1480_vm10, %v8632_v51, 0.0  ;;  %v1657_v61 = vsel %vm1481_vm11, %v8635_v59, 0.0 }
 0x1a6   : > { %10192 = vst [vmem:[#allocation81_spill] sm:$0xff] %v8632_v51  ;;  %10193 = vst [vmem:[#allocation82_spill] sm:$0xff] %v8635_v59  ;;  %v1658_v50 = vsel %vm1482_vm12, %v8638_v60, 0.0  ;;  %v1659_v21 = vsel %vm1483_vm13, %v8641_v16, 0.0  ;;  %v1660_v5 = vsel %vm1484_vm14, %v8644_v32, 0.0  ;;  %v1661_v39 = vsel %vm1485_vm15, %v8647_v2, 0.0 }
 0x1a7   : > { %10194 = vst [vmem:[#allocation83_spill] sm:$0xff] %v8638_v60  ;;  %10195 = vst [vmem:[#allocation84_spill] sm:$0xff] %v8641_v16  ;;  %v1686_v59 = vadd.f32 %v1654_v23, %v1318_v49  ;;  %v1687_v51 = vadd.f32 %v1655_v14, %v1319_v10  ;;  %v1688_v37 = vadd.f32 %v1656_v13, %v1320_v12  ;;  %v10200_v13 = vld [vmem:[#allocation28_spill] sm:$0xff] }
 0x1a8   : > { %10196 = vst [vmem:[#allocation85_spill] sm:$0xff] %v8644_v32  ;;  %v1689_v33 = vadd.f32 %v1657_v61, %v1321_v4  ;;  %v1690_v60 = vadd.f32 %v1658_v50, %v1322_v34  ;;  %v1691_v3 = vadd.f32 %v1659_v21, %v1323_v57  ;;  %v1692_v0 = vadd.f32 %v1660_v5, %v1324_v38  ;;  %v10198_v4 = vld [vmem:[#allocation42_spill] sm:$0xff]  ;;  %v10199_v57 = vld [vmem:[#allocation44_spill] sm:$0xff]  ;;  %v10201_v50 = vld [vmem:[#allocation15_spill] sm:$0xff] }
 0x1a9   : > { %v1693_v52 = vadd.f32 %v1661_v39, %v1325_v35  ;;  %v2582_v1 = vcombine.low %v1686_v59, %v1687_v51  ;;  %v2583_v16 = vcombine.high %v1686_v59, %v1687_v51  ;;  %v8689_v51 = vadd.f32 %v8373_v43, %v8264_v29  ;;  %v10202_v5 = vld [vmem:[#allocation29_spill] sm:$0xff] }
 0x1aa   : > { %v2584_v17 = vcombine.low %v1688_v37, %v1689_v33  ;;  %v2586_v55 = vcombine.low %v1690_v60, %v1691_v3  ;;  %v2585_v58 = vcombine.high %v1688_v37, %v1689_v33  ;;  %v2587_v28 = vcombine.high %v1690_v60, %v1691_v3 }
 0x1ab   : > { %v2588_v32 = vcombine.low %v1692_v0, %v1693_v52  ;;  %v2596_v42 = vrot.slane %v2582_v1, %v10197_v63  ;;  %v2589_v31 = vcombine.high %v1692_v0, %v1693_v52  ;;  %v2603_v20 = vrot.slane %v2583_v16, %v10197_v63 }
 0x1ac   : > { %v2610_v49 = vrot.slane %v2584_v17, %v10197_v63  ;;  %v2624_v10 = vrot.slane %v2586_v55, %v10197_v63  ;;  %v2617_v12 = vrot.slane %v2585_v58, %v10197_v63  ;;  %v2631_v39 = vrot.slane %v2587_v28, %v10197_v63 }
 0x1ad   : > { %v8693_v33 = vadd.f32 %v8377_v18, %v8269_v48  ;;  %v2638_v60 = vrot.slane %v2588_v32, %v10197_v63  ;;  %v2645_v52 = vrot.slane %v2589_v31, %v10197_v63  ;;  %v8711_v37 = vadd.f32 %v8385_v27, %v8299_v24 }
 0x1ae   : > { %v2646_v3 = vcombine.low %v2596_v42, %v2610_v49  ;;  %v2647_v0 = vcombine.high %v2596_v42, %v2610_v49  ;;  %v2648_v17 = vcombine.low %v2603_v20, %v2617_v12  ;;  %v2649_v55 = vcombine.high %v2603_v20, %v2617_v12 }
 0x1af   : > { %v2650_v1 = vcombine.low %v2624_v10, %v2638_v60  ;;  %v2651_v58 = vcombine.high %v2624_v10, %v2638_v60  ;;  %v2652_v16 = vcombine.low %v2631_v39, %v2645_v52  ;;  %v2653_v28 = vcombine.high %v2631_v39, %v2645_v52 }
 0x1b0   : > { %v2660_v59 = vrot.slane %v2646_v3, %v10197_v63  ;;  %v2674_v43 = vrot.slane %v2647_v0, %v10197_v63  ;;  %v2667_v29 = vrot.slane %v2648_v17, %v10197_v63  ;;  %v2681_v18 = vrot.slane %v2649_v55, %v10197_v63 }
 0x1b1   : > { %v2688_v32 = vrot.slane %v2650_v1, %v10197_v63  ;;  %v2702_v48 = vrot.slane %v2651_v58, %v10197_v63  ;;  %v2695_v31 = vrot.slane %v2652_v16, %v10197_v63  ;;  %v2709_v20 = vrot.slane %v2653_v28, %v10197_v63 }
 0x1b2   : > { %v8707_v42 = vadd.f32 %v8381_v30, %v8294_v25  ;;  %v8715_v34 = vadd.f32 %v8389_v62, %v10198_v4  ;;  %v8719_v38 = vadd.f32 %v8393_v26, %v10199_v57  ;;  %vm1158_vm0 = vcmp.eq.s32.totalorder %v10162_v47, %v8442_v19 }
 0x1b3   : > { %v8721_v35 = vcombine.low %v2660_v59, %v2688_v32  ;;  %v8723_v23 = vcombine.low %v2674_v43, %v2702_v48  ;;  %v8725_v14 = vcombine.high %v2660_v59, %v2688_v32  ;;  %v8727_v25 = vcombine.high %v2674_v43, %v2702_v48 }
 0x1b4   : > { %v8729_v30 = vcombine.low %v2667_v29, %v2695_v31  ;;  %v8731_v24 = vcombine.low %v2681_v18, %v2709_v20  ;;  %v8733_v27 = vcombine.high %v2667_v29, %v2695_v31  ;;  %v8735_v62 = vcombine.high %v2681_v18, %v2709_v20 }
 0x1b5   : > { %v3029_v26 = vrot.slane %v8721_v35, %v6706_v40  ;;  %v3037_v61 = vrot.slane %v8721_v35, %v10200_v13  ;;  %v3025_v21 = vrot.slane %v8721_v35, %v10201_v50  ;;  %v3033_v49 = vrot.slane %v8721_v35, %v10202_v5 }
 0x1b6   : > { %v3093_v10 = vrot.slane %v8723_v23, %v6706_v40  ;;  %v3101_v12 = vrot.slane %v8723_v23, %v10200_v13  ;;  %v3089_v39 = vrot.slane %v8723_v23, %v10201_v50  ;;  %v3097_v60 = vrot.slane %v8723_v23, %v10202_v5 }
 0x1b7   : > { %v4279_v52 = vmul.f32 %v3029_v26, %v8399_v7  ;;  %v4295_v3 = vmul.f32 %v3029_v26, %v8423_v41  ;;  %v4281_v0 = vmul.f32 %v3037_v61, %v8405_v46  ;;  %v4297_v17 = vmul.f32 %v3037_v61, %v8693_v33 }
 0x1b8   : > { %v4278_v55 = vmul.f32 %v3025_v21, %v8396_v11  ;;  %v4294_v1 = vmul.f32 %v3025_v21, %v8420_v9  ;;  %v4280_v58 = vmul.f32 %v3033_v49, %v8402_v8  ;;  %v4296_v16 = vmul.f32 %v3033_v49, %v8689_v51 }
 0x1b9   : > { %vm1159_vm1 = vcmp.eq.s32.totalorder %v10162_v47, %v8445_v22  ;;  %v4803_v28 = vpack.c.bf16 %v4295_v3, %v4279_v52  ;;  %v4805_v59 = vpack.c.bf16 %v4297_v17, %v4281_v0  ;;  %v4311_v43 = vmul.f32 %v3093_v10, %v8399_v7 }
 0x1ba   : > { %v4327_v29 = vmul.f32 %v3093_v10, %v8423_v41  ;;  %v4802_v18 = vpack.c.bf16 %v4294_v1, %v4278_v55  ;;  %v4804_v32 = vpack.c.bf16 %v4296_v16, %v4280_v58  ;;  %v4313_v48 = vmul.f32 %v3101_v12, %v8405_v46 }
 0x1bb   : > { %v4329_v31 = vmul.f32 %v3101_v12, %v8693_v33  ;;  %5262 = vmatprep.subr.bf16.mxu0 %v4803_v28  ;;  %5315 = vmatprep.subr.bf16.mxu1 %v4805_v59  ;;  %v4310_v4 = vmul.f32 %v3089_v39, %v8396_v11  ;;  %v4326_v57 = vmul.f32 %v3089_v39, %v8420_v9 }
 0x1bc   : > { %v4819_v20 = vpack.c.bf16 %v4327_v29, %v4311_v43  ;;  %vm1160_vm2 = vcmp.eq.s32.totalorder %v10162_v47, %v8448_v15  ;;  %5263 = vmatpush1.bf16.msra.mxu0 %v4802_v18  ;;  %5316 = vmatpush1.bf16.msra.mxu1 %v4804_v32  ;;  %v4312_v61 = vmul.f32 %v3097_v60, %v8402_v8  ;;  %v8800_v43 = vsel %vm1158_vm0, %v8498_v6, 0.0 }
 0x1bd   : > { %v4821_v26 = vpack.c.bf16 %v4329_v31, %v4313_v48  ;;  %v4328_v21 = vmul.f32 %v3097_v60, %v8689_v51  ;;  %v4818_v49 = vpack.c.bf16 %v4326_v57, %v4310_v4  ;;  %v3157_v10 = vrot.slane %v8725_v14, %v6706_v40 }
 0x1be   : > { %5264 = vmatprep.subr.bf16.mxu0 %v4819_v20  ;;  %v3165_v12 = vrot.slane %v8725_v14, %v10200_v13  ;;  %v3153_v39 = vrot.slane %v8725_v14, %v10201_v50  ;;  %v3161_v3 = vrot.slane %v8725_v14, %v10202_v5  ;;  %v3221_v0 = vrot.slane %v8727_v25, %v6706_v40 }
 0x1bf   : > { %5317 = vmatprep.subr.bf16.mxu1 %v4821_v26  ;;  %v4820_v52 = vpack.c.bf16 %v4328_v21, %v4312_v61  ;;  %v3229_v60 = vrot.slane %v8727_v25, %v10200_v13  ;;  %vm1161_vm3 = vcmp.eq.s32.totalorder %v10162_v47, %v8451_v56  ;;  %v4343_v17 = vmul.f32 %v3157_v10, %v8399_v7 }
 0x1c0   : > { %v4359_v55 = vmul.f32 %v3157_v10, %v8423_v41  ;;  %v4345_v1 = vmul.f32 %v3165_v12, %v8405_v46  ;;  %v4361_v58 = vmul.f32 %v3165_v12, %v8693_v33  ;;  %5265 = vmatpush1.bf16.msra.mxu0 %v4818_v49  ;;  %v4342_v16 = vmul.f32 %v3153_v39, %v8396_v11 }
 0x1c1   : > { %5318 = vmatpush1.bf16.msra.mxu1 %v4820_v52  ;;  %v4358_v28 = vmul.f32 %v3153_v39, %v8420_v9  ;;  %v4344_v59 = vmul.f32 %v3161_v3, %v8402_v8  ;;  %v4360_v32 = vmul.f32 %v3161_v3, %v8689_v51  ;;  %v4375_v48 = vmul.f32 %v3221_v0, %v8399_v7 }
 0x1c2   : > { %v4835_v29 = vpack.c.bf16 %v4359_v55, %v4343_v17  ;;  %v4837_v18 = vpack.c.bf16 %v4361_v58, %v4345_v1  ;;  %v4391_v20 = vmul.f32 %v3221_v0, %v8423_v41  ;;  %v4377_v4 = vmul.f32 %v3229_v60, %v8405_v46 }
 0x1c3   : > { %v4834_v31 = vpack.c.bf16 %v4358_v28, %v4342_v16  ;;  %v4393_v57 = vmul.f32 %v3229_v60, %v8693_v33  ;;  %v4836_v26 = vpack.c.bf16 %v4360_v32, %v4344_v59  ;;  %v3217_v19 = vrot.slane %v8727_v25, %v10201_v50 }
 0x1c4   : > { %5266 = vmatprep.subr.bf16.mxu0 %v4835_v29  ;;  %5319 = vmatprep.subr.bf16.mxu1 %v4837_v18  ;;  %v3225_v6 = vrot.slane %v8727_v25, %v10202_v5  ;;  %vm1162_vm4 = vcmp.eq.s32.totalorder %v10162_v47, %v8454_v36  ;;  %v8817_v61 = vsel %vm1159_vm1, %v8501_v53, 0.0  ;;  %v4851_v21 = vpack.c.bf16 %v4391_v20, %v4375_v48  ;;  %v10203_v48 = vld [vmem:[#allocation67_spill] sm:$0xff] }
 0x1c5   : > { %5267 = vmatpush1.bf16.msra.mxu0 %v4834_v31  ;;  %v4853_v49 = vpack.c.bf16 %v4393_v57, %v4377_v4  ;;  %v3285_v10 = vrot.slane %v8729_v30, %v6706_v40  ;;  %v3293_v12 = vrot.slane %v8729_v30, %v10200_v13  ;;  %5320 = vmatpush1.bf16.msra.mxu1 %v4836_v26  ;;  %v8834_v17 = vsel %vm1160_vm2, %v8504_v45, 0.0 }
 0x1c6   : > { %v4374_v39 = vmul.f32 %v3217_v19, %v8396_v11  ;;  %v4390_v52 = vmul.f32 %v3217_v19, %v8420_v9  ;;  %v4376_v3 = vmul.f32 %v3225_v6, %v8402_v8  ;;  %v4392_v22 = vmul.f32 %v3225_v6, %v8689_v51  ;;  %5268 = vmatprep.subr.bf16.mxu0 %v4851_v21 }
 0x1c7   : > { %5321 = vmatprep.subr.bf16.mxu1 %v4853_v49  ;;  %v4407_v53 = vmul.f32 %v3285_v10, %v8399_v7  ;;  %v4423_v0 = vmul.f32 %v3285_v10, %v8423_v41  ;;  %v4409_v60 = vmul.f32 %v3293_v12, %v8405_v46  ;;  %v4425_v58 = vmul.f32 %v3293_v12, %v8693_v33 }
 0x1c8   : > { %v4850_v55 = vpack.c.bf16 %v4390_v52, %v4374_v39  ;;  %v4852_v1 = vpack.c.bf16 %v4392_v22, %v4376_v3  ;;  %v3281_v16 = vrot.slane %v8729_v30, %v10201_v50  ;;  %v3289_v59 = vrot.slane %v8729_v30, %v10202_v5 }
 0x1c9   : > { %v4867_v28 = vpack.c.bf16 %v4423_v0, %v4407_v53  ;;  %v3349_v29 = vrot.slane %v8731_v24, %v6706_v40  ;;  %v3357_v18 = vrot.slane %v8731_v24, %v10200_v13  ;;  %vm1163_vm5 = vcmp.eq.s32.totalorder %v10162_v47, %v8457_v54  ;;  %v10207_v54 = vld [vmem:[#allocation66_spill] sm:$0xff] }
 0x1ca   : > { %5269 = vmatpush1.bf16.msra.mxu0 %v4850_v55  ;;  %5322 = vmatpush1.bf16.msra.mxu1 %v4852_v1  ;;  %v4869_v15 = vpack.c.bf16 %v4425_v58, %v4409_v60  ;;  %v4406_v45 = vmul.f32 %v3281_v16, %v8396_v11  ;;  %v4422_v32 = vmul.f32 %v3281_v16, %v8420_v9  ;;  %v8853_v31 = vsel %vm1161_vm3, %v10203_v48, 0.0  ;;  %v10204_v1 = vld [vmem:[#allocation68_spill] sm:$0xff] }
 0x1cb   : > { %5270 = vmatprep.subr.bf16.mxu0 %v4867_v28  ;;  %v4408_v20 = vmul.f32 %v3289_v59, %v8402_v8  ;;  %v4424_v4 = vmul.f32 %v3289_v59, %v8689_v51  ;;  %v4439_v57 = vmul.f32 %v3349_v29, %v8399_v7  ;;  %v4455_v26 = vmul.f32 %v3349_v29, %v8423_v41 }
 0x1cc   : > { %5323 = vmatprep.subr.bf16.mxu1 %v4869_v15  ;;  %v4866_v19 = vpack.c.bf16 %v4422_v32, %v4406_v45  ;;  %v4441_v6 = vmul.f32 %v3357_v18, %v8405_v46  ;;  %v4457_v21 = vmul.f32 %v3357_v18, %v8693_v33  ;;  %v3345_v56 = vrot.slane %v8731_v24, %v10201_v50 }
 0x1cd   : > { %v4868_v49 = vpack.c.bf16 %v4424_v4, %v4408_v20  ;;  %v4883_v10 = vpack.c.bf16 %v4455_v26, %v4439_v57  ;;  %v3353_v12 = vrot.slane %v8731_v24, %v10202_v5  ;;  %v3413_v39 = vrot.slane %v8733_v27, %v6706_v40 }
 0x1ce   : > { %5271 = vmatpush1.bf16.msra.mxu0 %v4866_v19  ;;  %v4885_v52 = vpack.c.bf16 %v4457_v21, %v4441_v6  ;;  %v4438_v3 = vmul.f32 %v3345_v56, %v8396_v11  ;;  %v4454_v22 = vmul.f32 %v3345_v56, %v8420_v9  ;;  %v3421_v53 = vrot.slane %v8733_v27, %v10200_v13 }
 0x1cf   : > { %5324 = vmatpush1.bf16.msra.mxu1 %v4868_v49  ;;  %5272 = vmatprep.subr.bf16.mxu0 %v4883_v10  ;;  %v4440_v0 = vmul.f32 %v3353_v12, %v8402_v8  ;;  %v4456_v60 = vmul.f32 %v3353_v12, %v8689_v51  ;;  %v4471_v55 = vmul.f32 %v3413_v39, %v8399_v7  ;;  %v8878_v58 = vsel %vm1162_vm4, %v10204_v1, 0.0  ;;  %v10205_v10 = vld [vmem:[#allocation69_spill] sm:$0xff] }
 0x1d0   : > { %5325 = vmatprep.subr.bf16.mxu1 %v4885_v52  ;;  %v4882_v16 = vpack.c.bf16 %v4454_v22, %v4438_v3  ;;  %v4487_v28 = vmul.f32 %v3413_v39, %v8423_v41  ;;  %v4473_v59 = vmul.f32 %v3421_v53, %v8405_v46  ;;  %v4489_v29 = vmul.f32 %v3421_v53, %v8693_v33 }
 0x1d1   : > { %v4884_v18 = vpack.c.bf16 %v4456_v60, %v4440_v0  ;;  %v3409_v15 = vrot.slane %v8733_v27, %v10201_v50  ;;  %v3417_v45 = vrot.slane %v8733_v27, %v10202_v5  ;;  %v3477_v36 = vrot.slane %v8735_v62, %v6706_v40 }
 0x1d2   : > { %5273 = vmatpush1.bf16.msra.mxu0 %v4882_v16  ;;  %v4899_v32 = vpack.c.bf16 %v4487_v28, %v4471_v55  ;;  %v4901_v48 = vpack.c.bf16 %v4489_v29, %v4473_v59  ;;  %v3485_v20 = vrot.slane %v8735_v62, %v10200_v13  ;;  %v3473_v4 = vrot.slane %v8735_v62, %v10201_v50  ;;  %v10206_v55 = vld [vmem:[#allocation65_spill] sm:$0xff]  ;;  %v10208_v16 = vld [vmem:[#allocation70_spill] sm:$0xff]  ;;  %v10209_v59 = vld [vmem:[#allocation72_spill] sm:$0xff] }
 0x1d3   : > { %5326 = vmatpush1.bf16.msra.mxu1 %v4884_v18  ;;  %v4470_v57 = vmul.f32 %v3409_v15, %v8396_v11  ;;  %v4486_v26 = vmul.f32 %v3409_v15, %v8420_v9  ;;  %v4472_v19 = vmul.f32 %v3417_v45, %v8402_v8  ;;  %v4488_v6 = vmul.f32 %v3417_v45, %v8689_v51  ;;  %v10210_v45 = vld [vmem:[#allocation71_spill] sm:$0xff] }
 0x1d4   : > { %5274 = vmatprep.subr.bf16.mxu0 %v4899_v32  ;;  %5327 = vmatprep.subr.bf16.mxu1 %v4901_v48  ;;  %v4503_v21 = vmul.f32 %v3477_v36, %v8399_v7  ;;  %v4519_v56 = vmul.f32 %v3477_v36, %v8423_v41  ;;  %v4505_v49 = vmul.f32 %v3485_v20, %v8405_v46  ;;  %v1339_v12 = vsel %vm1163_vm5, %v10205_v10, 0.0  ;;  %v10211_v32 = vld [vmem:[#allocation73_spill] sm:$0xff]  ;;  %v10212_v48 = vld [vmem:[#allocation74_spill] sm:$0xff] }
 0x1d5   : > { %v4898_v39 = vpack.c.bf16 %v4486_v26, %v4470_v57  ;;  %v4900_v52 = vpack.c.bf16 %v4488_v6, %v4472_v19  ;;  %v4521_v3 = vmul.f32 %v3485_v20, %v8693_v33  ;;  %v4502_v22 = vmul.f32 %v3473_v4, %v8396_v11  ;;  %v10213_v20 = vld [vmem:[#allocation75_spill] sm:$0xff]  ;;  %v10215_v26 = vld [vmem:[#allocation77_spill] sm:$0xff]  ;;  %v10216_v19 = vld [vmem:[#allocation78_spill] sm:$0xff] }
 0x1d6   : > { %v4915_v53 = vpack.c.bf16 %v4519_v56, %v4503_v21  ;;  %v4518_v0 = vmul.f32 %v3473_v4, %v8420_v9  ;;  %v3481_v60 = vrot.slane %v8735_v62, %v10202_v5  ;;  %vm1164_vm6 = vcmp.eq.s32.totalorder %v10162_v47, %v10206_v55  ;;  %v10214_v4 = vld [vmem:[#allocation76_spill] sm:$0xff]  ;;  %v10217_v6 = vld [vmem:[#allocation79_spill] sm:$0xff]  ;;  %v10219_v10 = vld [vmem:[#allocation81_spill] sm:$0xff] }
 0x1d7   : > { %5275 = vmatpush1.bf16.msra.mxu0 %v4898_v39  ;;  %5328 = vmatpush1.bf16.msra.mxu1 %v4900_v52  ;;  %v4917_v1 = vpack.c.bf16 %v4521_v3, %v4505_v49  ;;  %vm1165_vm7 = vcmp.eq.s32.totalorder %v10162_v47, %v10207_v54  ;;  %v1340_v28 = vsel %vm1164_vm6, %v10208_v16, 0.0  ;;  %vm1494_vm8 = vcmp.eq.s32.totalorder %v10162_v47, %v10209_v59  ;;  %v10218_v56 = vld [vmem:[#allocation80_spill] sm:$0xff]  ;;  %v10220_v52 = vld [vmem:[#allocation82_spill] sm:$0xff]  ;;  %v10223_v55 = vld [vmem:[#allocation85_spill] sm:$0xff] }
 0x1d8   : > { %5276 = vmatprep.subr.bf16.mxu0 %v4915_v53  ;;  %v4914_v29 = vpack.c.bf16 %v4518_v0, %v4502_v22  ;;  %v4504_v18 = vmul.f32 %v3481_v60, %v8402_v8  ;;  %v4520_v15 = vmul.f32 %v3481_v60, %v8689_v51  ;;  %v1341_v36 = vsel %vm1165_vm7, %v10210_v45, 0.0  ;;  %v10221_v22 = vld [vmem:[#allocation83_spill] sm:$0xff]  ;;  %v10222_v0 = vld [vmem:[#allocation84_spill] sm:$0xff] }
 0x1d9   : > { %5329 = vmatprep.subr.bf16.mxu1 %v4917_v1  ;;  %vm1495_vm9 = vcmp.eq.s32.totalorder %v10162_v47, %v10211_v32  ;;  %vm1496_vm10 = vcmp.eq.s32.totalorder %v10162_v47, %v10212_v48  ;;  %vm1497_vm11 = vcmp.eq.s32.totalorder %v10162_v47, %v10213_v20  ;;  %vm1498_vm12 = vcmp.eq.s32.totalorder %v10162_v47, %v10214_v4 }
 0x1da   : > { %v4916_v57 = vpack.c.bf16 %v4520_v15, %v4504_v18  ;;  %vm1499_vm13 = vcmp.eq.s32.totalorder %v10162_v47, %v10215_v26  ;;  %vm1500_vm14 = vcmp.eq.s32.totalorder %v10162_v47, %v10216_v19  ;;  %vm1501_vm15 = vcmp.eq.s32.totalorder %v10162_v47, %v8591_v44 }
 0x1db   : > { %5277 = vmatpush1.bf16.msra.mxu0 %v4914_v29  ;;  %v1670_v21 = vsel %vm1494_vm8, %v10217_v6, 0.0  ;;  %v1671_v49 = vsel %vm1495_vm9, %v10218_v56, 0.0  ;;  %v1672_v39 = vsel %vm1496_vm10, %v10219_v10, 0.0  ;;  %v1673_v3 = vsel %vm1497_vm11, %v10220_v52, 0.0 }
 0x1dc   : > { %5330 = vmatpush1.bf16.msra.mxu1 %v4916_v57  ;;  %v1674_v53 = vsel %vm1498_vm12, %v10221_v22, 0.0  ;;  %v1675_v60 = vsel %vm1499_vm13, %v10222_v0, 0.0  ;;  %v1676_v1 = vsel %vm1500_vm14, %v10223_v55, 0.0  ;;  %v1677_v44 = vsel %vm1501_vm15, %v8647_v2, 0.0 }
 0x1dd   : > { %v1702_v54 = vadd.f32 %v1670_v21, %v8800_v43  ;;  %v1703_v16 = vadd.f32 %v1671_v49, %v8817_v61  ;;  %v1704_v59 = vadd.f32 %v1672_v39, %v8834_v17  ;;  %v1705_v29 = vadd.f32 %v1673_v3, %v8853_v31 }
 0x1de   : > { %v1706_v18 = vadd.f32 %v1674_v53, %v8878_v58  ;;  %v1707_v15 = vadd.f32 %v1675_v60, %v1339_v12  ;;  %v1708_v45 = vadd.f32 %v1676_v1, %v1340_v28  ;;  %v1709_v32 = vadd.f32 %v1677_v44, %v1341_v36 }
 0x1df   : > { %v2854_v48 = vcombine.low %v1702_v54, %v1703_v16  ;;  %v2856_v20 = vcombine.low %v1704_v59, %v1705_v29  ;;  %v2855_v4 = vcombine.high %v1702_v54, %v1703_v16  ;;  %v2857_v57 = vcombine.high %v1704_v59, %v1705_v29  ;;  %v10224_v59 = vld [vmem:[#allocation24_spill] sm:$0xff] }
 0x1e0   : > { %v2858_v26 = vcombine.low %v1706_v18, %v1707_v15  ;;  %v2860_v19 = vcombine.low %v1708_v45, %v1709_v32  ;;  %v2859_v2 = vcombine.high %v1706_v18, %v1707_v15  ;;  %v2861_v6 = vcombine.high %v1708_v45, %v1709_v32  ;;  %v10225_v18 = vld [vmem:[#allocation38_spill] sm:$0xff]  ;;  %v10226_v45 = vld [vmem:[#allocation16_spill] sm:$0xff] }
 0x1e1   : > { %v2868_v43 = vrot.slane %v2854_v48, %v10197_v63  ;;  %v2882_v61 = vrot.slane %v2856_v20, %v10197_v63  ;;  %v2875_v17 = vrot.slane %v2855_v4, %v10197_v63  ;;  %v2889_v31 = vrot.slane %v2857_v57, %v10197_v63  ;;  %v10227_v48 = vld [vmem:[#allocation39_spill] sm:$0xff] }
 0x1e2   : > { %v2896_v58 = vrot.slane %v2858_v26, %v10197_v63  ;;  %v2910_v12 = vrot.slane %v2860_v19, %v10197_v63  ;;  %v2903_v28 = vrot.slane %v2859_v2, %v10197_v63  ;;  %v2917_v36 = vrot.slane %v2861_v6, %v10197_v63 }
 0x1e3   : > { %v2918_v21 = vcombine.low %v2868_v43, %v2882_v61  ;;  %v2919_v56 = vcombine.high %v2868_v43, %v2882_v61  ;;  %v2920_v49 = vcombine.low %v2875_v17, %v2889_v31  ;;  %v2921_v10 = vcombine.high %v2875_v17, %v2889_v31 }
 0x1e4   : > { %v2922_v39 = vcombine.low %v2896_v58, %v2910_v12  ;;  %v2923_v52 = vcombine.high %v2896_v58, %v2910_v12  ;;  %v2924_v3 = vcombine.low %v2903_v28, %v2917_v36  ;;  %v2925_v22 = vcombine.high %v2903_v28, %v2917_v36 }
 0x1e5   : > { %v2932_v53 = vrot.slane %v2918_v21, %v10197_v63  ;;  %v2946_v0 = vrot.slane %v2919_v56, %v10197_v63  ;;  %v2939_v60 = vrot.slane %v2920_v49, %v10197_v63  ;;  %v2953_v55 = vrot.slane %v2921_v10, %v10197_v63 }
 0x1e6   : > { %v2960_v1 = vrot.slane %v2922_v39, %v10197_v63  ;;  %v2974_v44 = vrot.slane %v2923_v52, %v10197_v63  ;;  %v2967_v54 = vrot.slane %v2924_v3, %v10197_v63  ;;  %v2981_v16 = vrot.slane %v2925_v22, %v10197_v63 }
 0x1e7   : > { %v8967_v29 = vrot.slane %v8721_v35, %v10224_v59  ;;  %v8971_v15 = vrot.slane %v8721_v35, %v10225_v18  ;;  %v8975_v32 = vrot.slane %v8721_v35, %v10226_v45  ;;  %v8979_v20 = vrot.slane %v8721_v35, %v10227_v48 }
 0x1e8   : > { %v8981_v4 = vcombine.low %v2932_v53, %v2960_v1  ;;  %v8983_v57 = vcombine.low %v2946_v0, %v2974_v44  ;;  %v8985_v63 = vcombine.high %v2932_v53, %v2960_v1  ;;  %v8987_v26 = vcombine.high %v2946_v0, %v2974_v44 }
 0x1e9   : > { %v8989_v19 = vcombine.low %v2939_v60, %v2967_v54  ;;  %v8991_v2 = vcombine.low %v2953_v55, %v2981_v16  ;;  %v8993_v6 = vcombine.high %v2939_v60, %v2967_v54  ;;  %v8995_v43 = vcombine.high %v2953_v55, %v2981_v16 }
 0x1ea   : > { %v3541_v35 = vrot.slane %v8981_v4, %v6706_v40  ;;  %v3549_v61 = vrot.slane %v8981_v4, %v10200_v13  ;;  %v3537_v17 = vrot.slane %v8981_v4, %v10201_v50  ;;  %v3545_v31 = vrot.slane %v8981_v4, %v10202_v5 }
 0x1eb   : > { %v3605_v58 = vrot.slane %v8983_v57, %v6706_v40  ;;  %v3613_v12 = vrot.slane %v8983_v57, %v10200_v13  ;;  %v3601_v28 = vrot.slane %v8983_v57, %v10201_v50  ;;  %v3609_v36 = vrot.slane %v8983_v57, %v10202_v5 }
 0x1ec   : > { %v4535_v21 = vmul.f32 %v3541_v35, %v8399_v7  ;;  %v4551_v56 = vmul.f32 %v3541_v35, %v8423_v41  ;;  %v4537_v49 = vmul.f32 %v3549_v61, %v8405_v46  ;;  %v4553_v10 = vmul.f32 %v3549_v61, %v8693_v33 }
 0x1ed   : > { %v4534_v39 = vmul.f32 %v3537_v17, %v8396_v11  ;;  %v4550_v52 = vmul.f32 %v3537_v17, %v8420_v9  ;;  %v4536_v3 = vmul.f32 %v3545_v31, %v8402_v8  ;;  %v4552_v22 = vmul.f32 %v3545_v31, %v8689_v51 }
 0x1ee   : > { %v4931_v53 = vpack.c.bf16 %v4551_v56, %v4535_v21  ;;  %v4933_v0 = vpack.c.bf16 %v4553_v10, %v4537_v49  ;;  %v4567_v60 = vmul.f32 %v3605_v58, %v8399_v7  ;;  %v4583_v55 = vmul.f32 %v3605_v58, %v8423_v41 }
 0x1ef   : > { %v4930_v1 = vpack.c.bf16 %v4550_v52, %v4534_v39  ;;  %v4932_v44 = vpack.c.bf16 %v4552_v22, %v4536_v3  ;;  %v4569_v54 = vmul.f32 %v3613_v12, %v8405_v46  ;;  %v4585_v16 = vmul.f32 %v3613_v12, %v8693_v33 }
 0x1f0   : > { %5278 = vmatprep.subr.bf16.mxu0 %v4931_v53  ;;  %5331 = vmatprep.subr.bf16.mxu1 %v4933_v0  ;;  %v4947_v35 = vpack.c.bf16 %v4583_v55, %v4567_v60  ;;  %v4566_v61 = vmul.f32 %v3601_v28, %v8396_v11  ;;  %v4582_v17 = vmul.f32 %v3601_v28, %v8420_v9 }
 0x1f1   : > { %5279 = vmatpush1.bf16.msra.mxu0 %v4930_v1  ;;  %5332 = vmatpush1.bf16.msra.mxu1 %v4932_v44  ;;  %v4949_v31 = vpack.c.bf16 %v4585_v16, %v4569_v54  ;;  %v4568_v21 = vmul.f32 %v3609_v36, %v8402_v8  ;;  %v4584_v58 = vmul.f32 %v3609_v36, %v8689_v51 }
 0x1f2   : > { %5280 = vmatprep.subr.bf16.mxu0 %v4947_v35  ;;  %v4946_v56 = vpack.c.bf16 %v4582_v17, %v4566_v61  ;;  %v3669_v49 = vrot.slane %v8985_v63, %v6706_v40  ;;  %v3677_v12 = vrot.slane %v8985_v63, %v10200_v13  ;;  %v3665_v10 = vrot.slane %v8985_v63, %v10201_v50 }
 0x1f3   : > { %5333 = vmatprep.subr.bf16.mxu1 %v4949_v31  ;;  %v4948_v28 = vpack.c.bf16 %v4584_v58, %v4568_v21  ;;  %v3673_v39 = vrot.slane %v8985_v63, %v10202_v5  ;;  %v3733_v52 = vrot.slane %v8987_v26, %v6706_v40  ;;  %v3741_v36 = vrot.slane %v8987_v26, %v10200_v13 }
 0x1f4   : > { %v4599_v3 = vmul.f32 %v3669_v49, %v8399_v7  ;;  %v4615_v22 = vmul.f32 %v3669_v49, %v8423_v41  ;;  %v4601_v53 = vmul.f32 %v3677_v12, %v8405_v46  ;;  %v4617_v0 = vmul.f32 %v3677_v12, %v8693_v33 }
 0x1f5   : > { %5281 = vmatpush1.bf16.msra.mxu0 %v4946_v56  ;;  %5334 = vmatpush1.bf16.msra.mxu1 %v4948_v28  ;;  %v4598_v60 = vmul.f32 %v3665_v10, %v8396_v11  ;;  %v4614_v55 = vmul.f32 %v3665_v10, %v8420_v9  ;;  %v4600_v1 = vmul.f32 %v3673_v39, %v8402_v8 }
 0x1f6   : > { %v4963_v44 = vpack.c.bf16 %v4615_v22, %v4599_v3  ;;  %v4965_v54 = vpack.c.bf16 %v4617_v0, %v4601_v53  ;;  %v4616_v16 = vmul.f32 %v3673_v39, %v8689_v51  ;;  %v4631_v35 = vmul.f32 %v3733_v52, %v8399_v7 }
 0x1f7   : > { %v4962_v61 = vpack.c.bf16 %v4614_v55, %v4598_v60  ;;  %v4647_v17 = vmul.f32 %v3733_v52, %v8423_v41  ;;  %v4633_v31 = vmul.f32 %v3741_v36, %v8405_v46  ;;  %v4649_v21 = vmul.f32 %v3741_v36, %v8693_v33 }
 0x1f8   : > { %5282 = vmatprep.subr.bf16.mxu0 %v4963_v44  ;;  %5335 = vmatprep.subr.bf16.mxu1 %v4965_v54  ;;  %v4964_v58 = vpack.c.bf16 %v4616_v16, %v4600_v1  ;;  %v3729_v56 = vrot.slane %v8987_v26, %v10201_v50  ;;  %v3737_v49 = vrot.slane %v8987_v26, %v10202_v5 }
 0x1f9   : > { %5283 = vmatpush1.bf16.msra.mxu0 %v4962_v61  ;;  %v4979_v12 = vpack.c.bf16 %v4647_v17, %v4631_v35  ;;  %v4981_v10 = vpack.c.bf16 %v4649_v21, %v4633_v31  ;;  %v3797_v28 = vrot.slane %v8989_v19, %v6706_v40  ;;  %v3805_v39 = vrot.slane %v8989_v19, %v10200_v13 }
 0x1fa   : > { %5336 = vmatpush1.bf16.msra.mxu1 %v4964_v58  ;;  %v4630_v52 = vmul.f32 %v3729_v56, %v8396_v11  ;;  %v4646_v36 = vmul.f32 %v3729_v56, %v8420_v9  ;;  %v4632_v3 = vmul.f32 %v3737_v49, %v8402_v8  ;;  %v4648_v22 = vmul.f32 %v3737_v49, %v8689_v51  ;;  %v9079_v56 = vpop.f32.mrb[0].mxu0 }
 0x1fb   : > { %5284 = vmatprep.subr.bf16.mxu0 %v4979_v12  ;;  %5337 = vmatprep.subr.bf16.mxu1 %v4981_v10  ;;  %v4663_v53 = vmul.f32 %v3797_v28, %v8399_v7  ;;  %v4679_v0 = vmul.f32 %v3797_v28, %v8423_v41  ;;  %v4665_v60 = vmul.f32 %v3805_v39, %v8405_v46 }
 0x1fc   : > { %v4978_v55 = vpack.c.bf16 %v4646_v36, %v4630_v52  ;;  %v4980_v1 = vpack.c.bf16 %v4648_v22, %v4632_v3  ;;  %v4681_v44 = vmul.f32 %v3805_v39, %v8693_v33  ;;  %v3793_v54 = vrot.slane %v8989_v19, %v10201_v50  ;;  %v9085_v39 = vpop.f32.mrb[0].mxu1  ;;  %v9087_v52 = vpop.f32.mrb[1].mxu0 }
 0x1fd   : > { %v4995_v16 = vpack.c.bf16 %v4679_v0, %v4663_v53  ;;  %v3801_v35 = vrot.slane %v8989_v19, %v10202_v5  ;;  %v3861_v61 = vrot.slane %v8991_v2, %v6706_v40  ;;  %v3869_v17 = vrot.slane %v8991_v2, %v10200_v13  ;;  %v9093_v0 = vpop.f32.mrb[1].mxu1 }
 0x1fe   : > { %5285 = vmatpush1.bf16.msra.mxu0 %v4978_v55  ;;  %5338 = vmatpush1.bf16.msra.mxu1 %v4980_v1  ;;  %v4997_v31 = vpack.c.bf16 %v4681_v44, %v4665_v60  ;;  %v4662_v21 = vmul.f32 %v3793_v54, %v8396_v11  ;;  %v4678_v58 = vmul.f32 %v3793_v54, %v8420_v9  ;;  %v9095_v60 = vpop.f32.mrb[2].mxu0 }
 0x1ff   : > { %5286 = vmatprep.subr.bf16.mxu0 %v4995_v16  ;;  %v4664_v49 = vmul.f32 %v3801_v35, %v8402_v8  ;;  %v4680_v12 = vmul.f32 %v3801_v35, %v8689_v51  ;;  %v4695_v10 = vmul.f32 %v3861_v61, %v8399_v7  ;;  %v4711_v28 = vmul.f32 %v3861_v61, %v8423_v41  ;;  %v9101_v16 = vpop.f32.mrb[2].mxu1  ;;  %v9103_v35 = vpop.f32.mrb[3].mxu0 }
 0x200   : > { %5339 = vmatprep.subr.bf16.mxu1 %v4997_v31  ;;  %v4994_v36 = vpack.c.bf16 %v4678_v58, %v4662_v21  ;;  %v4697_v3 = vmul.f32 %v3869_v17, %v8405_v46  ;;  %v4713_v22 = vmul.f32 %v3869_v17, %v8693_v33  ;;  %v3857_v53 = vrot.slane %v8991_v2, %v10201_v50  ;;  %v9109_v58 = vpop.f32.mrb[3].mxu1 }
 0x201   : > { %v4996_v55 = vpack.c.bf16 %v4680_v12, %v4664_v49  ;;  %v5011_v1 = vpack.c.bf16 %v4711_v28, %v4695_v10  ;;  %v3865_v44 = vrot.slane %v8991_v2, %v10202_v5  ;;  %v3925_v54 = vrot.slane %v8993_v6, %v6706_v40  ;;  %10228 = vst [vmem:[#allocation25_spill] sm:$0xff] %v9103_v35 }
 0x202   : > { %5287 = vmatpush1.bf16.msra.mxu0 %v4994_v36  ;;  %v5013_v61 = vpack.c.bf16 %v4713_v22, %v4697_v3  ;;  %v4694_v17 = vmul.f32 %v3857_v53, %v8396_v11  ;;  %v4710_v31 = vmul.f32 %v3857_v53, %v8420_v9  ;;  %v3933_v21 = vrot.slane %v8993_v6, %v10200_v13 }
 0x203   : > { %10229 = vst [vmem:[#allocation42_spill] sm:$0xff] %v9109_v58  ;;  %5340 = vmatpush1.bf16.msra.mxu1 %v4996_v55  ;;  %5288 = vmatprep.subr.bf16.mxu0 %v5011_v1  ;;  %v4696_v49 = vmul.f32 %v3865_v44, %v8402_v8  ;;  %v4712_v12 = vmul.f32 %v3865_v44, %v8689_v51 }
 0x204   : > { %v4727_v10 = vmul.f32 %v3925_v54, %v8399_v7  ;;  %5341 = vmatprep.subr.bf16.mxu1 %v5013_v61  ;;  %v5010_v28 = vpack.c.bf16 %v4710_v31, %v4694_v17  ;;  %v4743_v36 = vmul.f32 %v3925_v54, %v8423_v41  ;;  %v4729_v3 = vmul.f32 %v3933_v21, %v8405_v46  ;;  %v9127_v31 = vpop.f32.mrb[4].mxu0 }
 0x205   : > { %v4745_v22 = vmul.f32 %v3933_v21, %v8693_v33  ;;  %v5012_v53 = vpack.c.bf16 %v4712_v12, %v4696_v49  ;;  %v3921_v58 = vrot.slane %v8993_v6, %v10201_v50  ;;  %v3929_v55 = vrot.slane %v8993_v6, %v10202_v5 }
 0x206   : > { %v3989_v1 = vrot.slane %v8995_v43, %v6706_v40  ;;  %5289 = vmatpush1.bf16.msra.mxu0 %v5010_v28  ;;  %v5027_v44 = vpack.c.bf16 %v4743_v36, %v4727_v10  ;;  %v3997_v54 = vrot.slane %v8995_v43, %v10200_v13  ;;  %v3985_v17 = vrot.slane %v8995_v43, %v10201_v50  ;;  %v9133_v28 = vpop.f32.mrb[4].mxu1  ;;  %v9135_v10 = vpop.f32.mrb[5].mxu0 }
 0x207   : > { %v5029_v61 = vpack.c.bf16 %v4745_v22, %v4729_v3  ;;  %5342 = vmatpush1.bf16.msra.mxu1 %v5012_v53  ;;  %v4726_v21 = vmul.f32 %v3921_v58, %v8396_v11  ;;  %v4742_v49 = vmul.f32 %v3921_v58, %v8420_v9  ;;  %v4728_v12 = vmul.f32 %v3929_v55, %v8402_v8  ;;  %v9140_v3 = vpop.f32.mrb[5].mxu1  ;;  %v9142_v22 = vpop.f32.mrb[6].mxu0 }
 0x208   : > { %v4744_v40 = vmul.f32 %v3929_v55, %v8689_v51  ;;  %10230 = vst [vmem:[#allocation44_spill] sm:$0xff] %v9133_v28  ;;  %5290 = vmatprep.subr.bf16.mxu0 %v5027_v44  ;;  %v4759_v13 = vmul.f32 %v3989_v1, %v8399_v7  ;;  %v4775_v50 = vmul.f32 %v3989_v1, %v8423_v41  ;;  %10231 = vst [vmem:[#allocation28_spill] sm:$0xff] %v9142_v22  ;;  %v9146_v28 = vpop.f32.mrb[6].mxu1  ;;  %v9148_v44 = vpop.f32.mrb[7].mxu0  ;;  %v10232_v41 = vld [vmem:[#allocation43_spill] sm:$0xff] }
 0x209   : > { %5343 = vmatprep.subr.bf16.mxu1 %v5029_v61  ;;  %v4761_v36 = vmul.f32 %v3997_v54, %v8405_v46  ;;  %v5026_v58 = vpack.c.bf16 %v4742_v49, %v4726_v21  ;;  %v4777_v55 = vmul.f32 %v3997_v54, %v8693_v33  ;;  %v4758_v35 = vmul.f32 %v3985_v17, %v8396_v11  ;;  %v9155_v22 = vpop.f32.mrb[7].mxu1  ;;  %v10233_v54 = vld [vmem:[#allocation64_spill] sm:$0xff] }
 0x20a   : > { %v5028_v53 = vpack.c.bf16 %v4744_v40, %v4728_v12  ;;  %v5043_v61 = vpack.c.bf16 %v4775_v50, %v4759_v13  ;;  %v4774_v7 = vmul.f32 %v3985_v17, %v8420_v9  ;;  %v3993_v46 = vrot.slane %v8995_v43, %v10202_v5  ;;  %v10234_v13 = vld [vmem:[#allocation41_spill] sm:$0xff] }
 0x20b   : > { %v4283_v1 = vmul.f32 %v8967_v29, %v10232_v41  ;;  %5291 = vmatpush1.bf16.msra.mxu0 %v5026_v58  ;;  %v5045_v33 = vpack.c.bf16 %v4777_v55, %v4761_v36  ;;  %v4299_v11 = vmul.f32 %v8967_v29, %v8711_v37  ;;  %v4285_v21 = vmul.f32 %v8971_v15, %v10233_v54  ;;  %v10235_v36 = vld [vmem:[#allocation21_spill] sm:$0xff] }
 0x20c   : > { %5344 = vmatpush1.bf16.msra.mxu1 %v5028_v53  ;;  %5292 = vmatprep.subr.bf16.mxu0 %v5043_v61  ;;  %v5042_v49 = vpack.c.bf16 %v4774_v7, %v4758_v35  ;;  %v4760_v9 = vmul.f32 %v3993_v46, %v8402_v8  ;;  %v4776_v17 = vmul.f32 %v3993_v46, %v8689_v51 }
 0x20d   : > { %v4301_v12 = vmul.f32 %v8971_v15, %v8719_v38  ;;  %5345 = vmatprep.subr.bf16.mxu1 %v5045_v33  ;;  %v4807_v40 = vpack.c.bf16 %v4299_v11, %v4283_v1  ;;  %v4282_v50 = vmul.f32 %v8975_v32, %v10234_v13  ;;  %v4298_v29 = vmul.f32 %v8975_v32, %v8707_v42 }
 0x20e   : > { %v4284_v58 = vmul.f32 %v8979_v20, %v10235_v36  ;;  %v5044_v53 = vpack.c.bf16 %v4776_v17, %v4760_v9  ;;  %v4300_v8 = vmul.f32 %v8979_v20, %v8715_v34  ;;  %v3109_v51 = vrot.slane %v8723_v23, %v10224_v59 }
 0x20f   : > { %v4809_v35 = vpack.c.bf16 %v4301_v12, %v4285_v21  ;;  %5293 = vmatpush1.bf16.msra.mxu0 %v5042_v49  ;;  %v4806_v15 = vpack.c.bf16 %v4298_v29, %v4282_v50  ;;  %v3117_v55 = vrot.slane %v8723_v23, %v10225_v18  ;;  %v3105_v61 = vrot.slane %v8723_v23, %v10226_v45  ;;  %v10236_v49 = vld [vmem:[#allocation45_spill] sm:$0xff] }
 0x210   : > { %v3113_v32 = vrot.slane %v8723_v23, %v10227_v48  ;;  %5346 = vmatpush1.bf16.msra.mxu1 %v5044_v53  ;;  %5368 = vmatprep.subr.bf16.mxu0 %v4807_v40  ;;  %v4808_v7 = vpack.c.bf16 %v4300_v8, %v4284_v58  ;;  %v4315_v46 = vmul.f32 %v3109_v51, %v10232_v41  ;;  %v10237_v8 = vld [vmem:[#allocation46_spill] sm:$0xff] }
 0x211   : > { %v4331_v20 = vmul.f32 %v3109_v51, %v8711_v37  ;;  %5421 = vmatprep.subr.bf16.mxu1 %v4809_v35  ;;  %v4317_v1 = vmul.f32 %v3117_v55, %v10233_v54  ;;  %v4333_v33 = vmul.f32 %v3117_v55, %v8719_v38  ;;  %v4314_v11 = vmul.f32 %v3105_v61, %v10234_v13 }
 0x212   : > { %v4330_v21 = vmul.f32 %v3105_v61, %v8707_v42  ;;  %5295 = vmatmul.mubr.bf16.vlgmr.msra.gmra.mrb[16].mxu0 %v10236_v49  ;;  %v4316_v23 = vmul.f32 %v3113_v32, %v10235_v36  ;;  %v4332_v17 = vmul.f32 %v3113_v32, %v8715_v34  ;;  %v3173_v12 = vrot.slane %v8725_v14, %v10224_v59 }
 0x213   : > { %v4823_v9 = vpack.c.bf16 %v4331_v20, %v4315_v46  ;;  %5348 = vmatmul.mubr.bf16.vlgmr.msra.gmra.mrb[16].mxu1 %v10236_v49  ;;  %5369 = vmatpush1.bf16.msra.mxu0 %v4806_v15  ;;  %v4825_v40 = vpack.c.bf16 %v4333_v33, %v4317_v1  ;;  %v3181_v29 = vrot.slane %v8725_v14, %v10225_v18 }
 0x214   : > { %v4822_v50 = vpack.c.bf16 %v4330_v21, %v4314_v11  ;;  %5422 = vmatpush1.bf16.msra.mxu1 %v4808_v7  ;;  %v4824_v58 = vpack.c.bf16 %v4332_v17, %v4316_v23  ;;  %v4347_v53 = vmul.f32 %v3173_v12, %v10232_v41  ;;  %v4363_v35 = vmul.f32 %v3173_v12, %v8711_v37 }
 0x215   : > { %5370 = vmatprep.subr.bf16.mxu0 %v4823_v9  ;;  %5423 = vmatprep.subr.bf16.mxu1 %v4825_v40  ;;  %v4349_v51 = vmul.f32 %v3181_v29, %v10233_v54  ;;  %v4365_v55 = vmul.f32 %v3181_v29, %v8719_v38  ;;  %v3169_v15 = vrot.slane %v8725_v14, %v10226_v45 }
 0x216   : > { %5304 = vmatprep.mubr.bf16.mxu0 %v10237_v8  ;;  %5357 = vmatprep.mubr.bf16.mxu1 %v10237_v8  ;;  %v4839_v61 = vpack.c.bf16 %v4363_v35, %v4347_v53  ;;  %v3177_v32 = vrot.slane %v8725_v14, %v10227_v48  ;;  %v3237_v7 = vrot.slane %v8727_v25, %v10224_v59 }
 0x217   : > { %v3245_v46 = vrot.slane %v8727_v25, %v10225_v18  ;;  %5371 = vmatpush1.bf16.msra.mxu0 %v4822_v50  ;;  %v4841_v20 = vpack.c.bf16 %v4365_v55, %v4349_v51  ;;  %v4346_v1 = vmul.f32 %v3169_v15, %v10234_v13  ;;  %v4362_v33 = vmul.f32 %v3169_v15, %v8707_v42  ;;  %v10238_v50 = vld [vmem:[#allocation47_spill] sm:$0xff] }
 0x218   : > { %v3233_v11 = vrot.slane %v8727_v25, %v10226_v45  ;;  %5424 = vmatpush1.bf16.msra.mxu1 %v4824_v58  ;;  %5372 = vmatprep.subr.bf16.mxu0 %v4839_v61  ;;  %v4348_v21 = vmul.f32 %v3177_v32, %v10235_v36  ;;  %v4364_v14 = vmul.f32 %v3177_v32, %v8715_v34 }
 0x219   : > { %v4379_v9 = vmul.f32 %v3237_v7, %v10232_v41  ;;  %5425 = vmatprep.subr.bf16.mxu1 %v4841_v20  ;;  %v4838_v23 = vpack.c.bf16 %v4362_v33, %v4346_v1  ;;  %v4395_v17 = vmul.f32 %v3237_v7, %v8711_v37  ;;  %v4381_v12 = vmul.f32 %v3245_v46, %v10233_v54 }
 0x21a   : > { %v4397_v40 = vmul.f32 %v3245_v46, %v8719_v38  ;;  %5305 = vmatmul.mubr.bf16.gmra.mrb[20].mxu0 %v10238_v50  ;;  %v4840_v29 = vpack.c.bf16 %v4364_v14, %v4348_v21  ;;  %v4378_v58 = vmul.f32 %v3233_v11, %v10234_v13  ;;  %v4394_v53 = vmul.f32 %v3233_v11, %v8707_v42 }
 0x21b   : > { %v3241_v35 = vrot.slane %v8727_v25, %v10227_v48  ;;  %5358 = vmatmul.mubr.bf16.gmra.mrb[20].mxu1 %v10238_v50  ;;  %5373 = vmatpush1.bf16.msra.mxu0 %v4838_v23  ;;  %v4855_v51 = vpack.c.bf16 %v4395_v17, %v4379_v9  ;;  %v3301_v15 = vrot.slane %v8729_v30, %v10224_v59  ;;  %v6432_v33 = vmov 1983009808   ;;  %v10239_v17 = vld [vmem:[#allocation40_spill] sm:$0xff] }
 0x21c   : > { %v4857_v55 = vpack.c.bf16 %v4397_v40, %v4381_v12  ;;  %5426 = vmatpush1.bf16.msra.mxu1 %v4840_v29  ;;  %v4854_v61 = vpack.c.bf16 %v4394_v53, %v4378_v58  ;;  %v3309_v46 = vrot.slane %v8729_v30, %v10225_v18  ;;  %v3297_v1 = vrot.slane %v8729_v30, %v10226_v45 }
 0x21d   : > { %v4380_v32 = vmul.f32 %v3241_v35, %v10235_v36  ;;  %v4396_v7 = vmul.f32 %v3241_v35, %v8715_v34  ;;  %5374 = vmatprep.subr.bf16.mxu0 %v4855_v51  ;;  %v4411_v25 = vmul.f32 %v3301_v15, %v10232_v41  ;;  %v4427_v20 = vmul.f32 %v3301_v15, %v8711_v37 }
 0x21e   : > { %5427 = vmatprep.subr.bf16.mxu1 %v4857_v55  ;;  %v9235_v11 = vunpack.c.l.s4 %v6432_v33  ;;  %v4413_v14 = vmul.f32 %v3309_v46, %v10233_v54  ;;  %v4429_v9 = vmul.f32 %v3309_v46, %v8719_v38  ;;  %v3305_v23 = vrot.slane %v8729_v30, %v10227_v48  ;;  %5400 = vmatprep.mubr.bf16.mxu0 %v10239_v17 }
 0x21f   : > { %v4856_v21 = vpack.c.bf16 %v4396_v7, %v4380_v32  ;;  %5375 = vmatpush1.bf16.msra.mxu0 %v4854_v61  ;;  %v4871_v12 = vpack.c.bf16 %v4427_v20, %v4411_v25  ;;  %v4410_v40 = vmul.f32 %v3297_v1, %v10234_v13  ;;  %v4426_v29 = vmul.f32 %v3297_v1, %v8707_v42 }
 0x220   : > { %v3365_v58 = vrot.slane %v8731_v24, %v10224_v59  ;;  %v4873_v53 = vpack.c.bf16 %v4429_v9, %v4413_v14  ;;  %v4412_v35 = vmul.f32 %v3305_v23, %v10235_v36  ;;  %v4428_v51 = vmul.f32 %v3305_v23, %v8715_v34  ;;  %5453 = vmatprep.mubr.bf16.mxu1 %v10239_v17 }
 0x221   : > { %5428 = vmatpush1.bf16.msra.mxu1 %v4856_v21  ;;  %v3373_v30 = vrot.slane %v8731_v24, %v10225_v18  ;;  %5376 = vmatprep.subr.bf16.mxu0 %v4871_v12  ;;  %v4870_v55 = vpack.c.bf16 %v4426_v29, %v4410_v40  ;;  %v3361_v32 = vrot.slane %v8731_v24, %v10226_v45 }
 0x222   : > { %v4443_v15 = vmul.f32 %v3365_v58, %v10232_v41  ;;  %v4459_v61 = vmul.f32 %v3365_v58, %v8711_v37  ;;  %5429 = vmatprep.subr.bf16.mxu1 %v4873_v53  ;;  %v4872_v7 = vpack.c.bf16 %v4428_v51, %v4412_v35  ;;  %v3369_v20 = vrot.slane %v8731_v24, %v10227_v48 }
 0x223   : > { %v4445_v46 = vmul.f32 %v3373_v30, %v10233_v54  ;;  %v4461_v25 = vmul.f32 %v3373_v30, %v8719_v38  ;;  %5377 = vmatpush1.bf16.msra.mxu0 %v4870_v55  ;;  %v4442_v33 = vmul.f32 %v3361_v32, %v10234_v13  ;;  %v4458_v21 = vmul.f32 %v3361_v32, %v8707_v42 }
 0x224   : > { %v4887_v1 = vpack.c.bf16 %v4459_v61, %v4443_v15  ;;  %v3429_v14 = vrot.slane %v8733_v27, %v10224_v59  ;;  %v4444_v23 = vmul.f32 %v3369_v20, %v10235_v36  ;;  %v4460_v12 = vmul.f32 %v3369_v20, %v8715_v34 }
 0x225   : > { %5430 = vmatpush1.bf16.msra.mxu1 %v4872_v7  ;;  %v4889_v9 = vpack.c.bf16 %v4461_v25, %v4445_v46  ;;  %v3437_v40 = vrot.slane %v8733_v27, %v10225_v18  ;;  %v4886_v24 = vpack.c.bf16 %v4458_v21, %v4442_v33  ;;  %v3425_v53 = vrot.slane %v8733_v27, %v10226_v45 }
 0x226   : > { %5378 = vmatprep.subr.bf16.mxu0 %v4887_v1  ;;  %v4475_v29 = vmul.f32 %v3429_v14, %v10232_v41  ;;  %v4491_v58 = vmul.f32 %v3429_v14, %v8711_v37  ;;  %v4888_v35 = vpack.c.bf16 %v4460_v12, %v4444_v23  ;;  %v3433_v55 = vrot.slane %v8733_v27, %v10227_v48 }
 0x227   : > { %5431 = vmatprep.subr.bf16.mxu1 %v4889_v9  ;;  %v4477_v51 = vmul.f32 %v3437_v40, %v10233_v54  ;;  %v4493_v30 = vmul.f32 %v3437_v40, %v8719_v38  ;;  %5379 = vmatpush1.bf16.msra.mxu0 %v4886_v24  ;;  %v4474_v61 = vmul.f32 %v3425_v53, %v10234_v13 }
 0x228   : > { %v4903_v15 = vpack.c.bf16 %v4491_v58, %v4475_v29  ;;  %v4490_v32 = vmul.f32 %v3425_v53, %v8707_v42  ;;  %v3493_v7 = vrot.slane %v8735_v62, %v10224_v59  ;;  %v4476_v25 = vmul.f32 %v3433_v55, %v10235_v36 }
 0x229   : > { %5432 = vmatpush1.bf16.msra.mxu1 %v4888_v35  ;;  %v4905_v46 = vpack.c.bf16 %v4493_v30, %v4477_v51  ;;  %v4492_v20 = vmul.f32 %v3433_v55, %v8715_v34  ;;  %v3501_v1 = vrot.slane %v8735_v62, %v10225_v18  ;;  %v3489_v14 = vrot.slane %v8735_v62, %v10226_v45 }
 0x22a   : > { %5380 = vmatprep.subr.bf16.mxu0 %v4903_v15  ;;  %v4902_v27 = vpack.c.bf16 %v4490_v32, %v4474_v61  ;;  %v4507_v33 = vmul.f32 %v3493_v7, %v10232_v41  ;;  %v4523_v21 = vmul.f32 %v3493_v7, %v8711_v37  ;;  %v3497_v40 = vrot.slane %v8735_v62, %v10227_v48 }
 0x22b   : > { %5433 = vmatprep.subr.bf16.mxu1 %v4905_v46  ;;  %v4904_v9 = vpack.c.bf16 %v4492_v20, %v4476_v25  ;;  %v4509_v23 = vmul.f32 %v3501_v1, %v10233_v54  ;;  %v4525_v12 = vmul.f32 %v3501_v1, %v8719_v38  ;;  %v4506_v29 = vmul.f32 %v3489_v14, %v10234_v13 }
 0x22c   : > { %5381 = vmatpush1.bf16.msra.mxu0 %v4902_v27  ;;  %v4919_v24 = vpack.c.bf16 %v4523_v21, %v4507_v33  ;;  %v4522_v58 = vmul.f32 %v3489_v14, %v8707_v42  ;;  %v3557_v53 = vrot.slane %v8981_v4, %v10224_v59  ;;  %v4508_v51 = vmul.f32 %v3497_v40, %v10235_v36 }
 0x22d   : > { %5434 = vmatpush1.bf16.msra.mxu1 %v4904_v9  ;;  %v4921_v35 = vpack.c.bf16 %v4525_v12, %v4509_v23  ;;  %v4524_v30 = vmul.f32 %v3497_v40, %v8715_v34  ;;  %v3565_v55 = vrot.slane %v8981_v4, %v10225_v18  ;;  %v3553_v32 = vrot.slane %v8981_v4, %v10226_v45 }
 0x22e   : > { %5382 = vmatprep.subr.bf16.mxu0 %v4919_v24  ;;  %v4918_v62 = vpack.c.bf16 %v4522_v58, %v4506_v29  ;;  %v4539_v15 = vmul.f32 %v3557_v53, %v10232_v41  ;;  %v4555_v61 = vmul.f32 %v3557_v53, %v8711_v37  ;;  %v3561_v20 = vrot.slane %v8981_v4, %v10227_v48 }
 0x22f   : > { %5435 = vmatprep.subr.bf16.mxu1 %v4921_v35  ;;  %v4920_v7 = vpack.c.bf16 %v4524_v30, %v4508_v51  ;;  %v4541_v46 = vmul.f32 %v3565_v55, %v10233_v54  ;;  %v4557_v25 = vmul.f32 %v3565_v55, %v8719_v38  ;;  %v4538_v27 = vmul.f32 %v3553_v32, %v10234_v13 }
 0x230   : > { %5383 = vmatpush1.bf16.msra.mxu0 %v4918_v62  ;;  %v4935_v1 = vpack.c.bf16 %v4555_v61, %v4539_v15  ;;  %v4554_v33 = vmul.f32 %v3553_v32, %v8707_v42  ;;  %v3621_v21 = vrot.slane %v8983_v57, %v10224_v59  ;;  %v4540_v9 = vmul.f32 %v3561_v20, %v10235_v36 }
 0x231   : > { %5436 = vmatpush1.bf16.msra.mxu1 %v4920_v7  ;;  %v4937_v14 = vpack.c.bf16 %v4557_v25, %v4541_v46  ;;  %v4556_v23 = vmul.f32 %v3561_v20, %v8715_v34  ;;  %v3629_v12 = vrot.slane %v8983_v57, %v10225_v18  ;;  %v3617_v29 = vrot.slane %v8983_v57, %v10226_v45 }
 0x232   : > { %5384 = vmatprep.subr.bf16.mxu0 %v4935_v1  ;;  %v4934_v4 = vpack.c.bf16 %v4554_v33, %v4538_v27  ;;  %v4571_v40 = vmul.f32 %v3621_v21, %v10232_v41  ;;  %v4587_v24 = vmul.f32 %v3621_v21, %v8711_v37  ;;  %v3625_v51 = vrot.slane %v8983_v57, %v10227_v48 }
 0x233   : > { %5437 = vmatprep.subr.bf16.mxu1 %v4937_v14  ;;  %v4936_v58 = vpack.c.bf16 %v4556_v23, %v4540_v9  ;;  %v4573_v53 = vmul.f32 %v3629_v12, %v10233_v54  ;;  %v4589_v35 = vmul.f32 %v3629_v12, %v8719_v38  ;;  %v4570_v55 = vmul.f32 %v3617_v29, %v10234_v13 }
 0x234   : > { %5385 = vmatpush1.bf16.msra.mxu0 %v4934_v4  ;;  %v4951_v30 = vpack.c.bf16 %v4587_v24, %v4571_v40  ;;  %v4586_v62 = vmul.f32 %v3617_v29, %v8707_v42  ;;  %v3685_v15 = vrot.slane %v8985_v63, %v10224_v59  ;;  %v4572_v32 = vmul.f32 %v3625_v51, %v10235_v36 }
 0x235   : > { %5438 = vmatpush1.bf16.msra.mxu1 %v4936_v58  ;;  %v4953_v61 = vpack.c.bf16 %v4589_v35, %v4573_v53  ;;  %v4588_v7 = vmul.f32 %v3625_v51, %v8715_v34  ;;  %v3693_v46 = vrot.slane %v8985_v63, %v10225_v18  ;;  %v3681_v1 = vrot.slane %v8985_v63, %v10226_v45 }
 0x236   : > { %5386 = vmatprep.subr.bf16.mxu0 %v4951_v30  ;;  %v4950_v57 = vpack.c.bf16 %v4586_v62, %v4570_v55  ;;  %v4603_v25 = vmul.f32 %v3685_v15, %v10232_v41  ;;  %v4619_v20 = vmul.f32 %v3685_v15, %v8711_v37  ;;  %v3689_v14 = vrot.slane %v8985_v63, %v10227_v48 }
 0x237   : > { %5439 = vmatprep.subr.bf16.mxu1 %v4953_v61  ;;  %v4952_v27 = vpack.c.bf16 %v4588_v7, %v4572_v32  ;;  %v4605_v33 = vmul.f32 %v3693_v46, %v10233_v54  ;;  %v4621_v21 = vmul.f32 %v3693_v46, %v8719_v38  ;;  %v4602_v23 = vmul.f32 %v3681_v1, %v10234_v13 }
 0x238   : > { %5387 = vmatpush1.bf16.msra.mxu0 %v4950_v57  ;;  %v4967_v9 = vpack.c.bf16 %v4619_v20, %v4603_v25  ;;  %v4618_v12 = vmul.f32 %v3681_v1, %v8707_v42  ;;  %v3749_v4 = vrot.slane %v8987_v26, %v10224_v59  ;;  %v4604_v24 = vmul.f32 %v3689_v14, %v10235_v36 }
 0x239   : > { %5440 = vmatpush1.bf16.msra.mxu1 %v4952_v27  ;;  %v4969_v40 = vpack.c.bf16 %v4621_v21, %v4605_v33  ;;  %v4620_v29 = vmul.f32 %v3689_v14, %v8715_v34  ;;  %v3757_v58 = vrot.slane %v8987_v26, %v10225_v18  ;;  %v3745_v51 = vrot.slane %v8987_v26, %v10226_v45 }
 0x23a   : > { %5388 = vmatprep.subr.bf16.mxu0 %v4967_v9  ;;  %v4966_v63 = vpack.c.bf16 %v4618_v12, %v4602_v23  ;;  %v4635_v53 = vmul.f32 %v3749_v4, %v10232_v41  ;;  %v4651_v35 = vmul.f32 %v3749_v4, %v8711_v37  ;;  %v3753_v15 = vrot.slane %v8987_v26, %v10227_v48 }
 0x23b   : > { %5441 = vmatprep.subr.bf16.mxu1 %v4969_v40  ;;  %v4968_v30 = vpack.c.bf16 %v4620_v29, %v4604_v24  ;;  %v4637_v55 = vmul.f32 %v3757_v58, %v10233_v54  ;;  %v4653_v62 = vmul.f32 %v3757_v58, %v8719_v38  ;;  %v4634_v32 = vmul.f32 %v3745_v51, %v10234_v13 }
 0x23c   : > { %5389 = vmatpush1.bf16.msra.mxu0 %v4966_v63  ;;  %v4983_v61 = vpack.c.bf16 %v4651_v35, %v4635_v53  ;;  %v4650_v7 = vmul.f32 %v3745_v51, %v8707_v42  ;;  %v3813_v46 = vrot.slane %v8989_v19, %v10224_v59  ;;  %v4636_v25 = vmul.f32 %v3753_v15, %v10235_v36 }
 0x23d   : > { %5442 = vmatpush1.bf16.msra.mxu1 %v4968_v30  ;;  %v4985_v57 = vpack.c.bf16 %v4653_v62, %v4637_v55  ;;  %v4652_v20 = vmul.f32 %v3753_v15, %v8715_v34  ;;  %v3821_v1 = vrot.slane %v8989_v19, %v10225_v18  ;;  %v3809_v21 = vrot.slane %v8989_v19, %v10226_v45 }
 0x23e   : > { %5390 = vmatprep.subr.bf16.mxu0 %v4983_v61  ;;  %v4982_v26 = vpack.c.bf16 %v4650_v7, %v4634_v32  ;;  %v4667_v27 = vmul.f32 %v3813_v46, %v10232_v41  ;;  %v4683_v33 = vmul.f32 %v3813_v46, %v8711_v37  ;;  %v3817_v12 = vrot.slane %v8989_v19, %v10227_v48  ;;  %v9382_v62 = vpop.f32.mrb[8].mxu0 }
 0x23f   : > { %5443 = vmatprep.subr.bf16.mxu1 %v4985_v57  ;;  %v4984_v14 = vpack.c.bf16 %v4652_v20, %v4636_v25  ;;  %v4669_v9 = vmul.f32 %v3821_v1, %v10233_v54  ;;  %v4685_v23 = vmul.f32 %v3821_v1, %v8719_v38  ;;  %v4666_v40 = vmul.f32 %v3809_v21, %v10234_v13  ;;  %v9388_v46 = vpop.f32.mrb[9].mxu0 }
 0x240   : > { %5391 = vmatpush1.bf16.msra.mxu0 %v4982_v26  ;;  %v4999_v4 = vpack.c.bf16 %v4683_v33, %v4667_v27  ;;  %v4682_v24 = vmul.f32 %v3809_v21, %v8707_v42  ;;  %v3877_v29 = vrot.slane %v8991_v2, %v10224_v59  ;;  %v4668_v63 = vmul.f32 %v3817_v12, %v10235_v36  ;;  %v9394_v26 = vpop.f32.mrb[8].mxu1  ;;  %v9396_v27 = vpop.f32.mrb[10].mxu0 }
 0x241   : > { %5444 = vmatpush1.bf16.msra.mxu1 %v4984_v14  ;;  %v5001_v58 = vpack.c.bf16 %v4685_v23, %v4669_v9  ;;  %v4684_v53 = vmul.f32 %v3817_v12, %v8715_v34  ;;  %v3885_v35 = vrot.slane %v8991_v2, %v10225_v18  ;;  %v3873_v55 = vrot.slane %v8991_v2, %v10226_v45  ;;  %v9402_v9 = vpop.f32.mrb[9].mxu1  ;;  %v9404_v23 = vpop.f32.mrb[11].mxu0 }
 0x242   : > { %5392 = vmatprep.subr.bf16.mxu0 %v4999_v4  ;;  %v4998_v19 = vpack.c.bf16 %v4682_v24, %v4666_v40  ;;  %v4699_v51 = vmul.f32 %v3877_v29, %v10232_v41  ;;  %v4715_v30 = vmul.f32 %v3877_v29, %v8711_v37  ;;  %v3881_v7 = vrot.slane %v8991_v2, %v10227_v48  ;;  %v9410_v29 = vpop.f32.mrb[10].mxu1 }
 0x243   : > { %5445 = vmatprep.subr.bf16.mxu1 %v5001_v58  ;;  %v5000_v15 = vpack.c.bf16 %v4684_v53, %v4668_v63  ;;  %v4701_v61 = vmul.f32 %v3885_v35, %v10233_v54  ;;  %v4717_v32 = vmul.f32 %v3885_v35, %v8719_v38  ;;  %v4698_v25 = vmul.f32 %v3873_v55, %v10234_v13 }
 0x244   : > { %5393 = vmatpush1.bf16.msra.mxu0 %v4998_v19  ;;  %v5015_v57 = vpack.c.bf16 %v4715_v30, %v4699_v51  ;;  %v4714_v20 = vmul.f32 %v3873_v55, %v8707_v42  ;;  %v3941_v1 = vrot.slane %v8993_v6, %v10224_v59  ;;  %v4700_v21 = vmul.f32 %v3881_v7, %v10235_v36  ;;  %v9416_v19 = vpop.f32.mrb[11].mxu1 }
 0x245   : > { %5446 = vmatpush1.bf16.msra.mxu1 %v5000_v15  ;;  %v5017_v33 = vpack.c.bf16 %v4717_v32, %v4701_v61  ;;  %v4716_v2 = vmul.f32 %v3881_v7, %v8715_v34  ;;  %v3949_v14 = vrot.slane %v8993_v6, %v10225_v18  ;;  %v3937_v24 = vrot.slane %v8993_v6, %v10226_v45 }
 0x246   : > { %5394 = vmatprep.subr.bf16.mxu0 %v5015_v57  ;;  %v5014_v12 = vpack.c.bf16 %v4714_v20, %v4698_v25  ;;  %v4731_v4 = vmul.f32 %v3941_v1, %v10232_v41  ;;  %v4747_v40 = vmul.f32 %v3941_v1, %v8711_v37  ;;  %v3945_v35 = vrot.slane %v8993_v6, %v10227_v48 }
 0x247   : > { %5447 = vmatprep.subr.bf16.mxu1 %v5017_v33  ;;  %v5016_v58 = vpack.c.bf16 %v4716_v2, %v4700_v21  ;;  %v4733_v63 = vmul.f32 %v3949_v14, %v10233_v54  ;;  %v4749_v53 = vmul.f32 %v3949_v14, %v8719_v38  ;;  %v4730_v30 = vmul.f32 %v3937_v24, %v10234_v13  ;;  %v9430_v33 = vpop.f32.mrb[12].mxu0 }
 0x248   : > { %5395 = vmatpush1.bf16.msra.mxu0 %v5014_v12  ;;  %v5031_v51 = vpack.c.bf16 %v4747_v40, %v4731_v4  ;;  %v4746_v55 = vmul.f32 %v3937_v24, %v8707_v42  ;;  %v4005_v15 = vrot.slane %v8995_v43, %v10224_v59  ;;  %v4732_v32 = vmul.f32 %v3945_v35, %v10235_v36  ;;  %v9436_v14 = vpop.f32.mrb[13].mxu0  ;;  %v9442_v4 = vpop.f32.mrb[12].mxu1  ;;  %v10240_v24 = vld [vmem:[#allocation17_spill] sm:$0xff] }
 0x249   : > { %5448 = vmatpush1.bf16.msra.mxu1 %v5016_v58  ;;  %v5033_v61 = vpack.c.bf16 %v4749_v53, %v4733_v63  ;;  %v4748_v7 = vmul.f32 %v3945_v35, %v8715_v34  ;;  %v4013_v6 = vrot.slane %v8995_v43, %v10225_v18  ;;  %v4001_v1 = vrot.slane %v8995_v43, %v10226_v45  ;;  %v10241_v63 = vld [vmem:[#allocation30_spill] sm:$0xff] }
 0x24a   : > { %5396 = vmatprep.subr.bf16.mxu0 %v5031_v51  ;;  %v5030_v57 = vpack.c.bf16 %v4746_v55, %v4730_v30  ;;  %v4763_v25 = vmul.f32 %v4005_v15, %v10232_v41  ;;  %v4779_v20 = vmul.f32 %v4005_v15, %v8711_v37  ;;  %v4009_v18 = vrot.slane %v8995_v43, %v10227_v48  ;;  %v10242_v35 = vld [vmem:[#allocation34_spill] sm:$0xff] }
 0x24b   : > { %5449 = vmatprep.subr.bf16.mxu1 %v5033_v61  ;;  %v5032_v59 = vpack.c.bf16 %v4748_v7, %v4732_v32  ;;  %v4765_v21 = vmul.f32 %v4013_v6, %v10233_v54  ;;  %v4781_v2 = vmul.f32 %v4013_v6, %v8719_v38  ;;  %v4762_v37 = vmul.f32 %v4001_v1, %v10234_v13  ;;  %v9444_v54 = vpop.f32.mrb[14].mxu0  ;;  %v9450_v13 = vpop.f32.mrb[13].mxu1  ;;  %v10243_v30 = vld [vmem:[#allocation22_spill] sm:$0xff]  ;;  %v10245_v7 = vld [vmem:[#allocation31_spill] sm:$0xff] }
 0x24c   : > { %5397 = vmatpush1.bf16.msra.mxu0 %v5030_v57  ;;  %v5047_v41 = vpack.c.bf16 %v4779_v20, %v4763_v25  ;;  %v4778_v12 = vmul.f32 %v4001_v1, %v8707_v42  ;;  %v5798_v45 = vunpack.c.0.s8 %v9235_v11  ;;  %v4764_v43 = vmul.f32 %v4009_v18, %v10235_v36  ;;  %v9452_v42 = vpop.f32.mrb[15].mxu0  ;;  %v9460_v55 = vpop.f32.mrb[14].mxu1  ;;  %v10244_v61 = vld [vmem:[#allocation18_spill] sm:$0xff]  ;;  %v10249_v11 = vld [vmem:[#allocation44_spill] sm:$0xff] }
 0x24d   : > { %5450 = vmatpush1.bf16.msra.mxu1 %v5032_v59  ;;  %v5049_v38 = vpack.c.bf16 %v4781_v2, %v4765_v21  ;;  %v4780_v40 = vmul.f32 %v4009_v18, %v8715_v34  ;;  %v1713_v58 = vrot.slane %v10240_v24, %v10202_v5  ;;  %v1873_v53 = vrot.slane %v10241_v63, %v10202_v5  ;;  %v9467_v57 = vpop.f32.mrb[15].mxu1  ;;  %v10246_v59 = vld [vmem:[#allocation35_spill] sm:$0xff]  ;;  %v10247_v2 = vld [vmem:[#allocation14_spill] sm:$0xff] }
 0x24e   : > { %5398 = vmatprep.subr.bf16.mxu0 %v5047_v41  ;;  %v5046_v17 = vpack.c.bf16 %v4778_v12, %v4762_v37  ;;  %v2049_v51 = vrot.slane %v10242_v35, %v10202_v5  ;;  %v2209_v36 = vrot.slane %v10243_v30, %v10202_v5  ;;  %v1721_v32 = vrot.slane %v10244_v61, %v10202_v5  ;;  %v10248_v37 = vld [vmem:[#allocation23_spill] sm:$0xff] }
 0x24f   : > { %5451 = vmatprep.subr.bf16.mxu1 %v5049_v38  ;;  %v5048_v34 = vpack.c.bf16 %v4780_v40, %v4764_v43  ;;  %v1777_v15 = vrot.slane %v1713_v58, %v10202_v5  ;;  %v1881_v6 = vrot.slane %v10245_v7, %v10202_v5  ;;  %v1953_v25 = vrot.slane %v1873_v53, %v10202_v5 }
 0x250   : > { %5399 = vmatpush1.bf16.msra.mxu0 %v5046_v17  ;;  %v2113_v20 = vrot.slane %v2049_v51, %v10202_v5  ;;  %v2289_v1 = vrot.slane %v2209_v36, %v10202_v5  ;;  %v2057_v21 = vrot.slane %v10246_v59, %v10202_v5  ;;  %v1785_v18 = vrot.slane %v1721_v32, %v10202_v5 }
 0x251   : > { %5452 = vmatpush1.bf16.msra.mxu1 %v5048_v34  ;;  %vm1838_vm0 = vcmp.eq.s32.totalorder %v10247_v2, %v1777_v15  ;;  %v1961_v41 = vrot.slane %v1881_v6, %v10202_v5  ;;  %v2217_v12 = vrot.slane %v10248_v37, %v10202_v5  ;;  %v1717_v40 = vrot.slane %v10240_v24, %v10227_v48 }
 0x252   : > { %v2014_v38 = vsel %vm1838_vm0, %v1953_v25, 0.0  ;;  %vm2174_vm1 = vcmp.eq.s32.totalorder %v10247_v2, %v2113_v20  ;;  %v2121_v43 = vrot.slane %v2057_v21, %v10202_v5  ;;  %vm1840_vm2 = vcmp.eq.s32.totalorder %v10247_v2, %v1785_v18 }
 0x253   : > { %5401 = vmatmul.mubr.bf16.vlgmr.msra.gmra.mrb[24].mxu0 %v10236_v49  ;;  %v2350_v58 = vsel %vm2174_vm1, %v2289_v1, 0.0  ;;  %v2297_v17 = vrot.slane %v2217_v12, %v10202_v5  ;;  %v1877_v53 = vrot.slane %v10241_v63, %v10227_v48  ;;  %v2016_v36 = vsel %vm1840_vm2, %v1961_v41, 0.0 }
 0x254   : > { %5454 = vmatmul.mubr.bf16.vlgmr.msra.gmra.mrb[24].mxu1 %v10236_v49  ;;  %5410 = vmatprep.mubr.bf16.mxu0 %v10237_v8  ;;  %v2382_v51 = vadd.f32 %v2350_v58, %v2014_v38  ;;  %vm2176_vm3 = vcmp.eq.s32.totalorder %v10247_v2, %v2121_v43  ;;  %v1781_v24 = vrot.slane %v1717_v40, %v10202_v5  ;;  %vm5935_vm0 = vcmask 1041409  }
 0x255   : > { %5463 = vmatprep.mubr.bf16.mxu1 %v10237_v8  ;;  %v2352_v34 = vsel %vm2176_vm3, %v2297_v17, 0.0  ;;  %v1957_v32 = vrot.slane %v1877_v53, %v10202_v5  ;;  %v2053_v6 = vrot.slane %v10242_v35, %v10227_v48  ;;  %v2213_v63 = vrot.slane %v10243_v30, %v10227_v48 }
 0x256   : > { %v5474_v49 = vmul.f32 %v9079_v56, %v2382_v51  ;;  %v2384_v21 = vadd.f32 %v2352_v34, %v2016_v36  ;;  %vm1839_vm4 = vcmp.eq.s32.totalorder %v10247_v2, %v1781_v24  ;;  %v1725_v12 = vrot.slane %v10244_v61, %v10227_v48 }
 0x257   : > { %v2015_v38 = vsel %vm1839_vm4, %v1957_v32, 0.0  ;;  %v2117_v8 = vrot.slane %v2053_v6, %v10202_v5  ;;  %v2293_v40 = vrot.slane %v2213_v63, %v10202_v5  ;;  %v1885_v58 = vrot.slane %v10245_v7, %v10227_v48 }
 0x258   : > { %v5476_v35 = vmul.f32 %v9085_v39, %v2384_v21  ;;  %v1789_v30 = vrot.slane %v1725_v12, %v10202_v5  ;;  %v2061_v56 = vrot.slane %v10246_v59, %v10227_v48  ;;  %v2221_v53 = vrot.slane %v10248_v37, %v10227_v48 }
 0x259   : > { %vm2175_vm5 = vcmp.eq.s32.totalorder %v10247_v2, %v2117_v8  ;;  %v1965_v61 = vrot.slane %v1885_v58, %v10202_v5  ;;  %vm1854_vm6 = vcmp.eq.s32.totalorder %v10162_v47, %v1777_v15  ;;  %vm2190_vm7 = vcmp.eq.s32.totalorder %v10162_v47, %v2113_v20 }
 0x25a   : > { %v2351_v36 = vsel %vm2175_vm5, %v2293_v40, 0.0  ;;  %vm1841_vm8 = vcmp.eq.s32.totalorder %v10247_v2, %v1789_v30  ;;  %v2125_v39 = vrot.slane %v2061_v56, %v10202_v5  ;;  %v2301_v7 = vrot.slane %v2221_v53, %v10202_v5 }
 0x25b   : > { %5411 = vmatmul.mubr.bf16.gmra.mrb[28].mxu0 %v10238_v50  ;;  %v2383_v59 = vadd.f32 %v2351_v36, %v2015_v38  ;;  %v2017_v34 = vsel %vm1841_vm8, %v1965_v61, 0.0  ;;  %v2030_v37 = vsel %vm1854_vm6, %v1953_v25, 0.0  ;;  %v2366_v6 = vsel %vm2190_vm7, %v2289_v1, 0.0  ;;  %v10250_v36 = vld [vmem:[#allocation25_spill] sm:$0xff] }
 0x25c   : > { %5464 = vmatmul.mubr.bf16.gmra.mrb[28].mxu1 %v10238_v50  ;;  %vm2177_vm9 = vcmp.eq.s32.totalorder %v10247_v2, %v2125_v39  ;;  %v2398_v15 = vadd.f32 %v2366_v6, %v2030_v37  ;;  %vm1856_vm10 = vcmp.eq.s32.totalorder %v10162_v47, %v1785_v18  ;;  %vm2192_vm11 = vcmp.eq.s32.totalorder %v10162_v47, %v2121_v43  ;;  %v10251_v37 = vld [vmem:[#allocation28_spill] sm:$0xff] }
 0x25d   : > { %v5475_v20 = vmul.f32 %v9087_v52, %v2383_v59  ;;  %v2353_v63 = vsel %vm2177_vm9, %v2301_v7, 0.0  ;;  %v2032_v12 = vsel %vm1856_vm10, %v1961_v41, 0.0  ;;  %v2368_v58 = vsel %vm2192_vm11, %v2297_v17, 0.0 }
 0x25e   : > { %v2385_v56 = vadd.f32 %v2353_v63, %v2017_v34  ;;  %v5490_v38 = vmul.f32 %v9095_v60, %v2398_v15  ;;  %v2400_v53 = vadd.f32 %v2368_v58, %v2032_v12  ;;  %vm1855_vm12 = vcmp.eq.s32.totalorder %v10162_v47, %v1781_v24 }
 0x25f   : > { %v2031_v25 = vsel %vm1855_vm12, %v1957_v32, 0.0  ;;  %vm2191_vm13 = vcmp.eq.s32.totalorder %v10162_v47, %v2117_v8  ;;  %v9531_v50 = vsub.s32 %v5798_v45, %v10247_v2  ;;  %vm1857_vm14 = vcmp.eq.s32.totalorder %v10162_v47, %v1789_v30 }
 0x260   : > { %v5477_v52 = vmul.f32 %v9093_v0, %v2385_v56  ;;  %v5538_v1 = vadd.f32 %v5490_v38, %v5474_v49  ;;  %v5492_v18 = vmul.f32 %v9101_v16, %v2400_v53  ;;  %v2367_v41 = vsel %vm2191_vm13, %v2293_v40, 0.0 }
 0x261   : > { %v2399_v60 = vadd.f32 %v2367_v41, %v2031_v25  ;;  %v2033_v43 = vsel %vm1857_vm14, %v1965_v61, 0.0  ;;  %vm2193_vm15 = vcmp.eq.s32.totalorder %v10162_v47, %v2125_v39  ;;  %v5506_v17 = vmul.f32 %v9127_v31, %v2382_v51  ;;  %v10252_v31 = vld [vmem:[#allocation42_spill] sm:$0xff] }
 0x262   : > { %v5539_v24 = vrot.slane %v5538_v1, 4  ;;  %v5552_v32 = vadd.f32 %v5492_v18, %v5476_v35  ;;  %v2369_v8 = vsel %vm2193_vm15, %v2301_v7, 0.0  ;;  %v5508_v45 = vmul.f32 %v10249_v11, %v2384_v21 }
 0x263   : > { %v5491_v34 = vmul.f32 %v10250_v36, %v2399_v60  ;;  %v2401_v30 = vadd.f32 %v2369_v8, %v2033_v43  ;;  %v5507_v0 = vmul.f32 %v9135_v10, %v2383_v59  ;;  %v5509_v49 = vmul.f32 %v9140_v3, %v2385_v56 }
 0x264   : > { %v5540_v16 = vadd.f32 %v5539_v24, %v5538_v1  ;;  %v5553_v40 = vrot.slane %v5552_v32, 4  ;;  %v5522_v61 = vmul.f32 %v10251_v37, %v2398_v15  ;;  %v5524_v39 = vmul.f32 %v9146_v28, %v2400_v53  ;;  %v10253_v37 = vld [vmem:[#allocation19_spill] sm:$0xff] }
 0x265   : > { %v5545_v6 = vadd.f32 %v5491_v34, %v5475_v20  ;;  %v5493_v51 = vmul.f32 %v10252_v31, %v2401_v30  ;;  %v5523_v35 = vmul.f32 %v9148_v44, %v2399_v60  ;;  %v5525_v21 = vmul.f32 %v9155_v22, %v2401_v30 }
 0x266   : > { %v5541_v7 = vrot.slane %v5540_v16, 2  ;;  %v5554_v63 = vadd.f32 %v5553_v40, %v5552_v32  ;;  %v5650_v12 = vadd.f32 %v5522_v61, %v5506_v17  ;;  %v5664_v58 = vadd.f32 %v5524_v39, %v5508_v45 }
 0x267   : > { %v5546_v10 = vrot.slane %v5545_v6, 4  ;;  %v5559_v59 = vadd.f32 %v5493_v51, %v5477_v52  ;;  %v5657_v3 = vadd.f32 %v5523_v35, %v5507_v0  ;;  %v5671_v56 = vadd.f32 %v5525_v21, %v5509_v49 }
 0x268   : > { %v5542_v38 = vadd.f32 %v5541_v7, %v5540_v16  ;;  %v5555_v25 = vrot.slane %v5554_v63, 2  ;;  %v5651_v15 = vrot.slane %v5650_v12, 4  ;;  %v5665_v1 = vrot.slane %v5664_v58, 4 }
 0x269   : > { %v5547_v28 = vadd.f32 %v5546_v10, %v5545_v6  ;;  %v5560_v20 = vrot.slane %v5559_v59, 4  ;;  %v5658_v53 = vrot.slane %v5657_v3, 4  ;;  %v5672_v18 = vrot.slane %v5671_v56, 4 }
 0x26a   : > { %v5543_v41 = vrot.slane %v5542_v38, 1  ;;  %v5556_v44 = vadd.f32 %v5555_v25, %v5554_v63  ;;  %v5652_v60 = vadd.f32 %v5651_v15, %v5650_v12  ;;  %v5666_v22 = vadd.f32 %v5665_v1, %v5664_v58  ;;  %v10254_v63 = vld [vmem:[#allocation32_spill] sm:$0xff] }
 0x26b   : > { %v5548_v43 = vrot.slane %v5547_v28, 2  ;;  %v5561_v24 = vadd.f32 %v5560_v20, %v5559_v59  ;;  %v5659_v17 = vadd.f32 %v5658_v53, %v5657_v3  ;;  %v5673_v32 = vadd.f32 %v5672_v18, %v5671_v56  ;;  %v10255_v18 = vld [vmem:[#allocation36_spill] sm:$0xff] }
 0x26c   : > { %v5544_v8 = vadd.f32 %v5543_v41, %v5542_v38  ;;  %v5557_v52 = vrot.slane %v5556_v44, 1  ;;  %v5653_v11 = vrot.slane %v5652_v60, 2  ;;  %v5667_v45 = vrot.slane %v5666_v22, 2 }
 0x26d   : > { %v5549_v36 = vadd.f32 %v5548_v43, %v5547_v28  ;;  %v5562_v34 = vrot.slane %v5561_v24, 2  ;;  %v5660_v30 = vrot.slane %v5659_v17, 2  ;;  %v5674_v0 = vrot.slane %v5673_v32, 2 }
 0x26e   : > { %v5558_v49 = vadd.f32 %v5557_v52, %v5556_v44  ;;  %v5654_v16 = vadd.f32 %v5653_v11, %v5652_v60  ;;  %v5668_v40 = vadd.f32 %v5667_v45, %v5666_v22  ;;  %v1729_v61 = vrot.slane %v10253_v37, %v10202_v5  ;;  %v10256_v44 = vld [vmem:[#allocation26_spill] sm:$0xff]  ;;  %v10257_v22 = vld [vmem:[#allocation20_spill] sm:$0xff] }
 0x26f   : > { %v5550_v39 = vrot.slane %v5549_v36, 1  ;;  %v5563_v6 = vadd.f32 %v5562_v34, %v5561_v24  ;;  %v5661_v31 = vadd.f32 %v5660_v30, %v5659_v17  ;;  %v5675_v51 = vadd.f32 %v5674_v0, %v5673_v32 }
 0x270   : > { %v5655_v35 = vrot.slane %v5654_v16, 1  ;;  %v5669_v21 = vrot.slane %v5668_v40, 1  ;;  %v9550_v7 = vrot.slane %v1729_v61, %v10202_v5  ;;  %v1889_v12 = vrot.slane %v10254_v63, %v10202_v5 }
 0x271   : > { %v5551_v58 = vadd.f32 %v5550_v39, %v5549_v36  ;;  %v5564_v10 = vrot.slane %v5563_v6, 1  ;;  %v5662_v59 = vrot.slane %v5661_v31, 1  ;;  %v5676_v3 = vrot.slane %v5675_v51, 1  ;;  %v10258_v36 = vld [vmem:[#allocation33_spill] sm:$0xff]  ;;  %v10260_v39 = vld [vmem:[#allocation27_spill] sm:$0xff] }
 0x272   : > { %v5656_v56 = vadd.f32 %v5655_v35, %v5654_v16  ;;  %v5670_v38 = vadd.f32 %v5669_v21, %v5668_v40  ;;  %vm1842_vm1 = vcmp.eq.s32.totalorder %v10247_v2, %v9550_v7  ;;  %v9557_v25 = vrot.slane %v1889_v12, %v10202_v5  ;;  %v10259_v40 = vld [vmem:[#allocation37_spill] sm:$0xff] }
 0x273   : > { %v5794_v15 = vcombine.low %v5544_v8, %v5551_v58  ;;  %v5565_v1 = vadd.f32 %v5564_v10, %v5563_v6  ;;  %v5663_v28 = vadd.f32 %v5662_v59, %v5661_v31  ;;  %v5677_v20 = vadd.f32 %v5676_v3, %v5675_v51 }
 0x274   : > { %v2018_v53 = vsel %vm1842_vm1, %v9557_v25, 0.0  ;;  %v2065_v41 = vrot.slane %v10255_v18, %v10202_v5  ;;  %v2225_v60 = vrot.slane %v10256_v44, %v10202_v5  ;;  %v1737_v43 = vrot.slane %v10257_v22, %v10202_v5 }
 0x275   : > { %v5802_v24 = vrot.slane %v5794_v15, %v9531_v50  ;;  %v5795_v17 = vcombine.low %v5558_v49, %v5565_v1  ;;  %v5862_v32 = vcombine.low %v5656_v56, %v5663_v28  ;;  %v5863_v52 = vcombine.low %v5670_v38, %v5677_v20 }
 0x276   : > { %v2129_v8 = vrot.slane %v2065_v41, %v10202_v5  ;;  %v2305_v11 = vrot.slane %v2225_v60, %v10202_v5  ;;  %v1801_v45 = vrot.slane %v1737_v43, %v10202_v5  ;;  %v1897_v34 = vrot.slane %v10258_v36, %v10202_v5 }
 0x277   : > { %v5809_v30 = vrot.slane %v5795_v17, %v9531_v50  ;;  %v5870_v0 = vrot.slane %v5862_v32, %v9531_v50  ;;  %v5877_v16 = vrot.slane %v5863_v52, %v9531_v50  ;;  %v2073_v49 = vrot.slane %v10259_v40, %v10202_v5 }
 0x278   : > { %vm2178_vm2 = vcmp.eq.s32.totalorder %v10247_v2, %v2129_v8  ;;  %vm1844_vm3 = vcmp.eq.s32.totalorder %v10247_v2, %v1801_v45  ;;  %v1977_v61 = vrot.slane %v1897_v34, %v10202_v5  ;;  %v2233_v6 = vrot.slane %v10260_v39, %v10202_v5 }
 0x279   : > { %v5810_v31 = vcombine.low %v5802_v24, %v5809_v30  ;;  %v5878_v51 = vcombine.low %v5870_v0, %v5877_v16  ;;  %v2354_v35 = vsel %vm2178_vm2, %v2305_v11, 0.0  ;;  %v2137_v21 = vrot.slane %v2073_v49, %v10202_v5 }
 0x27a   : > { %v2386_v12 = vadd.f32 %v2354_v35, %v2018_v53  ;;  %v2020_v58 = vsel %vm1844_vm3, %v1977_v61, 0.0  ;;  %v2313_v10 = vrot.slane %v2233_v6, %v10202_v5  ;;  %v1733_v59 = vrot.slane %v10253_v37, %v10227_v48 }
 0x27b   : > { %v9586_v3 = vrot.slane %v5878_v51, 7  ;;  %vm2180_vm4 = vcmp.eq.s32.totalorder %v10247_v2, %v2137_v21  ;;  %v1893_v56 = vrot.slane %v10254_v63, %v10227_v48  ;;  %v2069_v38 = vrot.slane %v10255_v18, %v10227_v48 }
 0x27c   : > { %v5478_v15 = vmul.f32 %v9382_v62, %v2386_v12  ;;  %v2356_v1 = vsel %vm2180_vm4, %v2313_v10, 0.0  ;;  %v1797_v28 = vrot.slane %v1733_v59, %v10202_v5  ;;  %v2229_v20 = vrot.slane %v10256_v44, %v10227_v48 }
 0x27d   : > { %v9599_v37 = vsel %vm5935_vm0, %v9586_v3, %v5810_v31  ;;  %v2388_v53 = vadd.f32 %v2356_v1, %v2020_v58  ;;  %v1973_v41 = vrot.slane %v1893_v56, %v10202_v5  ;;  %v2133_v63 = vrot.slane %v2069_v38, %v10202_v5 }
 0x27e   : > { %vm1843_vm5 = vcmp.eq.s32.totalorder %v10247_v2, %v1797_v28  ;;  %v2309_v18 = vrot.slane %v2229_v20, %v10202_v5  ;;  %v1741_v62 = vrot.slane %v10257_v22, %v10227_v48  ;;  %v1901_v60 = vrot.slane %v10258_v36, %v10227_v48 }
 0x27f   : > { %v5480_v44 = vmul.f32 %v9394_v26, %v2388_v53  ;;  %v2019_v43 = vsel %vm1843_vm5, %v1973_v41, 0.0  ;;  %vm2179_vm6 = vcmp.eq.s32.totalorder %v10247_v2, %v2133_v63  ;;  %v2077_v24 = vrot.slane %v10259_v40, %v10227_v48 }
 0x280   : > { %v2355_v17 = vsel %vm2179_vm6, %v2309_v18, 0.0  ;;  %v1805_v32 = vrot.slane %v1741_v62, %v10202_v5  ;;  %v1981_v52 = vrot.slane %v1901_v60, %v10202_v5  ;;  %v2237_v34 = vrot.slane %v10260_v39, %v10227_v48 }
 0x281   : > { %v2387_v22 = vadd.f32 %v2355_v17, %v2019_v43  ;;  %v2141_v30 = vrot.slane %v2077_v24, %v10202_v5  ;;  %vm1858_vm7 = vcmp.eq.s32.totalorder %v10162_v47, %v9550_v7  ;;  %vm2194_vm8 = vcmp.eq.s32.totalorder %v10162_v47, %v2129_v8 }
 0x282   : > { %vm1845_vm9 = vcmp.eq.s32.totalorder %v10247_v2, %v1805_v32  ;;  %v2317_v26 = vrot.slane %v2237_v34, %v10202_v5  ;;  %v2034_v36 = vsel %vm1858_vm7, %v9557_v25, 0.0  ;;  %v2370_v0 = vsel %vm2194_vm8, %v2305_v11, 0.0 }
 0x283   : > { %v5479_v16 = vmul.f32 %v9388_v46, %v2387_v22  ;;  %v2021_v40 = vsel %vm1845_vm9, %v1981_v52, 0.0  ;;  %vm2181_vm10 = vcmp.eq.s32.totalorder %v10247_v2, %v2141_v30  ;;  %v2402_v49 = vadd.f32 %v2370_v0, %v2034_v36 }
 0x284   : > { %v2357_v39 = vsel %vm2181_vm10, %v2317_v26, 0.0  ;;  %vm1860_vm11 = vcmp.eq.s32.totalorder %v10162_v47, %v1801_v45  ;;  %vm2196_vm12 = vcmp.eq.s32.totalorder %v10162_v47, %v2137_v21  ;;  %vm1859_vm13 = vcmp.eq.s32.totalorder %v10162_v47, %v1797_v28 }
 0x285   : > { %v2389_v7 = vadd.f32 %v2357_v39, %v2021_v40  ;;  %v5494_v8 = vmul.f32 %v9396_v27, %v2402_v49  ;;  %v2036_v6 = vsel %vm1860_vm11, %v1977_v61, 0.0  ;;  %v2372_v31 = vsel %vm2196_vm12, %v2313_v10, 0.0 }
 0x286   : > { %v2404_v25 = vadd.f32 %v2372_v31, %v2036_v6  ;;  %v2035_v11 = vsel %vm1859_vm13, %v1973_v41, 0.0  ;;  %vm2195_vm14 = vcmp.eq.s32.totalorder %v10162_v47, %v2133_v63  ;;  %vm1861_vm15 = vcmp.eq.s32.totalorder %v10162_v47, %v1805_v32 }
 0x287   : > { %v5481_v46 = vmul.f32 %v9402_v9, %v2389_v7  ;;  %v5566_v51 = vadd.f32 %v5494_v8, %v5478_v15  ;;  %v2371_v35 = vsel %vm2195_vm14, %v2309_v18, 0.0  ;;  %v2037_v45 = vsel %vm1861_vm15, %v1981_v52, 0.0 }
 0x288   : > { %v5496_v21 = vmul.f32 %v9410_v29, %v2404_v25  ;;  %v2403_v58 = vadd.f32 %v2371_v35, %v2035_v11  ;;  %vm2197_vm1 = vcmp.eq.s32.totalorder %v10162_v47, %v2141_v30  ;;  %v5510_v27 = vmul.f32 %v9430_v33, %v2386_v12 }
 0x289   : > { %v5567_v61 = vrot.slane %v5566_v51, 4  ;;  %v2373_v10 = vsel %vm2197_vm1, %v2317_v26, 0.0  ;;  %v5512_v59 = vmul.f32 %v9442_v4, %v2388_v53  ;;  %v5511_v56 = vmul.f32 %v9436_v14, %v2387_v22 }
 0x28a   : > { %v5580_v38 = vadd.f32 %v5496_v21, %v5480_v44  ;;  %v5495_v1 = vmul.f32 %v9404_v23, %v2403_v58  ;;  %v2405_v9 = vadd.f32 %v2373_v10, %v2037_v45  ;;  %v5513_v15 = vmul.f32 %v9450_v13, %v2389_v7 }
 0x28b   : > { %v5568_v28 = vadd.f32 %v5567_v61, %v5566_v51  ;;  %v5526_v29 = vmul.f32 %v9444_v54, %v2402_v49  ;;  %v5528_v20 = vmul.f32 %v9460_v55, %v2404_v25  ;;  %v5527_v41 = vmul.f32 %v9452_v42, %v2403_v58 }
 0x28c   : > { %v5581_v33 = vrot.slane %v5580_v38, 4  ;;  %v5573_v12 = vadd.f32 %v5495_v1, %v5479_v16  ;;  %v5497_v63 = vmul.f32 %v9416_v19, %v2405_v9  ;;  %v5529_v4 = vmul.f32 %v9467_v57, %v2405_v9 }
 0x28d   : > { %v5569_v14 = vrot.slane %v5568_v28, 2  ;;  %v5678_v53 = vadd.f32 %v5526_v29, %v5510_v27  ;;  %v5692_v18 = vadd.f32 %v5528_v20, %v5512_v59  ;;  %v5685_v23 = vadd.f32 %v5527_v41, %v5511_v56 }
 0x28e   : > { %v5582_v62 = vadd.f32 %v5581_v33, %v5580_v38  ;;  %v5574_v60 = vrot.slane %v5573_v12, 4  ;;  %v5587_v13 = vadd.f32 %v5497_v63, %v5481_v46  ;;  %v5699_v44 = vadd.f32 %v5529_v4, %v5513_v15 }
 0x28f   : > { %v5570_v43 = vadd.f32 %v5569_v14, %v5568_v28  ;;  %v5679_v54 = vrot.slane %v5678_v53, 4  ;;  %v5693_v24 = vrot.slane %v5692_v18, 4  ;;  %v5686_v55 = vrot.slane %v5685_v23, 4 }
 0x290   : > { %v5583_v17 = vrot.slane %v5582_v62, 2  ;;  %v5575_v42 = vadd.f32 %v5574_v60, %v5573_v12  ;;  %v5588_v32 = vrot.slane %v5587_v13, 4  ;;  %v5700_v52 = vrot.slane %v5699_v44, 4 }
 0x291   : > { %v5571_v34 = vrot.slane %v5570_v43, 1  ;;  %v5680_v19 = vadd.f32 %v5679_v54, %v5678_v53  ;;  %v5694_v22 = vadd.f32 %v5693_v24, %v5692_v18  ;;  %v5687_v57 = vadd.f32 %v5686_v55, %v5685_v23 }
 0x292   : > { %v5584_v30 = vadd.f32 %v5583_v17, %v5582_v62  ;;  %v5576_v26 = vrot.slane %v5575_v42, 2  ;;  %v5589_v36 = vadd.f32 %v5588_v32, %v5587_v13  ;;  %v5701_v0 = vadd.f32 %v5700_v52, %v5699_v44  ;;  %v10262_v17 = vld [vmem:[#allocation60_spill] sm:$0xff]  ;;  %v10264_v52 = vld [vmem:[#allocation61_spill] sm:$0xff] }
 0x293   : > { %v5681_v16 = vrot.slane %v5680_v19, 2  ;;  %v5695_v40 = vrot.slane %v5694_v22, 2  ;;  %v5688_v49 = vrot.slane %v5687_v57, 2  ;;  %v5572_v46 = vadd.f32 %v5571_v34, %v5570_v43 }
 0x294   : > { %v5585_v39 = vrot.slane %v5584_v30, 1  ;;  %v5577_v7 = vadd.f32 %v5576_v26, %v5575_v42  ;;  %v5590_v8 = vrot.slane %v5589_v36, 2  ;;  %v5702_v6 = vrot.slane %v5701_v0, 2 }
 0x295   : > { %v5682_v31 = vadd.f32 %v5681_v16, %v5680_v19  ;;  %v5696_v25 = vadd.f32 %v5695_v40, %v5694_v22  ;;  %v5689_v11 = vadd.f32 %v5688_v49, %v5687_v57  ;;  %vm5937_vm2 = vcmask 1043459   ;;  %v10265_v19 = vld [vmem:[#allocation56_spill] sm:$0xff]  ;;  %v10268_v40 = vld [vmem:[#allocation53_spill] sm:$0xff] }
 0x296   : > { %v5578_v51 = vrot.slane %v5577_v7, 1  ;;  %v5591_v35 = vadd.f32 %v5590_v8, %v5589_v36  ;;  %v5703_v45 = vadd.f32 %v5702_v6, %v5701_v0  ;;  %v5586_v61 = vadd.f32 %v5585_v39, %v5584_v30  ;;  %v10266_v30 = vld [vmem:[#allocation52_spill] sm:$0xff]  ;;  %v10267_v0 = vld [vmem:[#allocation57_spill] sm:$0xff] }
 0x297   : > { %v5683_v21 = vrot.slane %v5682_v31, 1  ;;  %v5697_v58 = vrot.slane %v5696_v25, 1  ;;  %v5690_v27 = vrot.slane %v5689_v11, 1  ;;  %vm5939_vm3 = vcmask 1045509  }
 0x298   : > { %v5579_v10 = vadd.f32 %v5578_v51, %v5577_v7  ;;  %v5592_v59 = vrot.slane %v5591_v35, 1  ;;  %v5704_v56 = vrot.slane %v5703_v45, 1  ;;  %v5938_v60 = vsel %vm5937_vm2, %v9586_v3, %v9599_v37  ;;  %v10261_v37 = vld [vmem:[#allocation48_spill] sm:$0xff] }
 0x299   : > { %v5684_v38 = vadd.f32 %v5683_v21, %v5682_v31  ;;  %v5698_v1 = vadd.f32 %v5697_v58, %v5696_v25  ;;  %v5691_v9 = vadd.f32 %v5690_v27, %v5689_v11  ;;  %v5940_v13 = vsel %vm5939_vm3, %v9586_v3, %v5938_v60 }
 0x29a   : > { %v5811_v15 = vcombine.low %v5572_v46, %v5579_v10  ;;  %v5593_v28 = vadd.f32 %v5592_v59, %v5591_v35  ;;  %v5705_v29 = vadd.f32 %v5704_v56, %v5703_v45  ;;  %vm5941_vm4 = vcmask 1047559  }
 0x29b   : > { %v5879_v20 = vcombine.low %v5684_v38, %v5691_v9  ;;  %v5942_v44 = vsel %vm5941_vm4, %v9586_v3, %v5940_v13  ;;  %v1745_v55 = vrot.slane %v10261_v37, %v10202_v5  ;;  %v2081_v42 = vrot.slane %v10262_v17, %v10202_v5  ;;  %v10263_v3 = vld [vmem:[#allocation49_spill] sm:$0xff] }
 0x29c   : > { %v5819_v41 = vrot.slane %v5811_v15, %v9531_v50  ;;  %v5812_v33 = vcombine.low %v5586_v61, %v5593_v28  ;;  %v5880_v12 = vcombine.low %v5698_v1, %v5705_v29  ;;  %5968 = vst [vmem:[%s9660_s27] sm:$0xff] %v5942_v44  ;;  %v1753_v32 = vrot.slane %v10263_v3, %v10202_v5 }
 0x29d   : > { %v5887_v63 = vrot.slane %v5879_v20, %v9531_v50  ;;  %v2089_v34 = vrot.slane %v10264_v52, %v10202_v5  ;;  %v1905_v22 = vrot.slane %v10265_v19, %v10202_v5  ;;  %v1809_v57 = vrot.slane %v1745_v55, %v10202_v5 }
 0x29e   : > { %v5826_v4 = vrot.slane %v5812_v33, %v9531_v50  ;;  %v5894_v14 = vrot.slane %v5880_v12, %v9531_v50  ;;  %v2241_v26 = vrot.slane %v10266_v30, %v10202_v5  ;;  %v2145_v36 = vrot.slane %v2081_v42, %v10202_v5 }
 0x29f   : > { %v1913_v16 = vrot.slane %v10267_v0, %v10202_v5  ;;  %v2249_v49 = vrot.slane %v10268_v40, %v10202_v5  ;;  %v1817_v39 = vrot.slane %v1753_v32, %v10202_v5  ;;  %v2153_v7 = vrot.slane %v2089_v34, %v10202_v5 }
 0x2a0   : > { %v5827_v53 = vcombine.low %v5819_v41, %v5826_v4  ;;  %v5895_v18 = vcombine.low %v5887_v63, %v5894_v14  ;;  %v1985_v8 = vrot.slane %v1905_v22, %v10202_v5  ;;  %v1749_v6 = vrot.slane %v10261_v37, %v10227_v48 }
 0x2a1   : > { %vm1846_vm5 = vcmp.eq.s32.totalorder %v10247_v2, %v1809_v57  ;;  %v2321_v31 = vrot.slane %v2241_v26, %v10202_v5  ;;  %v2085_v25 = vrot.slane %v10262_v17, %v10227_v48  ;;  %vm2182_vm6 = vcmp.eq.s32.totalorder %v10247_v2, %v2145_v36 }
 0x2a2   : > { %v5945_v23 = vrot.slane %v5895_v18, 7  ;;  %v1993_v11 = vrot.slane %v1913_v16, %v10202_v5  ;;  %v2329_v46 = vrot.slane %v2249_v49, %v10202_v5  ;;  %vm1848_vm7 = vcmp.eq.s32.totalorder %v10247_v2, %v1817_v39 }
 0x2a3   : > { %vm2184_vm8 = vcmp.eq.s32.totalorder %v10247_v2, %v2153_v7  ;;  %v2022_v51 = vsel %vm1846_vm5, %v1985_v8, 0.0  ;;  %v1813_v35 = vrot.slane %v1749_v6, %v10202_v5  ;;  %v1757_v45 = vrot.slane %v10263_v3, %v10227_v48 }
 0x2a4   : > { %v5946_v62 = vsel %vm5935_vm0, %v5945_v23, %v5827_v53  ;;  %v2093_v21 = vrot.slane %v10264_v52, %v10227_v48  ;;  %v2358_v58 = vsel %vm2182_vm6, %v2321_v31, 0.0  ;;  %v1909_v27 = vrot.slane %v10265_v19, %v10227_v48 }
 0x2a5   : > { %v5947_v43 = vsel %vm5937_vm2, %v5945_v23, %v5946_v62  ;;  %v2149_v61 = vrot.slane %v2085_v25, %v10202_v5  ;;  %v2245_v10 = vrot.slane %v10266_v30, %v10227_v48  ;;  %v2024_v59 = vsel %vm1848_vm7, %v1993_v11, 0.0 }
 0x2a6   : > { %v5948_v54 = vsel %vm5939_vm3, %v5945_v23, %v5947_v43  ;;  %v2360_v56 = vsel %vm2184_vm8, %v2329_v46, 0.0  ;;  %v1917_v38 = vrot.slane %v10267_v0, %v10227_v48  ;;  %v2253_v1 = vrot.slane %v10268_v40, %v10227_v48 }
 0x2a7   : > { %v5949_v24 = vsel %vm5941_vm4, %v5945_v23, %v5948_v54  ;;  %v9711_v9 = vadd.f32 %v2358_v58, %v2022_v51  ;;  %vm1847_vm9 = vcmp.eq.s32.totalorder %v10247_v2, %v1813_v35  ;;  %v1821_v15 = vrot.slane %v1757_v45, %v10202_v5 }
 0x2a8   : > { %5969 = vst [vmem:[%s9660_s27 + $0x8] sm:$0xff] %v5949_v24  ;;  %v2157_v28 = vrot.slane %v2093_v21, %v10202_v5  ;;  %v9716_v29 = vadd.f32 %v2360_v56, %v2024_v59  ;;  %v1989_v20 = vrot.slane %v1909_v27, %v10202_v5  ;;  %vm2183_vm10 = vcmp.eq.s32.totalorder %v10247_v2, %v2149_v61 }
 0x2a9   : > { %v2325_v41 = vrot.slane %v2245_v10, %v10202_v5  ;;  %v1997_v33 = vrot.slane %v1917_v38, %v10202_v5  ;;  %v2333_v12 = vrot.slane %v2253_v1, %v10202_v5  ;;  %vm1862_vm11 = vcmp.eq.s32.totalorder %v10162_v47, %v1809_v57 }
 0x2aa   : > { %vm2198_vm12 = vcmp.eq.s32.totalorder %v10162_v47, %v2145_v36  ;;  %vm1864_vm13 = vcmp.eq.s32.totalorder %v10162_v47, %v1817_v39  ;;  %vm2200_vm14 = vcmp.eq.s32.totalorder %v10162_v47, %v2153_v7  ;;  %vm1863_vm15 = vcmp.eq.s32.totalorder %v10162_v47, %v1813_v35 }
 0x2ab   : > { %vm2199_vm1 = vcmp.eq.s32.totalorder %v10162_v47, %v2149_v61  ;;  %vm1849_vm5 = vcmp.eq.s32.totalorder %v10247_v2, %v1821_v15  ;;  %vm2185_vm6 = vcmp.eq.s32.totalorder %v10247_v2, %v2157_v28  ;;  %vm1865_vm7 = vcmp.eq.s32.totalorder %v10162_v47, %v1821_v15 }
 0x2ac   : > { %vm2201_vm8 = vcmp.eq.s32.totalorder %v10162_v47, %v2157_v28  ;;  %v2023_v63 = vsel %vm1847_vm9, %v1989_v20, 0.0  ;;  %v2359_v4 = vsel %vm2183_vm10, %v2325_v41, 0.0  ;;  %v2038_v14 = vsel %vm1862_vm11, %v1985_v8, 0.0 }
 0x2ad   : > { %v2374_v53 = vsel %vm2198_vm12, %v2321_v31, 0.0  ;;  %v2040_v18 = vsel %vm1864_vm13, %v1993_v11, 0.0  ;;  %v2376_v23 = vsel %vm2200_vm14, %v2329_v46, 0.0  ;;  %v2039_v62 = vsel %vm1863_vm15, %v1989_v20, 0.0 }
 0x2ae   : > { %v2375_v60 = vsel %vm2199_vm1, %v2325_v41, 0.0  ;;  %v2025_v13 = vsel %vm1849_vm5, %v1997_v33, 0.0  ;;  %v2361_v44 = vsel %vm2185_vm6, %v2333_v12, 0.0  ;;  %v2041_v43 = vsel %vm1865_vm7, %v1997_v33, 0.0 }
 0x2af   : > { %v2377_v54 = vsel %vm2201_vm8, %v2333_v12, 0.0  ;;  %v2406_v24 = vadd.f32 %v2374_v53, %v2038_v14  ;;  %v2391_v55 = vadd.f32 %v2359_v4, %v2023_v63  ;;  %v2408_v17 = vadd.f32 %v2376_v23, %v2040_v18 }
 0x2b0   : > { %v2407_v42 = vadd.f32 %v2375_v60, %v2039_v62  ;;  %v2393_v34 = vadd.f32 %v2361_v44, %v2025_v13  ;;  %v2409_v19 = vadd.f32 %v2377_v54, %v2041_v43 }
 0x2e5   : > { %v5296_v37 = vpop.f32.mrb[16].mxu0 }
 0x2e6   : > { %v5482_v3 = vmul.f32 %v5296_v37, %v9711_v9  ;;  %v5349_v32 = vpop.f32.mrb[16].mxu1  ;;  %v5298_v52 = vpop.f32.mrb[17].mxu0 }
 0x2e7   : > { %v5484_v22 = vmul.f32 %v5349_v32, %v9716_v29  ;;  %v5351_v57 = vpop.f32.mrb[17].mxu1  ;;  %v5300_v30 = vpop.f32.mrb[18].mxu0  ;;  %v5483_v16 = vmul.f32 %v5298_v52, %v2391_v55 }
 0x2e8   : > { %v5498_v26 = vmul.f32 %v5300_v30, %v2406_v24  ;;  %v5353_v36 = vpop.f32.mrb[18].mxu1  ;;  %v5302_v0 = vpop.f32.mrb[19].mxu0  ;;  %v5485_v7 = vmul.f32 %v5351_v57, %v2393_v34 }
 0x2e9   : > { %v5500_v40 = vmul.f32 %v5353_v36, %v2408_v17  ;;  %v5499_v49 = vmul.f32 %v5302_v0, %v2407_v42  ;;  %v5355_v39 = vpop.f32.mrb[19].mxu1 }
 0x2ea   : > { %v5594_v8 = vadd.f32 %v5498_v26, %v5482_v3  ;;  %v5501_v6 = vmul.f32 %v5355_v39, %v2409_v19 }
 0x2eb   : > { %v5608_v31 = vadd.f32 %v5500_v40, %v5484_v22  ;;  %v5601_v25 = vadd.f32 %v5499_v49, %v5483_v16 }
 0x2ec   : > { %v5595_v11 = vrot.slane %v5594_v8, 4  ;;  %v5615_v46 = vadd.f32 %v5501_v6, %v5485_v7 }
 0x2ed   : > { %v5609_v51 = vrot.slane %v5608_v31, 4  ;;  %v5602_v35 = vrot.slane %v5601_v25, 4  ;;  %v5306_v45 = vpop.f32.mrb[20].mxu0 }
 0x2ee   : > { %v5596_v21 = vadd.f32 %v5595_v11, %v5594_v8  ;;  %v5616_v58 = vrot.slane %v5615_v46, 4  ;;  %v5514_v27 = vmul.f32 %v5306_v45, %v9711_v9  ;;  %v5359_v61 = vpop.f32.mrb[20].mxu1  ;;  %v5308_v10 = vpop.f32.mrb[21].mxu0 }
 0x2ef   : > { %v5610_v59 = vadd.f32 %v5609_v51, %v5608_v31  ;;  %v5603_v56 = vadd.f32 %v5602_v35, %v5601_v25  ;;  %v5516_v38 = vmul.f32 %v5359_v61, %v9716_v29  ;;  %v5515_v1 = vmul.f32 %v5308_v10, %v2391_v55  ;;  %v5361_v15 = vpop.f32.mrb[21].mxu1  ;;  %v5310_v28 = vpop.f32.mrb[22].mxu0 }
 0x2f0   : > { %v5597_v20 = vrot.slane %v5596_v21, 2  ;;  %v5617_v41 = vadd.f32 %v5616_v58, %v5615_v46  ;;  %v5517_v33 = vmul.f32 %v5361_v15, %v2393_v34  ;;  %v5530_v12 = vmul.f32 %v5310_v28, %v2406_v24  ;;  %v5363_v63 = vpop.f32.mrb[22].mxu1  ;;  %v5312_v4 = vpop.f32.mrb[23].mxu0 }
 0x2f1   : > { %v5611_v14 = vrot.slane %v5610_v59, 2  ;;  %v5604_v53 = vrot.slane %v5603_v56, 2  ;;  %v5532_v18 = vmul.f32 %v5363_v63, %v2408_v17  ;;  %v5531_v23 = vmul.f32 %v5312_v4, %v2407_v42  ;;  %v5365_v9 = vpop.f32.mrb[23].mxu1 }
 0x2f2   : > { %v5598_v62 = vadd.f32 %v5597_v20, %v5596_v21  ;;  %v5618_v60 = vrot.slane %v5617_v41, 2  ;;  %v5706_v13 = vadd.f32 %v5530_v12, %v5514_v27  ;;  %v5533_v44 = vmul.f32 %v5365_v9, %v2409_v19 }
 0x2f3   : > { %v5612_v43 = vadd.f32 %v5611_v14, %v5610_v59  ;;  %v5605_v29 = vadd.f32 %v5604_v53, %v5603_v56  ;;  %v5720_v54 = vadd.f32 %v5532_v18, %v5516_v38  ;;  %v5713_v37 = vadd.f32 %v5531_v23, %v5515_v1  ;;  %v10269_v23 = vld [vmem:[#allocation50_spill] sm:$0xff] }
 0x2f4   : > { %v5599_v55 = vrot.slane %v5598_v62, 1  ;;  %v5619_v3 = vadd.f32 %v5618_v60, %v5617_v41  ;;  %v5707_v32 = vrot.slane %v5706_v13, 4  ;;  %v5727_v52 = vadd.f32 %v5533_v44, %v5517_v33 }
 0x2f5   : > { %v5613_v24 = vrot.slane %v5612_v43, 1  ;;  %v5606_v34 = vrot.slane %v5605_v29, 1  ;;  %v5721_v22 = vrot.slane %v5720_v54, 4  ;;  %v5714_v57 = vrot.slane %v5713_v37, 4 }
 0x2f6   : > { %v5600_v30 = vadd.f32 %v5599_v55, %v5598_v62  ;;  %v5620_v17 = vrot.slane %v5619_v3, 1  ;;  %v5708_v42 = vadd.f32 %v5707_v32, %v5706_v13  ;;  %v5728_v26 = vrot.slane %v5727_v52, 4  ;;  %v10270_v62 = vld [vmem:[#allocation62_spill] sm:$0xff]  ;;  %v10271_v13 = vld [vmem:[#allocation51_spill] sm:$0xff] }
 0x2f7   : > { %v5614_v36 = vadd.f32 %v5613_v24, %v5612_v43  ;;  %v5607_v0 = vadd.f32 %v5606_v34, %v5605_v29  ;;  %v5722_v16 = vadd.f32 %v5721_v22, %v5720_v54  ;;  %v5715_v19 = vadd.f32 %v5714_v57, %v5713_v37  ;;  %v10272_v43 = vld [vmem:[#allocation63_spill] sm:$0xff]  ;;  %v10273_v37 = vld [vmem:[#allocation58_spill] sm:$0xff] }
 0x2f8   : > { %v5621_v40 = vadd.f32 %v5620_v17, %v5619_v3  ;;  %v5709_v49 = vrot.slane %v5708_v42, 2  ;;  %v5729_v39 = vadd.f32 %v5728_v26, %v5727_v52  ;;  %v1761_v9 = vrot.slane %v10269_v23, %v10202_v5  ;;  %v10274_v32 = vld [vmem:[#allocation54_spill] sm:$0xff]  ;;  %v10275_v34 = vld [vmem:[#allocation59_spill] sm:$0xff] }
 0x2f9   : > { %v5828_v7 = vcombine.low %v5600_v30, %v5607_v0  ;;  %v5723_v8 = vrot.slane %v5722_v16, 2  ;;  %v5716_v6 = vrot.slane %v5715_v19, 2  ;;  %v2097_v60 = vrot.slane %v10270_v62, %v10202_v5  ;;  %v10276_v30 = vld [vmem:[#allocation55_spill] sm:$0xff] }
 0x2fa   : > { %v5829_v31 = vcombine.low %v5614_v36, %v5621_v40  ;;  %v5710_v25 = vadd.f32 %v5709_v49, %v5708_v42  ;;  %v5730_v11 = vrot.slane %v5729_v39, 2  ;;  %v1769_v44 = vrot.slane %v10271_v13, %v10202_v5 }
 0x2fb   : > { %v5836_v46 = vrot.slane %v5828_v7, %v9531_v50  ;;  %v5724_v51 = vadd.f32 %v5723_v8, %v5722_v16  ;;  %v5717_v35 = vadd.f32 %v5716_v6, %v5715_v19  ;;  %v2105_v29 = vrot.slane %v10272_v43, %v10202_v5 }
 0x2fc   : > { %v5843_v45 = vrot.slane %v5829_v31, %v9531_v50  ;;  %v5711_v21 = vrot.slane %v5710_v25, 1  ;;  %v5731_v58 = vadd.f32 %v5730_v11, %v5729_v39  ;;  %v1825_v54 = vrot.slane %v1761_v9, %v10202_v5 }
 0x2fd   : > { %v5725_v27 = vrot.slane %v5724_v51, 1  ;;  %v5718_v61 = vrot.slane %v5717_v35, 1  ;;  %v1921_v55 = vrot.slane %v10273_v37, %v10202_v5  ;;  %v2161_v3 = vrot.slane %v2097_v60, %v10202_v5 }
 0x2fe   : > { %v5844_v10 = vcombine.low %v5836_v46, %v5843_v45  ;;  %v5712_v59 = vadd.f32 %v5711_v21, %v5710_v25  ;;  %v5732_v56 = vrot.slane %v5731_v58, 1  ;;  %v2257_v52 = vrot.slane %v10274_v32, %v10202_v5 }
 0x2ff   : > { %v5726_v38 = vadd.f32 %v5725_v27, %v5724_v51  ;;  %v5719_v1 = vadd.f32 %v5718_v61, %v5717_v35  ;;  %v1833_v24 = vrot.slane %v1769_v44, %v10202_v5  ;;  %v1929_v22 = vrot.slane %v10275_v34, %v10202_v5 }
 0x300   : > { %v5733_v15 = vadd.f32 %v5732_v56, %v5731_v58  ;;  %v2169_v57 = vrot.slane %v2105_v29, %v10202_v5  ;;  %v2265_v17 = vrot.slane %v10276_v30, %v10202_v5  ;;  %v1765_v42 = vrot.slane %v10269_v23, %v10227_v48 }
 0x301   : > { %v5896_v28 = vcombine.low %v5712_v59, %v5719_v1  ;;  %vm1850_vm9 = vcmp.eq.s32.totalorder %v10247_v2, %v1825_v54  ;;  %v2001_v26 = vrot.slane %v1921_v55, %v10202_v5  ;;  %v2101_v36 = vrot.slane %v10270_v62, %v10227_v48 }
 0x302   : > { %v5897_v20 = vcombine.low %v5726_v38, %v5733_v15  ;;  %vm2186_vm10 = vcmp.eq.s32.totalorder %v10247_v2, %v2161_v3  ;;  %v2337_v0 = vrot.slane %v2257_v52, %v10202_v5  ;;  %vm1852_vm11 = vcmp.eq.s32.totalorder %v10247_v2, %v1833_v24 }
 0x303   : > { %v5904_v41 = vrot.slane %v5896_v28, %v9531_v50  ;;  %v2009_v16 = vrot.slane %v1929_v22, %v10202_v5  ;;  %vm2188_vm12 = vcmp.eq.s32.totalorder %v10247_v2, %v2169_v57  ;;  %v2345_v19 = vrot.slane %v2265_v17, %v10202_v5 }
 0x304   : > { %v5911_v33 = vrot.slane %v5897_v20, %v9531_v50  ;;  %v1773_v40 = vrot.slane %v10271_v13, %v10227_v48  ;;  %v2109_v49 = vrot.slane %v10272_v43, %v10227_v48  ;;  %v1829_v39 = vrot.slane %v1765_v42, %v10202_v5 }
 0x305   : > { %v1925_v7 = vrot.slane %v10273_v37, %v10227_v48  ;;  %v2261_v8 = vrot.slane %v10274_v32, %v10227_v48  ;;  %v1933_v6 = vrot.slane %v10275_v34, %v10227_v48  ;;  %v2165_v31 = vrot.slane %v2101_v36, %v10202_v5 }
 0x306   : > { %v5912_v12 = vcombine.low %v5904_v41, %v5911_v33  ;;  %v2269_v25 = vrot.slane %v10276_v30, %v10227_v48  ;;  %v2026_v11 = vsel %vm1850_vm9, %v2001_v26, 0.0  ;;  %v2362_v46 = vsel %vm2186_vm10, %v2337_v0, 0.0 }
 0x307   : > { %v2028_v51 = vsel %vm1852_vm11, %v2009_v16, 0.0  ;;  %v2364_v35 = vsel %vm2188_vm12, %v2345_v19, 0.0  ;;  %v1837_v45 = vrot.slane %v1773_v40, %v10202_v5  ;;  %v2173_v21 = vrot.slane %v2109_v49, %v10202_v5 }
 0x308   : > { %v5952_v63 = vrot.slane %v5912_v12, 7  ;;  %vm1851_vm13 = vcmp.eq.s32.totalorder %v10247_v2, %v1829_v39  ;;  %v2005_v58 = vrot.slane %v1925_v7, %v10202_v5  ;;  %v2341_v27 = vrot.slane %v2261_v8, %v10202_v5 }
 0x309   : > { %v2013_v61 = vrot.slane %v1933_v6, %v10202_v5  ;;  %vm2187_vm14 = vcmp.eq.s32.totalorder %v10247_v2, %v2165_v31  ;;  %v2349_v48 = vrot.slane %v2269_v25, %v10202_v5  ;;  %vm1866_vm15 = vcmp.eq.s32.totalorder %v10162_v47, %v1825_v54 }
 0x30a   : > { %v5953_v4 = vsel %vm5935_vm0, %v5952_v63, %v5844_v10  ;;  %vm2202_vm1 = vcmp.eq.s32.totalorder %v10162_v47, %v2161_v3  ;;  %vm1868_vm5 = vcmp.eq.s32.totalorder %v10162_v47, %v1833_v24  ;;  %vm2204_vm6 = vcmp.eq.s32.totalorder %v10162_v47, %v2169_v57 }
 0x30b   : > { %v5954_v14 = vsel %vm5937_vm2, %v5952_v63, %v5953_v4  ;;  %vm1867_vm7 = vcmp.eq.s32.totalorder %v10162_v47, %v1829_v39  ;;  %vm2203_vm8 = vcmp.eq.s32.totalorder %v10162_v47, %v2165_v31  ;;  %vm1853_vm9 = vcmp.eq.s32.totalorder %v10247_v2, %v1837_v45 }
 0x30c   : > { %v5955_v53 = vsel %vm5939_vm3, %v5952_v63, %v5954_v14  ;;  %vm2189_vm10 = vcmp.eq.s32.totalorder %v10247_v2, %v2173_v21  ;;  %vm1869_vm11 = vcmp.eq.s32.totalorder %v10162_v47, %v1837_v45  ;;  %vm2205_vm12 = vcmp.eq.s32.totalorder %v10162_v47, %v2173_v21 }
 0x30d   : > { %v5956_v18 = vsel %vm5941_vm4, %v5952_v63, %v5955_v53  ;;  %v2027_v5 = vsel %vm1851_vm13, %v2005_v58, 0.0  ;;  %v2363_v10 = vsel %vm2187_vm14, %v2341_v27, 0.0  ;;  %v2042_v59 = vsel %vm1866_vm15, %v2001_v26, 0.0 }
 0x30e   : > { %5970 = vst [vmem:[%s9660_s27 + $0x10] sm:$0xff] %v5956_v18  ;;  %v2378_v56 = vsel %vm2202_vm1, %v2337_v0, 0.0  ;;  %v2044_v38 = vsel %vm1868_vm5, %v2009_v16, 0.0  ;;  %v2380_v1 = vsel %vm2204_vm6, %v2345_v19, 0.0  ;;  %v2043_v15 = vsel %vm1867_vm7, %v2005_v58, 0.0 }
 0x30f   : > { %v2379_v28 = vsel %vm2203_vm8, %v2341_v27, 0.0  ;;  %v2029_v20 = vsel %vm1853_vm9, %v2013_v61, 0.0  ;;  %v2365_v41 = vsel %vm2189_vm10, %v2349_v48, 0.0  ;;  %v2045_v33 = vsel %vm1869_vm11, %v2013_v61, 0.0 }
 0x310   : > { %v2381_v12 = vsel %vm2205_vm12, %v2349_v48, 0.0  ;;  %v2394_v63 = vadd.f32 %v2362_v46, %v2026_v11  ;;  %v2410_v4 = vadd.f32 %v2378_v56, %v2042_v59  ;;  %v2396_v53 = vadd.f32 %v2364_v35, %v2028_v51 }
 0x311   : > { %v2395_v18 = vadd.f32 %v2363_v10, %v2027_v5  ;;  %v2412_v47 = vadd.f32 %v2380_v1, %v2044_v38  ;;  %v2411_v23 = vadd.f32 %v2379_v28, %v2043_v15  ;;  %v2397_v62 = vadd.f32 %v2365_v41, %v2029_v20 }
 0x312   : > { %v2413_v60 = vadd.f32 %v2381_v12, %v2045_v33 }
 0x326   : > { %v5402_v14 = vpop.f32.mrb[24].mxu0 }
 0x327   : > { %v5455_v2 = vpop.f32.mrb[24].mxu1  ;;  %v5404_v9 = vpop.f32.mrb[25].mxu0  ;;  %v5486_v43 = vmul.f32 %v5402_v14, %v2394_v63 }
 0x328   : > { %v5457_v13 = vpop.f32.mrb[25].mxu1  ;;  %v5406_v44 = vpop.f32.mrb[26].mxu0  ;;  %v5488_v55 = vmul.f32 %v5455_v2, %v2396_v53  ;;  %v5487_v3 = vmul.f32 %v5404_v9, %v2395_v18 }
 0x329   : > { %v5502_v29 = vmul.f32 %v5406_v44, %v2410_v4  ;;  %v5459_v54 = vpop.f32.mrb[26].mxu1  ;;  %v5408_v37 = vpop.f32.mrb[27].mxu0  ;;  %v5489_v34 = vmul.f32 %v5457_v13, %v2397_v62 }
 0x32a   : > { %v5504_v32 = vmul.f32 %v5459_v54, %v2412_v47  ;;  %v5503_v52 = vmul.f32 %v5408_v37, %v2411_v23  ;;  %v5461_v24 = vpop.f32.mrb[27].mxu1 }
 0x32b   : > { %v5622_v22 = vadd.f32 %v5502_v29, %v5486_v43  ;;  %v5505_v57 = vmul.f32 %v5461_v24, %v2413_v60 }
 0x32c   : > { %v5636_v30 = vadd.f32 %v5504_v32, %v5488_v55  ;;  %v5629_v17 = vadd.f32 %v5503_v52, %v5487_v3 }
 0x32d   : > { %v5623_v42 = vrot.slane %v5622_v22, 4  ;;  %v5643_v26 = vadd.f32 %v5505_v57, %v5489_v34 }
 0x32e   : > { %v5637_v36 = vrot.slane %v5636_v30, 4  ;;  %v5630_v0 = vrot.slane %v5629_v17, 4  ;;  %v5412_v16 = vpop.f32.mrb[28].mxu0 }
 0x32f   : > { %v5624_v19 = vadd.f32 %v5623_v42, %v5622_v22  ;;  %v5644_v40 = vrot.slane %v5643_v26, 4  ;;  %v5518_v49 = vmul.f32 %v5412_v16, %v2394_v63  ;;  %v5465_v39 = vpop.f32.mrb[28].mxu1  ;;  %v5414_v7 = vpop.f32.mrb[29].mxu0 }
 0x330   : > { %v5638_v8 = vadd.f32 %v5637_v36, %v5636_v30  ;;  %v5631_v6 = vadd.f32 %v5630_v0, %v5629_v17  ;;  %v5520_v31 = vmul.f32 %v5465_v39, %v2396_v53  ;;  %v5519_v25 = vmul.f32 %v5414_v7, %v2395_v18  ;;  %v5467_v11 = vpop.f32.mrb[29].mxu1  ;;  %v5416_v46 = vpop.f32.mrb[30].mxu0 }
 0x331   : > { %v5625_v51 = vrot.slane %v5624_v19, 2  ;;  %v5645_v35 = vadd.f32 %v5644_v40, %v5643_v26  ;;  %v5521_v45 = vmul.f32 %v5467_v11, %v2397_v62  ;;  %v5534_v21 = vmul.f32 %v5416_v46, %v2410_v4  ;;  %v5469_v58 = vpop.f32.mrb[30].mxu1  ;;  %v5418_v27 = vpop.f32.mrb[31].mxu0 }
 0x332   : > { %v5639_v61 = vrot.slane %v5638_v8, 2  ;;  %v5632_v48 = vrot.slane %v5631_v6, 2  ;;  %v5536_v5 = vmul.f32 %v5469_v58, %v2412_v47  ;;  %v5535_v10 = vmul.f32 %v5418_v27, %v2411_v23  ;;  %v5471_v59 = vpop.f32.mrb[31].mxu1 }
 0x333   : > { %v5626_v56 = vadd.f32 %v5625_v51, %v5624_v19  ;;  %v5646_v38 = vrot.slane %v5645_v35, 2  ;;  %v5734_v1 = vadd.f32 %v5534_v21, %v5518_v49  ;;  %v5537_v15 = vmul.f32 %v5471_v59, %v2413_v60 }
 0x334   : > { %v5640_v28 = vadd.f32 %v5639_v61, %v5638_v8  ;;  %v5633_v20 = vadd.f32 %v5632_v48, %v5631_v6  ;;  %v5748_v41 = vadd.f32 %v5536_v5, %v5520_v31  ;;  %v5741_v33 = vadd.f32 %v5535_v10, %v5519_v25 }
 0x335   : > { %v5627_v12 = vrot.slane %v5626_v56, 1  ;;  %v5647_v63 = vadd.f32 %v5646_v38, %v5645_v35  ;;  %v5735_v14 = vrot.slane %v5734_v1, 4  ;;  %v5755_v53 = vadd.f32 %v5537_v15, %v5521_v45 }
 0x336   : > { %v5641_v4 = vrot.slane %v5640_v28, 1  ;;  %v5634_v18 = vrot.slane %v5633_v20, 1  ;;  %v5749_v2 = vrot.slane %v5748_v41, 4  ;;  %v5742_v9 = vrot.slane %v5741_v33, 4 }
 0x337   : > { %v5628_v62 = vadd.f32 %v5627_v12, %v5626_v56  ;;  %v5648_v47 = vrot.slane %v5647_v63, 1  ;;  %v5736_v23 = vadd.f32 %v5735_v14, %v5734_v1  ;;  %v5756_v13 = vrot.slane %v5755_v53, 4 }
 0x338   : > { %v5642_v44 = vadd.f32 %v5641_v4, %v5640_v28  ;;  %v5635_v43 = vadd.f32 %v5634_v18, %v5633_v20  ;;  %v5750_v29 = vadd.f32 %v5749_v2, %v5748_v41  ;;  %v5743_v60 = vadd.f32 %v5742_v9, %v5741_v33 }
 0x339   : > { %v5649_v54 = vadd.f32 %v5648_v47, %v5647_v63  ;;  %v5737_v37 = vrot.slane %v5736_v23, 2  ;;  %v5757_v55 = vadd.f32 %v5756_v13, %v5755_v53 }
 0x33a   : > { %v5845_v3 = vcombine.low %v5628_v62, %v5635_v43  ;;  %v5751_v32 = vrot.slane %v5750_v29, 2  ;;  %v5744_v52 = vrot.slane %v5743_v60, 2 }
 0x33b   : > { %v5846_v24 = vcombine.low %v5642_v44, %v5649_v54  ;;  %v5738_v34 = vadd.f32 %v5737_v37, %v5736_v23  ;;  %v5758_v22 = vrot.slane %v5757_v55, 2 }
 0x33c   : > { %v5853_v57 = vrot.slane %v5845_v3, %v9531_v50  ;;  %v5752_v30 = vadd.f32 %v5751_v32, %v5750_v29  ;;  %v5745_v17 = vadd.f32 %v5744_v52, %v5743_v60 }
 0x33d   : > { %v5860_v42 = vrot.slane %v5846_v24, %v9531_v50  ;;  %v5739_v26 = vrot.slane %v5738_v34, 1  ;;  %v5759_v36 = vadd.f32 %v5758_v22, %v5757_v55 }
 0x33e   : > { %v5753_v0 = vrot.slane %v5752_v30, 1  ;;  %v5746_v16 = vrot.slane %v5745_v17, 1 }
 0x33f   : > { %v5861_v19 = vcombine.low %v5853_v57, %v5860_v42  ;;  %v5740_v40 = vadd.f32 %v5739_v26, %v5738_v34  ;;  %v5760_v49 = vrot.slane %v5759_v36, 1 }
 0x340   : > { %v5754_v39 = vadd.f32 %v5753_v0, %v5752_v30  ;;  %v5747_v7 = vadd.f32 %v5746_v16, %v5745_v17 }
 0x341   : > { %v5761_v8 = vadd.f32 %v5760_v49, %v5759_v36 }
 0x342   : > { %v5913_v6 = vcombine.low %v5740_v40, %v5747_v7 }
 0x343   : > { %v5914_v31 = vcombine.low %v5754_v39, %v5761_v8 }
 0x344   : > { %v5921_v25 = vrot.slane %v5913_v6, %v9531_v50 }
 0x345   : > { %v5928_v11 = vrot.slane %v5914_v31, %v9531_v50 }
 0x347   : > { %v5929_v46 = vcombine.low %v5921_v25, %v5928_v11 }
 0x349   : > { %v5959_v51 = vrot.slane %v5929_v46, 7 }
 0x34b   : > { %v5960_v35 = vsel %vm5935_vm0, %v5959_v51, %v5861_v19 }
 0x34c   : > { %v5961_v45 = vsel %vm5937_vm2, %v5959_v51, %v5960_v35 }
 0x34d   : > { %v5962_v21 = vsel %vm5939_vm3, %v5959_v51, %v5961_v45 }
 0x34e   : > { %v5963_v50 = vsel %vm5941_vm4, %v5959_v51, %v5962_v21 }
 0x34f   : > { %5971 = vst [vmem:[%s9660_s27 + $0x18] sm:$0xff] %v5963_v50 }
 0x350   : > { %6312 = shalt.err (!%p6309_p5)
}
 0x351   : > { %s6313_s13 = scalar_lea.hbm %s9829_s25, 512  ;;  %s6317_s23 = scalar_lea.hbm %s9896_s2, 2048 }
 0x352   : > { %p6314_p9 = scmp.ne.s32.totalorder %s9829_s25, %s6313_s13  ;;  %p6318_p8 = scmp.lt.u32.totalorder %s9829_s25, %s9896_s2 }
 0x353   : > { %p6319_p11 = scmp.lt.u32.totalorder %s6317_s23, %s6313_s13  ;;  %p6321_p3 = scmp.lt.u32.totalorder %s6313_s13, %s9829_s25 }
 0x354   : > { %p6315_p0 = pnand %p6314_p9, %p10277_p6 }
 0x355   : > { %p6320_p7 = por %p6319_p11, %p6318_p8 }
 0x356   : > { %p6316_p2 = pneg %p6315_p0 }
 0x357   : > { %p6322_p13 = por %p6321_p3, %p6320_p7 }
 0x359   : > { %p6323_p4 = pnand %p6322_p13, %p6316_p2 }
 0x35b   : > { %6326 = shalt.err (!%p6323_p4)
}
 0x35c   : > { %6130 = dma.vmem_to_hbm [thread:$0]  (%p10277_p6), %s9831_s24, 512, %s9829_s25, %s5973_s15  }
 0x35d PF: > { %p6145_p10 = scmp.ge.s32.totalorder %s6425_s19, 2  ;;  %s6001_s6 = sand.u32 1, %s6385_s9  }
 0x35e   : > { %p10278_p12 = scmp.ne.s32.totalorder %s10062_s21, 0  ;;  %s6002_s5 = scalar_lea.sflag [#allocation4], %s6001_s6 }
 0x360   : > { %p6141_p1 = pnand %p6145_p10, %p10278_p12 }
 0x362   : > { %6380 = dma.done.wait (!%p6141_p1), %s6002_s5, 512  }
 0x363   : > { %6382 = vsyncadd (!%p6141_p1), %s6002_s5, 4294966784  ;;  %s19_s19 = sadd.s32 1, %s6425_s19   ;;  %s10279_s7 = sld [smem:[#allocation11_spill]] }
 0x364   : > { %p16_p5 = scmp.ge.s32.totalorder %s19_s19, 6   ;;  %s10280_s0 = sld [smem:[#allocation12_spill]] }
 0x365   : > { %s10281_s24 = sld [smem:[#allocation13_spill]]  ;;  %s10282_s9 = smov %s6389_s10 }
 0x366   : > { %s10283_s10 = smov %s6393_s11  ;;  %s10284_s11 = smov %s6606_s12 }
 0x367   : > { %s10286_s13 = smov %s6405_s14  ;;  %s10287_s14 = smov %s6603_s8 }
 0x368   : > { %s10288_s15 = smov %s6417_s17  ;;  %s10289_s16 = smov %s6421_s18 }
 0x369   : > { %s10285_s12 = smov %s10279_s7  ;;  %18 = sbr.rel (!%p16_p5) target bundleno = 12 (0xc), region = 79 }
 0x36a   : > { %s10290_s17 = smov %s10280_s0 }
 0x36b   : > { %s10291_s18 = smov %s10281_s24 }
 0x370   :  { %6007 = vsyncpa [#allocation3], 1 }
 0x371   :  { %6009 = vsyncpa [#allocation3 + $0x1], 1 }
 0x372   :  { %6010 = vsyncpa [#allocation6], 1 }
 0x373   :  { %6012 = vsyncpa [#allocation6 + $0x1], 1 }
 0x374   :  { %6013 = vsyncpa [#allocation4], 1 }
 0x375   :  { %6015 = vsyncpa [#allocation4 + $0x1], 1 }

</bundles_post_ra>
